<compile_context>
chip_gen: v7x
topology: tpu7x:2x2x1
jax: 0.10.0
libtpu: 0.0.40
codegen_flags: <defaults>
</compile_context>

<pallas_src>
import functools

import jax
import jax.numpy as jnp
from jax.experimental import pallas as pl
from jax.experimental.pallas import tpu as pltpu


# ---------------------------------------------------------------------------
# Kernel
# ---------------------------------------------------------------------------
def _decode_kernel(src_h_ref, bias_ref, wf_ref, wg_ref, bg_ref, out_ref,
                   *, bos_idx, profile_num):
    """One batch block: run `profile_num` greedy decode steps for all rows at once."""
    src_h = src_h_ref[...]                       # (B, S, H) bf16 — concat([id_hidden, topic_hidden])
    bias = bias_ref[...]                         # (B, S) f32   — additive mask bias (0 / -1e9)
    wf = wf_ref[...]                             # (H, V+H) bf16 — [ (tok_emb@Wq*scale)^T | Wo ]
    wg = wg_ref[...]                             # (H, V) bf16   — gen_proj weight
    bg = bg_ref[...]                             # (1, V) f32    — gen_proj bias
    B, S, H = src_h.shape
    V = wg.shape[1]

    # ---- token-independent precompute: ONE fused MXU matmul (shared LHS, concat RHS) ----
    src2 = src_h.reshape(B * S, H)
    asw = jnp.dot(src2, wf, preferred_element_type=jnp.float32)        # (B*S, V+H)
    # a[b, s, v] = src_h[b, s, :] . (Wq tok_emb[v])   (attention scale folded into wf) — keep f32
    a = asw[:, :V].reshape(B, S, V)
    # swo[b, s, :] = src_h[b, s, :] @ Wo — attention values pre-projected by Wo — keep f32
    swo = asw[:, V:].reshape(B, S, H)

    vocab_iota = jax.lax.broadcasted_iota(jnp.int32, (B, V), 1)        # hoisted out of the loop
    prev = jnp.full((B, 1), bos_idx, jnp.int32)
    tokens = []

    # ---- fully-unrolled greedy decode loop (profile_num is a small static constant) ----
    for _ in range(profile_num):
        # gather of the pre-projected key scores for the previous token:
        # VPU multiply + lane reduce (no degenerate M=1 MXU pass on the serial chain)
        onehot = (vocab_iota == prev).astype(jnp.float32)              # (B, V)
        s = jnp.sum(a * onehot[:, None, :], axis=-1) + bias            # (B, S) f32
        # masked softmax over source positions (EUP exp + approx reciprocal)
        s = s - jnp.max(s, axis=-1, keepdims=True)
        w = jnp.exp(s)
        attn = w * pl.reciprocal(jnp.sum(w, axis=-1, keepdims=True), approx=True)  # (B, S)
        # attention readout: broadcast multiply + sublane reduce (S is small), then tanh (EUP)
        dec = jnp.tanh(jnp.sum(attn[:, :, None] * swo, axis=1))        # (B, H) f32
        # gen_proj — the only well-shaped per-step MXU matmul (M = B rows);
        # the torch softmax is dropped: argmax(softmax(x)) == argmax(x).
        logits = jnp.dot(dec.astype(jnp.bfloat16), wg,
                         preferred_element_type=jnp.float32) + bg      # (B, V)
        maxv = jnp.max(logits, axis=-1, keepdims=True)
        cand = jnp.where(logits == maxv, vocab_iota, jnp.int32(V))
        prev = jnp.min(cand, axis=-1, keepdims=True)                   # (B, 1) first argmax
        prev = jnp.minimum(prev, jnp.int32(V - 1))                     # NaN-row guard: stay in vocab
        tokens.append(prev)

    # single batched store of all decoded tokens (no per-step masked vst / tiny output DMA)
    out_ref[...] = jnp.concatenate(tokens, axis=1)                     # (B, profile_num)


# ---------------------------------------------------------------------------
# Wrapper
# ---------------------------------------------------------------------------
def _vmem_limit_bytes():
    # Generation-aware VMEM budget with ~25% headroom for compiler scratch / double buffers
    # (never hand the compiler the full 64 MiB on v7x; v5e/v6e can use more of their 128 MiB).
    try:
        cap = pltpu.get_tpu_info().vmem_capacity_bytes
    except Exception:
        cap = 64 * 1024 * 1024
    return int(cap) * 3 // 4


def _num_grid_blocks(bs):
    # A 2-way "parallel" batch split only pays off with 2 TensorCores (v7x) AND enough real rows
    # per block; on 1-TC v5e/v6e (or tiny batches) the grid is a serial loop that duplicates the
    # precompute and the whole unrolled decode.
    try:
        kind = jax.devices()[0].device_kind.lower()
    except Exception:
        kind = ""
    two_tc = ("v7" in kind) or ("7x" in kind)
    return 2 if (two_tc and bs >= 16) else 1


def preprocess_params(params):
    """One-time, call-independent weight preprocessing (hoisted out of the per-call forward)."""
    H = params["wq"].shape[0]
    V = params["gen_w"].shape[1]
    scale = 1.0 / (H ** 0.5)
    # (tok_emb @ Wq) with the attention scale folded in, transposed to (H, V)
    ewq_t = ((params["tok_emb"].astype(jnp.float32) @ params["wq"].astype(jnp.float32))
             * scale).T
    # Fuse with Wo along N so the in-kernel precompute is a single MXU matmul: (H, V + H)
    w_fused = jnp.concatenate([ewq_t, params["wo"].astype(jnp.float32)],
                              axis=1).astype(jnp.bfloat16)
    return {
        "id_emb": params["id_emb"].astype(jnp.float32),
        "w_fused": w_fused,                                            # (H, V+H) bf16
        "gen_w": params["gen_w"].astype(jnp.bfloat16),                 # (H, V) bf16
        "gen_b": params["gen_b"].reshape(1, V).astype(jnp.float32),    # (1, V) f32
    }


def _make_call(kernel, bs_pad, blk, S, H, V, Vf, profile_num, n_blocks,
               single_buffer_weights):
    def wspec(shape):
        # Constant index_map across the grid; request single buffering to halve the weights'
        # VMEM footprint (matters at realistic V under the v7x 64 MiB budget).
        kw = {"pipeline_mode": pl.Buffered(1)} if single_buffer_weights else {}
        return pl.BlockSpec(shape, lambda i: (0,) * len(shape), **kw)

    return pl.pallas_call(
        kernel,
        out_shape=jax.ShapeDtypeStruct((bs_pad, profile_num), jnp.int32),
        grid_spec=pltpu.PrefetchScalarGridSpec(
            num_scalar_prefetch=0,
            grid=(n_blocks,),
            in_specs=[
                pl.BlockSpec((blk, S, H), lambda i: (i, 0, 0)),   # src_hidden (bf16)
                pl.BlockSpec((blk, S), lambda i: (i, 0)),         # additive mask bias (f32)
                wspec((H, Vf)),                                   # fused [ewq^T | Wo]
                wspec((H, V)),                                    # gen_proj weight
                wspec((1, V)),                                    # gen_proj bias
            ],
            out_specs=pl.BlockSpec((blk, profile_num), lambda i: (i, 0)),
        ),
        compiler_params=pltpu.CompilerParams(
            dimension_semantics=("parallel",),
            vmem_limit_bytes=_vmem_limit_bytes()),
    )


def posterior_profile_forward(user_id, topics, topics_len, topic_hidden, prepped,
                              *, bos_idx, profile_num, all_topic_num):
    """Eval-mode forward: returns seq_gen_gumbel[:, 1:] as int32 [bs, profile_num]."""
    del topics  # unused by PosteriorProfile.forward (only used in .proj)
    bs = user_id.shape[0]
    H = topic_hidden.shape[-1]
    V = prepped["gen_w"].shape[1]
    Vf = prepped["w_fused"].shape[1]

    # id_encoder stand-in: embedding lookup → id_hidden_q [bs, 1, H]
    id_hidden = prepped["id_emb"][user_id][:, None, :]
    src_hidden = jnp.concatenate(
        [id_hidden, topic_hidden.astype(jnp.float32)], axis=1)         # [bs, S, H]
    S = src_hidden.shape[1]

    # Tools.get_mask_via_len(topics_len, all_topic_num) and id_mask = ones(bs,1,1)
    topic_mask = (jnp.arange(all_topic_num)[None, :] <
                  topics_len[:, None]).astype(jnp.float32)             # [bs, T]
    src_mask = jnp.concatenate(
        [jnp.ones((bs, 1), jnp.float32), topic_mask], axis=1)          # [bs, S]
    mask_bias = jnp.where(src_mask > 0, 0.0, -1e9).astype(jnp.float32) # [bs, S] additive bias

    # Batch packing: single block unless v7x with enough rows. blk is only padded to the 8-row
    # sublane minimum here; for production batch sizes use a multiple of the MXU height
    # (128 on v5e, 256 on v6e/v7x) so the per-step gen_proj matmul fills the M dim.
    n_blocks = _num_grid_blocks(bs)
    rows = -(-bs // n_blocks)
    blk = max(8, ((rows + 7) // 8) * 8)
    bs_pad = n_blocks * blk
    pad = bs_pad - bs
    src_h_p = jnp.pad(src_hidden, ((0, pad), (0, 0), (0, 0))).astype(jnp.bfloat16)
    bias_p = jnp.pad(mask_bias, ((0, pad), (0, 0)), constant_values=-1e9)

    kernel = functools.partial(_decode_kernel, bos_idx=bos_idx, profile_num=profile_num)
    args = (src_h_p, bias_p, prepped["w_fused"], prepped["gen_w"], prepped["gen_b"])
    try:
        out = _make_call(kernel, bs_pad, blk, S, H, V, Vf, profile_num, n_blocks,
                         single_buffer_weights=True)(*args)
    except Exception:
        # pl.Buffered(1) (single-buffered constant weights) not supported on this jax/libtpu;
        # fall back to default double buffering (correctness identical, only costs VMEM).
        out = _make_call(kernel, bs_pad, blk, S, H, V, Vf, profile_num, n_blocks,
                         single_buffer_weights=False)(*args)
    return out[:bs]


def init_params(key, *, n_topic_vocab, hidden_size, n_users):
    ks = jax.random.split(key, 6)
    s = 0.02
    return {
        "id_emb": s * jax.random.normal(ks[0], (n_users, hidden_size), jnp.float32),
        "tok_emb": s * jax.random.normal(ks[1], (n_topic_vocab, hidden_size), jnp.float32),
        "wq": s * jax.random.normal(ks[2], (hidden_size, hidden_size), jnp.float32),
        "wo": s * jax.random.normal(ks[3], (hidden_size, hidden_size), jnp.float32),
        "gen_w": s * jax.random.normal(ks[4], (hidden_size, n_topic_vocab), jnp.float32),
        "gen_b": s * jax.random.normal(ks[5], (n_topic_vocab,), jnp.float32),
    }


if __name__ == "__main__":
    # small, tile-friendly config
    BS = 2
    HIDDEN = 128            # hidden_size
    N_TOPIC_VOCAB = 128     # n_topic_vocab
    N_USERS = 32
    ALL_TOPIC_NUM = 7       # op.all_topic_num_redial  → S = 1 + 7 = 8
    PROFILE_NUM = 4         # op.profile_num
    BOS_IDX = 1             # trg_bos_idx

    key = jax.random.PRNGKey(0)
    k_id, k_tl, k_th, k_params = jax.random.split(key, 4)

    user_id = jax.random.randint(k_id, (BS,), 0, N_USERS, jnp.int32)
    topics = jax.random.randint(k_tl, (BS, ALL_TOPIC_NUM), 0, N_TOPIC_VOCAB, jnp.int32)
    topics_len = jnp.array([5, 3], jnp.int32)
    topic_hidden = jax.random.normal(k_th, (BS, ALL_TOPIC_NUM, HIDDEN), jnp.float32)

    params = init_params(k_params, n_topic_vocab=N_TOPIC_VOCAB,
                         hidden_size=HIDDEN, n_users=N_USERS)
    prepped = preprocess_params(params)   # one-time weight preprocessing (hoisted out of forward)

    seq = posterior_profile_forward(
        user_id, topics, topics_len, topic_hidden, prepped,
        bos_idx=BOS_IDX, profile_num=PROFILE_NUM, all_topic_num=ALL_TOPIC_NUM)
    seq = jax.block_until_ready(seq)
    assert seq.shape == (BS, PROFILE_NUM) and seq.dtype == jnp.int32
    print("KERNEL_OK")
</pallas_src>

<mosaic_0001>
module attributes {stable_mosaic.version = 11 : i64} {
  func.func @_decode_kernel(%arg0: i32, %arg1: memref<8x8x128xbf16, #tpu.memory_space<vmem>>, %arg2: memref<8x8xf32, #tpu.memory_space<vmem>>, %arg3: memref<128x256xbf16, #tpu.memory_space<vmem>>, %arg4: memref<128x128xbf16, #tpu.memory_space<vmem>>, %arg5: memref<1x128xf32, #tpu.memory_space<vmem>>, %arg6: memref<8x4xi32, #tpu.memory_space<vmem>>) attributes {dimension_semantics = [#tpu.dimension_semantics<parallel>], iteration_bounds = array<i64: 1>, scalar_prefetch = 0 : i64, scratch_operands = 0 : i64, tpu.core_type = #tpu.core_type<tc>, window_params = [{transform_indices = @transform_0, window_bounds = array<i64: 8, 8, 128>}, {transform_indices = @transform_1, window_bounds = array<i64: 8, 8>}, {pipeline_mode = #tpu.pipeline_mode<synchronous>, transform_indices = @transform_2, window_bounds = array<i64: 128, 256>}, {pipeline_mode = #tpu.pipeline_mode<synchronous>, transform_indices = @transform_3, window_bounds = array<i64: 128, 128>}, {pipeline_mode = #tpu.pipeline_mode<synchronous>, transform_indices = @transform_4, window_bounds = array<i64: 1, 128>}, {transform_indices = @transform_5, window_bounds = array<i64: 8, 4>}]} {
    %c0 = arith.constant 0 : index
    %c0_0 = arith.constant 0 : index
    %c0_1 = arith.constant 0 : index
    %0 = vector.load %arg1[%c0, %c0_0, %c0_1] : memref<8x8x128xbf16, #tpu.memory_space<vmem>>, vector<8x8x128xbf16>
    %c0_2 = arith.constant 0 : index
    %c0_3 = arith.constant 0 : index
    %1 = vector.load %arg2[%c0_2, %c0_3] : memref<8x8xf32, #tpu.memory_space<vmem>>, vector<8x8xf32>
    %c0_4 = arith.constant 0 : index
    %c0_5 = arith.constant 0 : index
    %2 = vector.load %arg3[%c0_4, %c0_5] : memref<128x256xbf16, #tpu.memory_space<vmem>>, vector<128x256xbf16>
    %c0_6 = arith.constant 0 : index
    %c0_7 = arith.constant 0 : index
    %3 = vector.load %arg4[%c0_6, %c0_7] : memref<128x128xbf16, #tpu.memory_space<vmem>>, vector<128x128xbf16>
    %c0_8 = arith.constant 0 : index
    %c0_9 = arith.constant 0 : index
    %4 = vector.load %arg5[%c0_8, %c0_9] : memref<1x128xf32, #tpu.memory_space<vmem>>, vector<1x128xf32>
    %5 = vector.shape_cast %0 : vector<8x8x128xbf16> to vector<64x128xbf16>
    %cst = arith.constant dense<0.000000e+00> : vector<64x256xf32>
    %6 = tpu.matmul %5, %2, %cst {dimension_numbers = #tpu.dot_dimension_numbers<[1], [0], [0], [1], [0, 0, 1, 1], [], []>} : vector<64x128xbf16>, vector<128x256xbf16>, vector<64x256xf32> -> vector<64x256xf32>
    %7 = vector.extract_strided_slice %6 {offsets = [0, 0], sizes = [64, 128], strides = [1, 1]} : vector<64x256xf32> to vector<64x128xf32>
    %8 = vector.shape_cast %7 : vector<64x128xf32> to vector<8x8x128xf32>
    %9 = vector.extract_strided_slice %6 {offsets = [0, 128], sizes = [64, 128], strides = [1, 1]} : vector<64x256xf32> to vector<64x128xf32>
    %10 = vector.shape_cast %9 : vector<64x128xf32> to vector<8x8x128xf32>
    %11 = tpu.iota {dimensions = array<i32: 1>} : vector<8x128xi32>
    %c1_i32 = arith.constant 1 : i32
    %12 = vector.broadcast %c1_i32 : i32 to vector<8x1xi32>
    %13 = vector.broadcast %12 : vector<8x1xi32> to vector<8x128xi32>
    %14 = arith.cmpi eq, %11, %13 : vector<8x128xi32>
    %15 = arith.extui %14 : vector<8x128xi1> to vector<8x128xi32>
    %16 = arith.sitofp %15 : vector<8x128xi32> to vector<8x128xf32>
    %17 = vector.shape_cast %16 : vector<8x128xf32> to vector<8x1x128xf32>
    %18 = vector.broadcast %17 : vector<8x1x128xf32> to vector<8x8x128xf32>
    %19 = arith.mulf %8, %18 : vector<8x8x128xf32>
    %cst_10 = arith.constant dense<0.000000e+00> : vector<8x8xf32>
    %20 = vector.multi_reduction <add>, %19, %cst_10 [2] : vector<8x8x128xf32> to vector<8x8xf32>
    %21 = arith.addf %20, %1 : vector<8x8xf32>
    %cst_11 = arith.constant dense<0xFF800000> : vector<8xf32>
    %22 = vector.multi_reduction <maximumf>, %21, %cst_11 [1] : vector<8x8xf32> to vector<8xf32>
    %23 = vector.shape_cast %22 : vector<8xf32> to vector<8x1xf32>
    %24 = vector.broadcast %23 : vector<8x1xf32> to vector<8x8xf32>
    %25 = arith.subf %21, %24 : vector<8x8xf32>
    %26 = math.exp %25 : vector<8x8xf32>
    %cst_12 = arith.constant dense<0.000000e+00> : vector<8xf32>
    %27 = vector.multi_reduction <add>, %26, %cst_12 [1] : vector<8x8xf32> to vector<8xf32>
    %28 = vector.shape_cast %27 : vector<8xf32> to vector<8x1xf32>
    %29 = tpu.reciprocal %28 {approx = true} : vector<8x1xf32> -> vector<8x1xf32>
    %30 = vector.broadcast %29 : vector<8x1xf32> to vector<8x8xf32>
    %31 = arith.mulf %26, %30 : vector<8x8xf32>
    %32 = vector.shape_cast %31 : vector<8x8xf32> to vector<8x8x1xf32>
    %33 = vector.broadcast %32 : vector<8x8x1xf32> to vector<8x8x128xf32>
    %34 = arith.mulf %33, %10 : vector<8x8x128xf32>
    %cst_13 = arith.constant dense<0.000000e+00> : vector<8x128xf32>
    %35 = vector.multi_reduction <add>, %34, %cst_13 [1] : vector<8x8x128xf32> to vector<8x128xf32>
    %36 = math.tanh %35 : vector<8x128xf32>
    %37 = arith.truncf %36 : vector<8x128xf32> to vector<8x128xbf16>
    %cst_14 = arith.constant dense<0.000000e+00> : vector<8x128xf32>
    %38 = tpu.matmul %37, %3, %cst_14 {dimension_numbers = #tpu.dot_dimension_numbers<[1], [0], [0], [1], [0, 0, 1, 1], [], []>} : vector<8x128xbf16>, vector<128x128xbf16>, vector<8x128xf32> -> vector<8x128xf32>
    %39 = vector.broadcast %4 : vector<1x128xf32> to vector<8x128xf32>
    %40 = arith.addf %38, %39 : vector<8x128xf32>
    %cst_15 = arith.constant dense<0xFF800000> : vector<8xf32>
    %41 = vector.multi_reduction <maximumf>, %40, %cst_15 [1] : vector<8x128xf32> to vector<8xf32>
    %42 = vector.shape_cast %41 : vector<8xf32> to vector<8x1xf32>
    %43 = vector.broadcast %42 : vector<8x1xf32> to vector<8x128xf32>
    %44 = arith.cmpf oeq, %40, %43 : vector<8x128xf32>
    %c128_i32 = arith.constant 128 : i32
    %45 = vector.broadcast %c128_i32 : i32 to vector<8x128xi32>
    %46 = arith.select %44, %11, %45 : vector<8x128xi1>, vector<8x128xi32>
    %cst_16 = arith.constant dense<2147483647> : vector<8xi32>
    %47 = vector.multi_reduction <minsi>, %46, %cst_16 [1] : vector<8x128xi32> to vector<8xi32>
    %48 = vector.shape_cast %47 : vector<8xi32> to vector<8x1xi32>
    %c127_i32 = arith.constant 127 : i32
    %49 = vector.broadcast %c127_i32 : i32 to vector<8x1xi32>
    %50 = arith.minsi %48, %49 : vector<8x1xi32>
    %51 = vector.broadcast %50 : vector<8x1xi32> to vector<8x128xi32>
    %52 = arith.cmpi eq, %11, %51 : vector<8x128xi32>
    %53 = arith.extui %52 : vector<8x128xi1> to vector<8x128xi32>
    %54 = arith.sitofp %53 : vector<8x128xi32> to vector<8x128xf32>
    %55 = vector.shape_cast %54 : vector<8x128xf32> to vector<8x1x128xf32>
    %56 = vector.broadcast %55 : vector<8x1x128xf32> to vector<8x8x128xf32>
    %57 = arith.mulf %8, %56 : vector<8x8x128xf32>
    %cst_17 = arith.constant dense<0.000000e+00> : vector<8x8xf32>
    %58 = vector.multi_reduction <add>, %57, %cst_17 [2] : vector<8x8x128xf32> to vector<8x8xf32>
    %59 = arith.addf %58, %1 : vector<8x8xf32>
    %cst_18 = arith.constant dense<0xFF800000> : vector<8xf32>
    %60 = vector.multi_reduction <maximumf>, %59, %cst_18 [1] : vector<8x8xf32> to vector<8xf32>
    %61 = vector.shape_cast %60 : vector<8xf32> to vector<8x1xf32>
    %62 = vector.broadcast %61 : vector<8x1xf32> to vector<8x8xf32>
    %63 = arith.subf %59, %62 : vector<8x8xf32>
    %64 = math.exp %63 : vector<8x8xf32>
    %cst_19 = arith.constant dense<0.000000e+00> : vector<8xf32>
    %65 = vector.multi_reduction <add>, %64, %cst_19 [1] : vector<8x8xf32> to vector<8xf32>
    %66 = vector.shape_cast %65 : vector<8xf32> to vector<8x1xf32>
    %67 = tpu.reciprocal %66 {approx = true} : vector<8x1xf32> -> vector<8x1xf32>
    %68 = vector.broadcast %67 : vector<8x1xf32> to vector<8x8xf32>
    %69 = arith.mulf %64, %68 : vector<8x8xf32>
    %70 = vector.shape_cast %69 : vector<8x8xf32> to vector<8x8x1xf32>
    %71 = vector.broadcast %70 : vector<8x8x1xf32> to vector<8x8x128xf32>
    %72 = arith.mulf %71, %10 : vector<8x8x128xf32>
    %cst_20 = arith.constant dense<0.000000e+00> : vector<8x128xf32>
    %73 = vector.multi_reduction <add>, %72, %cst_20 [1] : vector<8x8x128xf32> to vector<8x128xf32>
    %74 = math.tanh %73 : vector<8x128xf32>
    %75 = arith.truncf %74 : vector<8x128xf32> to vector<8x128xbf16>
    %cst_21 = arith.constant dense<0.000000e+00> : vector<8x128xf32>
    %76 = tpu.matmul %75, %3, %cst_21 {dimension_numbers = #tpu.dot_dimension_numbers<[1], [0], [0], [1], [0, 0, 1, 1], [], []>} : vector<8x128xbf16>, vector<128x128xbf16>, vector<8x128xf32> -> vector<8x128xf32>
    %77 = vector.broadcast %4 : vector<1x128xf32> to vector<8x128xf32>
    %78 = arith.addf %76, %77 : vector<8x128xf32>
    %cst_22 = arith.constant dense<0xFF800000> : vector<8xf32>
    %79 = vector.multi_reduction <maximumf>, %78, %cst_22 [1] : vector<8x128xf32> to vector<8xf32>
    %80 = vector.shape_cast %79 : vector<8xf32> to vector<8x1xf32>
    %81 = vector.broadcast %80 : vector<8x1xf32> to vector<8x128xf32>
    %82 = arith.cmpf oeq, %78, %81 : vector<8x128xf32>
    %c128_i32_23 = arith.constant 128 : i32
    %83 = vector.broadcast %c128_i32_23 : i32 to vector<8x128xi32>
    %84 = arith.select %82, %11, %83 : vector<8x128xi1>, vector<8x128xi32>
    %cst_24 = arith.constant dense<2147483647> : vector<8xi32>
    %85 = vector.multi_reduction <minsi>, %84, %cst_24 [1] : vector<8x128xi32> to vector<8xi32>
    %86 = vector.shape_cast %85 : vector<8xi32> to vector<8x1xi32>
    %c127_i32_25 = arith.constant 127 : i32
    %87 = vector.broadcast %c127_i32_25 : i32 to vector<8x1xi32>
    %88 = arith.minsi %86, %87 : vector<8x1xi32>
    %89 = vector.broadcast %88 : vector<8x1xi32> to vector<8x128xi32>
    %90 = arith.cmpi eq, %11, %89 : vector<8x128xi32>
    %91 = arith.extui %90 : vector<8x128xi1> to vector<8x128xi32>
    %92 = arith.sitofp %91 : vector<8x128xi32> to vector<8x128xf32>
    %93 = vector.shape_cast %92 : vector<8x128xf32> to vector<8x1x128xf32>
    %94 = vector.broadcast %93 : vector<8x1x128xf32> to vector<8x8x128xf32>
    %95 = arith.mulf %8, %94 : vector<8x8x128xf32>
    %cst_26 = arith.constant dense<0.000000e+00> : vector<8x8xf32>
    %96 = vector.multi_reduction <add>, %95, %cst_26 [2] : vector<8x8x128xf32> to vector<8x8xf32>
    %97 = arith.addf %96, %1 : vector<8x8xf32>
    %cst_27 = arith.constant dense<0xFF800000> : vector<8xf32>
    %98 = vector.multi_reduction <maximumf>, %97, %cst_27 [1] : vector<8x8xf32> to vector<8xf32>
    %99 = vector.shape_cast %98 : vector<8xf32> to vector<8x1xf32>
    %100 = vector.broadcast %99 : vector<8x1xf32> to vector<8x8xf32>
    %101 = arith.subf %97, %100 : vector<8x8xf32>
    %102 = math.exp %101 : vector<8x8xf32>
    %cst_28 = arith.constant dense<0.000000e+00> : vector<8xf32>
    %103 = vector.multi_reduction <add>, %102, %cst_28 [1] : vector<8x8xf32> to vector<8xf32>
    %104 = vector.shape_cast %103 : vector<8xf32> to vector<8x1xf32>
    %105 = tpu.reciprocal %104 {approx = true} : vector<8x1xf32> -> vector<8x1xf32>
    %106 = vector.broadcast %105 : vector<8x1xf32> to vector<8x8xf32>
    %107 = arith.mulf %102, %106 : vector<8x8xf32>
    %108 = vector.shape_cast %107 : vector<8x8xf32> to vector<8x8x1xf32>
    %109 = vector.broadcast %108 : vector<8x8x1xf32> to vector<8x8x128xf32>
    %110 = arith.mulf %109, %10 : vector<8x8x128xf32>
    %cst_29 = arith.constant dense<0.000000e+00> : vector<8x128xf32>
    %111 = vector.multi_reduction <add>, %110, %cst_29 [1] : vector<8x8x128xf32> to vector<8x128xf32>
    %112 = math.tanh %111 : vector<8x128xf32>
    %113 = arith.truncf %112 : vector<8x128xf32> to vector<8x128xbf16>
    %cst_30 = arith.constant dense<0.000000e+00> : vector<8x128xf32>
    %114 = tpu.matmul %113, %3, %cst_30 {dimension_numbers = #tpu.dot_dimension_numbers<[1], [0], [0], [1], [0, 0, 1, 1], [], []>} : vector<8x128xbf16>, vector<128x128xbf16>, vector<8x128xf32> -> vector<8x128xf32>
    %115 = vector.broadcast %4 : vector<1x128xf32> to vector<8x128xf32>
    %116 = arith.addf %114, %115 : vector<8x128xf32>
    %cst_31 = arith.constant dense<0xFF800000> : vector<8xf32>
    %117 = vector.multi_reduction <maximumf>, %116, %cst_31 [1] : vector<8x128xf32> to vector<8xf32>
    %118 = vector.shape_cast %117 : vector<8xf32> to vector<8x1xf32>
    %119 = vector.broadcast %118 : vector<8x1xf32> to vector<8x128xf32>
    %120 = arith.cmpf oeq, %116, %119 : vector<8x128xf32>
    %c128_i32_32 = arith.constant 128 : i32
    %121 = vector.broadcast %c128_i32_32 : i32 to vector<8x128xi32>
    %122 = arith.select %120, %11, %121 : vector<8x128xi1>, vector<8x128xi32>
    %cst_33 = arith.constant dense<2147483647> : vector<8xi32>
    %123 = vector.multi_reduction <minsi>, %122, %cst_33 [1] : vector<8x128xi32> to vector<8xi32>
    %124 = vector.shape_cast %123 : vector<8xi32> to vector<8x1xi32>
    %c127_i32_34 = arith.constant 127 : i32
    %125 = vector.broadcast %c127_i32_34 : i32 to vector<8x1xi32>
    %126 = arith.minsi %124, %125 : vector<8x1xi32>
    %127 = vector.broadcast %126 : vector<8x1xi32> to vector<8x128xi32>
    %128 = arith.cmpi eq, %11, %127 : vector<8x128xi32>
    %129 = arith.extui %128 : vector<8x128xi1> to vector<8x128xi32>
    %130 = arith.sitofp %129 : vector<8x128xi32> to vector<8x128xf32>
    %131 = vector.shape_cast %130 : vector<8x128xf32> to vector<8x1x128xf32>
    %132 = vector.broadcast %131 : vector<8x1x128xf32> to vector<8x8x128xf32>
    %133 = arith.mulf %8, %132 : vector<8x8x128xf32>
    %cst_35 = arith.constant dense<0.000000e+00> : vector<8x8xf32>
    %134 = vector.multi_reduction <add>, %133, %cst_35 [2] : vector<8x8x128xf32> to vector<8x8xf32>
    %135 = arith.addf %134, %1 : vector<8x8xf32>
    %cst_36 = arith.constant dense<0xFF800000> : vector<8xf32>
    %136 = vector.multi_reduction <maximumf>, %135, %cst_36 [1] : vector<8x8xf32> to vector<8xf32>
    %137 = vector.shape_cast %136 : vector<8xf32> to vector<8x1xf32>
    %138 = vector.broadcast %137 : vector<8x1xf32> to vector<8x8xf32>
    %139 = arith.subf %135, %138 : vector<8x8xf32>
    %140 = math.exp %139 : vector<8x8xf32>
    %cst_37 = arith.constant dense<0.000000e+00> : vector<8xf32>
    %141 = vector.multi_reduction <add>, %140, %cst_37 [1] : vector<8x8xf32> to vector<8xf32>
    %142 = vector.shape_cast %141 : vector<8xf32> to vector<8x1xf32>
    %143 = tpu.reciprocal %142 {approx = true} : vector<8x1xf32> -> vector<8x1xf32>
    %144 = vector.broadcast %143 : vector<8x1xf32> to vector<8x8xf32>
    %145 = arith.mulf %140, %144 : vector<8x8xf32>
    %146 = vector.shape_cast %145 : vector<8x8xf32> to vector<8x8x1xf32>
    %147 = vector.broadcast %146 : vector<8x8x1xf32> to vector<8x8x128xf32>
    %148 = arith.mulf %147, %10 : vector<8x8x128xf32>
    %cst_38 = arith.constant dense<0.000000e+00> : vector<8x128xf32>
    %149 = vector.multi_reduction <add>, %148, %cst_38 [1] : vector<8x8x128xf32> to vector<8x128xf32>
    %150 = math.tanh %149 : vector<8x128xf32>
    %151 = arith.truncf %150 : vector<8x128xf32> to vector<8x128xbf16>
    %cst_39 = arith.constant dense<0.000000e+00> : vector<8x128xf32>
    %152 = tpu.matmul %151, %3, %cst_39 {dimension_numbers = #tpu.dot_dimension_numbers<[1], [0], [0], [1], [0, 0, 1, 1], [], []>} : vector<8x128xbf16>, vector<128x128xbf16>, vector<8x128xf32> -> vector<8x128xf32>
    %153 = vector.broadcast %4 : vector<1x128xf32> to vector<8x128xf32>
    %154 = arith.addf %152, %153 : vector<8x128xf32>
    %cst_40 = arith.constant dense<0xFF800000> : vector<8xf32>
    %155 = vector.multi_reduction <maximumf>, %154, %cst_40 [1] : vector<8x128xf32> to vector<8xf32>
    %156 = vector.shape_cast %155 : vector<8xf32> to vector<8x1xf32>
    %157 = vector.broadcast %156 : vector<8x1xf32> to vector<8x128xf32>
    %158 = arith.cmpf oeq, %154, %157 : vector<8x128xf32>
    %c128_i32_41 = arith.constant 128 : i32
    %159 = vector.broadcast %c128_i32_41 : i32 to vector<8x128xi32>
    %160 = arith.select %158, %11, %159 : vector<8x128xi1>, vector<8x128xi32>
    %cst_42 = arith.constant dense<2147483647> : vector<8xi32>
    %161 = vector.multi_reduction <minsi>, %160, %cst_42 [1] : vector<8x128xi32> to vector<8xi32>
    %162 = vector.shape_cast %161 : vector<8xi32> to vector<8x1xi32>
    %c127_i32_43 = arith.constant 127 : i32
    %163 = vector.broadcast %c127_i32_43 : i32 to vector<8x1xi32>
    %164 = arith.minsi %162, %163 : vector<8x1xi32>
    %165 = tpu.concatenate %50, %88, %126, %164 in 1 : vector<8x1xi32>, vector<8x1xi32>, vector<8x1xi32>, vector<8x1xi32> -> vector<8x4xi32>
    %c0_44 = arith.constant 0 : index
    %c0_45 = arith.constant 0 : index
    %166 = vector.load %arg6[%c0_44, %c0_45] : memref<8x4xi32, #tpu.memory_space<vmem>>, vector<8x4xi32>
    tpu.vector_store %arg6[%c0_44, %c0_45], %165 {strides = array<i32>} : memref<8x4xi32, #tpu.memory_space<vmem>>, vector<8x4xi32>,
    return
  }
  func.func @transform_0(%arg0: i32) -> (i32, i32, i32) {
    %c0_i32 = arith.constant 0 : i32
    %c0_i32_0 = arith.constant 0 : i32
    %c0_i32_1 = arith.constant 0 : i32
    return %arg0, %c0_i32, %c0_i32_0 : i32, i32, i32
  }
  func.func @transform_1(%arg0: i32) -> (i32, i32) {
    %c0_i32 = arith.constant 0 : i32
    %c0_i32_0 = arith.constant 0 : i32
    return %arg0, %c0_i32 : i32, i32
  }
  func.func @transform_2(%arg0: i32) -> (i32, i32) {
    %c0_i32 = arith.constant 0 : i32
    %c0_i32_0 = arith.constant 0 : i32
    %c0_i32_1 = arith.constant 0 : i32
    return %c0_i32, %c0_i32_0 : i32, i32
  }
  func.func @transform_3(%arg0: i32) -> (i32, i32) {
    %c0_i32 = arith.constant 0 : i32
    %c0_i32_0 = arith.constant 0 : i32
    %c0_i32_1 = arith.constant 0 : i32
    return %c0_i32, %c0_i32_0 : i32, i32
  }
  func.func @transform_4(%arg0: i32) -> (i32, i32) {
    %c0_i32 = arith.constant 0 : i32
    %c0_i32_0 = arith.constant 0 : i32
    %c0_i32_1 = arith.constant 0 : i32
    return %c0_i32, %c0_i32_0 : i32, i32
  }
  func.func @transform_5(%arg0: i32) -> (i32, i32) {
    %c0_i32 = arith.constant 0 : i32
    %c0_i32_0 = arith.constant 0 : i32
    return %arg0, %c0_i32 : i32, i32
  }
}

module attributes {stable_mosaic.version = 11 : i64} {
  func.func @_decode_kernel(%arg0: i32, %arg1: memref<8x8x128xbf16, #tpu.memory_space<vmem>>, %arg2: memref<8x8xf32, #tpu.memory_space<vmem>>, %arg3: memref<128x256xbf16, #tpu.memory_space<vmem>>, %arg4: memref<128x128xbf16, #tpu.memory_space<vmem>>, %arg5: memref<1x128xf32, #tpu.memory_space<vmem>>, %arg6: memref<8x4xi32, #tpu.memory_space<vmem>>) attributes {dimension_semantics = [#tpu.dimension_semantics<parallel>], iteration_bounds = array<i64: 1>, scalar_prefetch = 0 : i64, scratch_operands = 0 : i64, tpu.core_type = #tpu.core_type<tc>, window_params = [{transform_indices = @transform_0, window_bounds = array<i64: 8, 8, 128>}, {transform_indices = @transform_1, window_bounds = array<i64: 8, 8>}, {pipeline_mode = #tpu.pipeline_mode<synchronous>, transform_indices = @transform_2, window_bounds = array<i64: 128, 256>}, {pipeline_mode = #tpu.pipeline_mode<synchronous>, transform_indices = @transform_3, window_bounds = array<i64: 128, 128>}, {pipeline_mode = #tpu.pipeline_mode<synchronous>, transform_indices = @transform_4, window_bounds = array<i64: 1, 128>}, {transform_indices = @transform_5, window_bounds = array<i64: 8, 4>}]} {
    %c0 = arith.constant 0 : index
    %c0_0 = arith.constant 0 : index
    %c0_1 = arith.constant 0 : index
    %0 = vector.load %arg1[%c0, %c0_0, %c0_1] : memref<8x8x128xbf16, #tpu.memory_space<vmem>>, vector<8x8x128xbf16>
    %c0_2 = arith.constant 0 : index
    %c0_3 = arith.constant 0 : index
    %1 = vector.load %arg2[%c0_2, %c0_3] : memref<8x8xf32, #tpu.memory_space<vmem>>, vector<8x8xf32>
    %c0_4 = arith.constant 0 : index
    %c0_5 = arith.constant 0 : index
    %2 = vector.load %arg3[%c0_4, %c0_5] : memref<128x256xbf16, #tpu.memory_space<vmem>>, vector<128x256xbf16>
    %c0_6 = arith.constant 0 : index
    %c0_7 = arith.constant 0 : index
    %3 = vector.load %arg4[%c0_6, %c0_7] : memref<128x128xbf16, #tpu.memory_space<vmem>>, vector<128x128xbf16>
    %c0_8 = arith.constant 0 : index
    %c0_9 = arith.constant 0 : index
    %4 = vector.load %arg5[%c0_8, %c0_9] : memref<1x128xf32, #tpu.memory_space<vmem>>, vector<1x128xf32>
    %5 = vector.shape_cast %0 : vector<8x8x128xbf16> to vector<64x128xbf16>
    %cst = arith.constant dense<0.000000e+00> : vector<64x256xf32>
    %6 = tpu.matmul %5, %2, %cst {dimension_numbers = #tpu.dot_dimension_numbers<[1], [0], [0], [1], [0, 0, 1, 1], [], []>} : vector<64x128xbf16>, vector<128x256xbf16>, vector<64x256xf32> -> vector<64x256xf32>
    %7 = vector.extract_strided_slice %6 {offsets = [0, 0], sizes = [64, 128], strides = [1, 1]} : vector<64x256xf32> to vector<64x128xf32>
    %8 = vector.shape_cast %7 : vector<64x128xf32> to vector<8x8x128xf32>
    %9 = vector.extract_strided_slice %6 {offsets = [0, 128], sizes = [64, 128], strides = [1, 1]} : vector<64x256xf32> to vector<64x128xf32>
    %10 = vector.shape_cast %9 : vector<64x128xf32> to vector<8x8x128xf32>
    %11 = tpu.iota {dimensions = array<i32: 1>} : vector<8x128xi32>
    %c1_i32 = arith.constant 1 : i32
    %12 = vector.broadcast %c1_i32 : i32 to vector<8x1xi32>
    %13 = vector.broadcast %12 : vector<8x1xi32> to vector<8x128xi32>
    %14 = arith.cmpi eq, %11, %13 : vector<8x128xi32>
    %15 = arith.extui %14 : vector<8x128xi1> to vector<8x128xi32>
    %16 = arith.sitofp %15 : vector<8x128xi32> to vector<8x128xf32>
    %17 = vector.shape_cast %16 : vector<8x128xf32> to vector<8x1x128xf32>
    %18 = vector.broadcast %17 : vector<8x1x128xf32> to vector<8x8x128xf32>
    %19 = arith.mulf %8, %18 : vector<8x8x128xf32>
    %cst_10 = arith.constant dense<0.000000e+00> : vector<8x8xf32>
    %20 = vector.multi_reduction <add>, %19, %cst_10 [2] : vector<8x8x128xf32> to vector<8x8xf32>
    %21 = arith.addf %20, %1 : vector<8x8xf32>
    %cst_11 = arith.constant dense<0xFF800000> : vector<8xf32>
    %22 = vector.multi_reduction <maximumf>, %21, %cst_11 [1] : vector<8x8xf32> to vector<8xf32>
    %23 = vector.shape_cast %22 : vector<8xf32> to vector<8x1xf32>
    %24 = vector.broadcast %23 : vector<8x1xf32> to vector<8x8xf32>
    %25 = arith.subf %21, %24 : vector<8x8xf32>
    %26 = math.exp %25 : vector<8x8xf32>
    %cst_12 = arith.constant dense<0.000000e+00> : vector<8xf32>
    %27 = vector.multi_reduction <add>, %26, %cst_12 [1] : vector<8x8xf32> to vector<8xf32>
    %28 = vector.shape_cast %27 : vector<8xf32> to vector<8x1xf32>
    %29 = tpu.reciprocal %28 {approx = true} : vector<8x1xf32> -> vector<8x1xf32>
    %30 = vector.broadcast %29 : vector<8x1xf32> to vector<8x8xf32>
    %31 = arith.mulf %26, %30 : vector<8x8xf32>
    %32 = vector.shape_cast %31 : vector<8x8xf32> to vector<8x8x1xf32>
    %33 = vector.broadcast %32 : vector<8x8x1xf32> to vector<8x8x128xf32>
    %34 = arith.mulf %33, %10 : vector<8x8x128xf32>
    %cst_13 = arith.constant dense<0.000000e+00> : vector<8x128xf32>
    %35 = vector.multi_reduction <add>, %34, %cst_13 [1] : vector<8x8x128xf32> to vector<8x128xf32>
    %36 = math.tanh %35 : vector<8x128xf32>
    %37 = arith.truncf %36 : vector<8x128xf32> to vector<8x128xbf16>
    %cst_14 = arith.constant dense<0.000000e+00> : vector<8x128xf32>
    %38 = tpu.matmul %37, %3, %cst_14 {dimension_numbers = #tpu.dot_dimension_numbers<[1], [0], [0], [1], [0, 0, 1, 1], [], []>} : vector<8x128xbf16>, vector<128x128xbf16>, vector<8x128xf32> -> vector<8x128xf32>
    %39 = vector.broadcast %4 : vector<1x128xf32> to vector<8x128xf32>
    %40 = arith.addf %38, %39 : vector<8x128xf32>
    %cst_15 = arith.constant dense<0xFF800000> : vector<8xf32>
    %41 = vector.multi_reduction <maximumf>, %40, %cst_15 [1] : vector<8x128xf32> to vector<8xf32>
    %42 = vector.shape_cast %41 : vector<8xf32> to vector<8x1xf32>
    %43 = vector.broadcast %42 : vector<8x1xf32> to vector<8x128xf32>
    %44 = arith.cmpf oeq, %40, %43 : vector<8x128xf32>
    %c128_i32 = arith.constant 128 : i32
    %45 = vector.broadcast %c128_i32 : i32 to vector<8x128xi32>
    %46 = arith.select %44, %11, %45 : vector<8x128xi1>, vector<8x128xi32>
    %cst_16 = arith.constant dense<2147483647> : vector<8xi32>
    %47 = vector.multi_reduction <minsi>, %46, %cst_16 [1] : vector<8x128xi32> to vector<8xi32>
    %48 = vector.shape_cast %47 : vector<8xi32> to vector<8x1xi32>
    %c127_i32 = arith.constant 127 : i32
    %49 = vector.broadcast %c127_i32 : i32 to vector<8x1xi32>
    %50 = arith.minsi %48, %49 : vector<8x1xi32>
    %51 = vector.broadcast %50 : vector<8x1xi32> to vector<8x128xi32>
    %52 = arith.cmpi eq, %11, %51 : vector<8x128xi32>
    %53 = arith.extui %52 : vector<8x128xi1> to vector<8x128xi32>
    %54 = arith.sitofp %53 : vector<8x128xi32> to vector<8x128xf32>
    %55 = vector.shape_cast %54 : vector<8x128xf32> to vector<8x1x128xf32>
    %56 = vector.broadcast %55 : vector<8x1x128xf32> to vector<8x8x128xf32>
    %57 = arith.mulf %8, %56 : vector<8x8x128xf32>
    %cst_17 = arith.constant dense<0.000000e+00> : vector<8x8xf32>
    %58 = vector.multi_reduction <add>, %57, %cst_17 [2] : vector<8x8x128xf32> to vector<8x8xf32>
    %59 = arith.addf %58, %1 : vector<8x8xf32>
    %cst_18 = arith.constant dense<0xFF800000> : vector<8xf32>
    %60 = vector.multi_reduction <maximumf>, %59, %cst_18 [1] : vector<8x8xf32> to vector<8xf32>
    %61 = vector.shape_cast %60 : vector<8xf32> to vector<8x1xf32>
    %62 = vector.broadcast %61 : vector<8x1xf32> to vector<8x8xf32>
    %63 = arith.subf %59, %62 : vector<8x8xf32>
    %64 = math.exp %63 : vector<8x8xf32>
    %cst_19 = arith.constant dense<0.000000e+00> : vector<8xf32>
    %65 = vector.multi_reduction <add>, %64, %cst_19 [1] : vector<8x8xf32> to vector<8xf32>
    %66 = vector.shape_cast %65 : vector<8xf32> to vector<8x1xf32>
    %67 = tpu.reciprocal %66 {approx = true} : vector<8x1xf32> -> vector<8x1xf32>
    %68 = vector.broadcast %67 : vector<8x1xf32> to vector<8x8xf32>
    %69 = arith.mulf %64, %68 : vector<8x8xf32>
    %70 = vector.shape_cast %69 : vector<8x8xf32> to vector<8x8x1xf32>
    %71 = vector.broadcast %70 : vector<8x8x1xf32> to vector<8x8x128xf32>
    %72 = arith.mulf %71, %10 : vector<8x8x128xf32>
    %cst_20 = arith.constant dense<0.000000e+00> : vector<8x128xf32>
    %73 = vector.multi_reduction <add>, %72, %cst_20 [1] : vector<8x8x128xf32> to vector<8x128xf32>
    %74 = math.tanh %73 : vector<8x128xf32>
    %75 = arith.truncf %74 : vector<8x128xf32> to vector<8x128xbf16>
    %cst_21 = arith.constant dense<0.000000e+00> : vector<8x128xf32>
    %76 = tpu.matmul %75, %3, %cst_21 {dimension_numbers = #tpu.dot_dimension_numbers<[1], [0], [0], [1], [0, 0, 1, 1], [], []>} : vector<8x128xbf16>, vector<128x128xbf16>, vector<8x128xf32> -> vector<8x128xf32>
    %77 = vector.broadcast %4 : vector<1x128xf32> to vector<8x128xf32>
    %78 = arith.addf %76, %77 : vector<8x128xf32>
    %cst_22 = arith.constant dense<0xFF800000> : vector<8xf32>
    %79 = vector.multi_reduction <maximumf>, %78, %cst_22 [1] : vector<8x128xf32> to vector<8xf32>
    %80 = vector.shape_cast %79 : vector<8xf32> to vector<8x1xf32>
    %81 = vector.broadcast %80 : vector<8x1xf32> to vector<8x128xf32>
    %82 = arith.cmpf oeq, %78, %81 : vector<8x128xf32>
    %c128_i32_23 = arith.constant 128 : i32
    %83 = vector.broadcast %c128_i32_23 : i32 to vector<8x128xi32>
    %84 = arith.select %82, %11, %83 : vector<8x128xi1>, vector<8x128xi32>
    %cst_24 = arith.constant dense<2147483647> : vector<8xi32>
    %85 = vector.multi_reduction <minsi>, %84, %cst_24 [1] : vector<8x128xi32> to vector<8xi32>
    %86 = vector.shape_cast %85 : vector<8xi32> to vector<8x1xi32>
    %c127_i32_25 = arith.constant 127 : i32
    %87 = vector.broadcast %c127_i32_25 : i32 to vector<8x1xi32>
    %88 = arith.minsi %86, %87 : vector<8x1xi32>
    %89 = vector.broadcast %88 : vector<8x1xi32> to vector<8x128xi32>
    %90 = arith.cmpi eq, %11, %89 : vector<8x128xi32>
    %91 = arith.extui %90 : vector<8x128xi1> to vector<8x128xi32>
    %92 = arith.sitofp %91 : vector<8x128xi32> to vector<8x128xf32>
    %93 = vector.shape_cast %92 : vector<8x128xf32> to vector<8x1x128xf32>
    %94 = vector.broadcast %93 : vector<8x1x128xf32> to vector<8x8x128xf32>
    %95 = arith.mulf %8, %94 : vector<8x8x128xf32>
    %cst_26 = arith.constant dense<0.000000e+00> : vector<8x8xf32>
    %96 = vector.multi_reduction <add>, %95, %cst_26 [2] : vector<8x8x128xf32> to vector<8x8xf32>
    %97 = arith.addf %96, %1 : vector<8x8xf32>
    %cst_27 = arith.constant dense<0xFF800000> : vector<8xf32>
    %98 = vector.multi_reduction <maximumf>, %97, %cst_27 [1] : vector<8x8xf32> to vector<8xf32>
    %99 = vector.shape_cast %98 : vector<8xf32> to vector<8x1xf32>
    %100 = vector.broadcast %99 : vector<8x1xf32> to vector<8x8xf32>
    %101 = arith.subf %97, %100 : vector<8x8xf32>
    %102 = math.exp %101 : vector<8x8xf32>
    %cst_28 = arith.constant dense<0.000000e+00> : vector<8xf32>
    %103 = vector.multi_reduction <add>, %102, %cst_28 [1] : vector<8x8xf32> to vector<8xf32>
    %104 = vector.shape_cast %103 : vector<8xf32> to vector<8x1xf32>
    %105 = tpu.reciprocal %104 {approx = true} : vector<8x1xf32> -> vector<8x1xf32>
    %106 = vector.broadcast %105 : vector<8x1xf32> to vector<8x8xf32>
    %107 = arith.mulf %102, %106 : vector<8x8xf32>
    %108 = vector.shape_cast %107 : vector<8x8xf32> to vector<8x8x1xf32>
    %109 = vector.broadcast %108 : vector<8x8x1xf32> to vector<8x8x128xf32>
    %110 = arith.mulf %109, %10 : vector<8x8x128xf32>
    %cst_29 = arith.constant dense<0.000000e+00> : vector<8x128xf32>
    %111 = vector.multi_reduction <add>, %110, %cst_29 [1] : vector<8x8x128xf32> to vector<8x128xf32>
    %112 = math.tanh %111 : vector<8x128xf32>
    %113 = arith.truncf %112 : vector<8x128xf32> to vector<8x128xbf16>
    %cst_30 = arith.constant dense<0.000000e+00> : vector<8x128xf32>
    %114 = tpu.matmul %113, %3, %cst_30 {dimension_numbers = #tpu.dot_dimension_numbers<[1], [0], [0], [1], [0, 0, 1, 1], [], []>} : vector<8x128xbf16>, vector<128x128xbf16>, vector<8x128xf32> -> vector<8x128xf32>
    %115 = vector.broadcast %4 : vector<1x128xf32> to vector<8x128xf32>
    %116 = arith.addf %114, %115 : vector<8x128xf32>
    %cst_31 = arith.constant dense<0xFF800000> : vector<8xf32>
    %117 = vector.multi_reduction <maximumf>, %116, %cst_31 [1] : vector<8x128xf32> to vector<8xf32>
    %118 = vector.shape_cast %117 : vector<8xf32> to vector<8x1xf32>
    %119 = vector.broadcast %118 : vector<8x1xf32> to vector<8x128xf32>
    %120 = arith.cmpf oeq, %116, %119 : vector<8x128xf32>
    %c128_i32_32 = arith.constant 128 : i32
    %121 = vector.broadcast %c128_i32_32 : i32 to vector<8x128xi32>
    %122 = arith.select %120, %11, %121 : vector<8x128xi1>, vector<8x128xi32>
    %cst_33 = arith.constant dense<2147483647> : vector<8xi32>
    %123 = vector.multi_reduction <minsi>, %122, %cst_33 [1] : vector<8x128xi32> to vector<8xi32>
    %124 = vector.shape_cast %123 : vector<8xi32> to vector<8x1xi32>
    %c127_i32_34 = arith.constant 127 : i32
    %125 = vector.broadcast %c127_i32_34 : i32 to vector<8x1xi32>
    %126 = arith.minsi %124, %125 : vector<8x1xi32>
    %127 = vector.broadcast %126 : vector<8x1xi32> to vector<8x128xi32>
    %128 = arith.cmpi eq, %11, %127 : vector<8x128xi32>
    %129 = arith.extui %128 : vector<8x128xi1> to vector<8x128xi32>
    %130 = arith.sitofp %129 : vector<8x128xi32> to vector<8x128xf32>
    %131 = vector.shape_cast %130 : vector<8x128xf32> to vector<8x1x128xf32>
    %132 = vector.broadcast %131 : vector<8x1x128xf32> to vector<8x8x128xf32>
    %133 = arith.mulf %8, %132 : vector<8x8x128xf32>
    %cst_35 = arith.constant dense<0.000000e+00> : vector<8x8xf32>
    %134 = vector.multi_reduction <add>, %133, %cst_35 [2] : vector<8x8x128xf32> to vector<8x8xf32>
    %135 = arith.addf %134, %1 : vector<8x8xf32>
    %cst_36 = arith.constant dense<0xFF800000> : vector<8xf32>
    %136 = vector.multi_reduction <maximumf>, %135, %cst_36 [1] : vector<8x8xf32> to vector<8xf32>
    %137 = vector.shape_cast %136 : vector<8xf32> to vector<8x1xf32>
    %138 = vector.broadcast %137 : vector<8x1xf32> to vector<8x8xf32>
    %139 = arith.subf %135, %138 : vector<8x8xf32>
    %140 = math.exp %139 : vector<8x8xf32>
    %cst_37 = arith.constant dense<0.000000e+00> : vector<8xf32>
    %141 = vector.multi_reduction <add>, %140, %cst_37 [1] : vector<8x8xf32> to vector<8xf32>
    %142 = vector.shape_cast %141 : vector<8xf32> to vector<8x1xf32>
    %143 = tpu.reciprocal %142 {approx = true} : vector<8x1xf32> -> vector<8x1xf32>
    %144 = vector.broadcast %143 : vector<8x1xf32> to vector<8x8xf32>
    %145 = arith.mulf %140, %144 : vector<8x8xf32>
    %146 = vector.shape_cast %145 : vector<8x8xf32> to vector<8x8x1xf32>
    %147 = vector.broadcast %146 : vector<8x8x1xf32> to vector<8x8x128xf32>
    %148 = arith.mulf %147, %10 : vector<8x8x128xf32>
    %cst_38 = arith.constant dense<0.000000e+00> : vector<8x128xf32>
    %149 = vector.multi_reduction <add>, %148, %cst_38 [1] : vector<8x8x128xf32> to vector<8x128xf32>
    %150 = math.tanh %149 : vector<8x128xf32>
    %151 = arith.truncf %150 : vector<8x128xf32> to vector<8x128xbf16>
    %cst_39 = arith.constant dense<0.000000e+00> : vector<8x128xf32>
    %152 = tpu.matmul %151, %3, %cst_39 {dimension_numbers = #tpu.dot_dimension_numbers<[1], [0], [0], [1], [0, 0, 1, 1], [], []>} : vector<8x128xbf16>, vector<128x128xbf16>, vector<8x128xf32> -> vector<8x128xf32>
    %153 = vector.broadcast %4 : vector<1x128xf32> to vector<8x128xf32>
    %154 = arith.addf %152, %153 : vector<8x128xf32>
    %cst_40 = arith.constant dense<0xFF800000> : vector<8xf32>
    %155 = vector.multi_reduction <maximumf>, %154, %cst_40 [1] : vector<8x128xf32> to vector<8xf32>
    %156 = vector.shape_cast %155 : vector<8xf32> to vector<8x1xf32>
    %157 = vector.broadcast %156 : vector<8x1xf32> to vector<8x128xf32>
    %158 = arith.cmpf oeq, %154, %157 : vector<8x128xf32>
    %c128_i32_41 = arith.constant 128 : i32
    %159 = vector.broadcast %c128_i32_41 : i32 to vector<8x128xi32>
    %160 = arith.select %158, %11, %159 : vector<8x128xi1>, vector<8x128xi32>
    %cst_42 = arith.constant dense<2147483647> : vector<8xi32>
    %161 = vector.multi_reduction <minsi>, %160, %cst_42 [1] : vector<8x128xi32> to vector<8xi32>
    %162 = vector.shape_cast %161 : vector<8xi32> to vector<8x1xi32>
    %c127_i32_43 = arith.constant 127 : i32
    %163 = vector.broadcast %c127_i32_43 : i32 to vector<8x1xi32>
    %164 = arith.minsi %162, %163 : vector<8x1xi32>
    %165 = tpu.concatenate %50, %88, %126, %164 in 1 : vector<8x1xi32>, vector<8x1xi32>, vector<8x1xi32>, vector<8x1xi32> -> vector<8x4xi32>
    %c0_44 = arith.constant 0 : index
    %c0_45 = arith.constant 0 : index
    %166 = vector.load %arg6[%c0_44, %c0_45] : memref<8x4xi32, #tpu.memory_space<vmem>>, vector<8x4xi32>
    tpu.vector_store %arg6[%c0_44, %c0_45], %165 {strides = array<i32>} : memref<8x4xi32, #tpu.memory_space<vmem>>, vector<8x4xi32>,
    return
  }
  func.func @transform_0(%arg0: i32) -> (i32, i32, i32) {
    %c0_i32 = arith.constant 0 : i32
    %c0_i32_0 = arith.constant 0 : i32
    %c0_i32_1 = arith.constant 0 : i32
    return %arg0, %c0_i32, %c0_i32_0 : i32, i32, i32
  }
  func.func @transform_1(%arg0: i32) -> (i32, i32) {
    %c0_i32 = arith.constant 0 : i32
    %c0_i32_0 = arith.constant 0 : i32
    return %arg0, %c0_i32 : i32, i32
  }
  func.func @transform_2(%arg0: i32) -> (i32, i32) {
    %c0_i32 = arith.constant 0 : i32
    %c0_i32_0 = arith.constant 0 : i32
    %c0_i32_1 = arith.constant 0 : i32
    return %c0_i32, %c0_i32_0 : i32, i32
  }
  func.func @transform_3(%arg0: i32) -> (i32, i32) {
    %c0_i32 = arith.constant 0 : i32
    %c0_i32_0 = arith.constant 0 : i32
    %c0_i32_1 = arith.constant 0 : i32
    return %c0_i32, %c0_i32_0 : i32, i32
  }
  func.func @transform_4(%arg0: i32) -> (i32, i32) {
    %c0_i32 = arith.constant 0 : i32
    %c0_i32_0 = arith.constant 0 : i32
    %c0_i32_1 = arith.constant 0 : i32
    return %c0_i32, %c0_i32_0 : i32, i32
  }
  func.func @transform_5(%arg0: i32) -> (i32, i32) {
    %c0_i32 = arith.constant 0 : i32
    %c0_i32_0 = arith.constant 0 : i32
    return %arg0, %c0_i32 : i32, i32
  }
}

</mosaic_0001>

<bundles_post_ra>
// kernel: tpu_custom_call.1
= control target key start
LH: loop header
LB: loop body
LE: loop exit
PB: predicated region body
PF: predicated region fallthrough
CT: control target
= control target key end

     0   :  { %10 = vsyncpa [#allocation3], 0  ;;  %s3971_s0 = inlined_call_operand.hbm [shape: bf16[8,8,128], index: 0, kind: input, shape index: {}]   ;;  %s3972_s1 = inlined_call_operand.hbm [shape: f32[8,8], index: 1, kind: input, shape index: {}]   ;;  %s3973_s2 = inlined_call_operand.hbm [shape: bf16[128,256], index: 2, kind: input, shape index: {}]   ;;  %s3974_s3 = inlined_call_operand.hbm [shape: bf16[128,128], index: 3, kind: input, shape index: {}]   ;;  %s3975_s4 = inlined_call_operand.vmem [shape: f32[1,128], index: 4, kind: input, shape index: {}]   ;;  %s3976_s5 = inlined_call_operand.vmem [shape: s32[8,4], index: 5, kind: output, shape index: {}]  }
   0x1   :  { %11 = vsyncpa [#allocation5], 0 }
   0x2   :  { %12 = vsyncpa [#allocation8], 0  ;;  %s3215_s18 = smov [#allocation4]   ;;  %s3216_s20 = smov [#allocation2]  }
   0x3   :  { %s31_s19 = sshll.u32 %s3215_s18, 4  ;;  %s18_s21 = sshll.u32 %s3216_s20, 4  ;;  %s32_s19 = int_to_ptr.vmem [resolvable:$true] %s31_s19  ;;  %s3257_s21 = int_to_ptr.vmem [resolvable:$true] %s18_s21 }
   0x4   :  { %s3121_s24 = scalar_lea.hbm %s3972_s1, 128 }
   0x5   :  { %p3122_p0 = scmp.ne.s32.totalorder %s3972_s1, %s3121_s24  ;;  %p3125_p1 = scmp.lt.u32.totalorder %s3121_s24, %s3972_s1 }
   0x7   :  { %p3127_p2 = pnand %p3125_p1, %p3122_p0 }
   0x9   :  { %3130 = shalt.err (!%p3127_p2)
}
   0xa   :  { %s3131_s29 = scalar_lea.vmem %s32_s19, 128  ;;  %p3136_p4 = scmp.lt.s32.totalorder %s32_s19, %s32_s19 }
   0xb   :  { %p3132_p3 = scmp.ne.s32.totalorder %s32_s19, %s3131_s29  ;;  %p3137_p5 = scmp.lt.s32.totalorder %s3131_s29, %s3131_s29 }
   0xd   :  { %p3138_p6 = por %p3137_p5, %p3136_p4 }
   0xf   :  { %p3139_p7 = pnand %p3138_p6, %p3132_p3 }
  0x11   :  { %3142 = shalt.err (!%p3139_p7)
}
  0x12   :  { %34 = dma.hbm_to_vmem [thread:$0]  %s3972_s1, 128, %s32_s19, [#allocation5]  }
  0x13   :  { %s3143_s9 = scalar_lea.hbm %s3971_s0, 512 }
  0x14   :  { %p3144_p8 = scmp.ne.s32.totalorder %s3971_s0, %s3143_s9  ;;  %p3147_p9 = scmp.lt.u32.totalorder %s3143_s9, %s3971_s0 }
  0x16   :  { %p3149_p10 = pnand %p3147_p9, %p3144_p8 }
  0x18   :  { %3152 = shalt.err (!%p3149_p10)
}
  0x19   :  { %s3153_s14 = scalar_lea.vmem %s3257_s21, 512  ;;  %p3158_p12 = scmp.lt.s32.totalorder %s3257_s21, %s3257_s21 }
  0x1a   :  { %p3154_p11 = scmp.ne.s32.totalorder %s3257_s21, %s3153_s14  ;;  %p3159_p13 = scmp.lt.s32.totalorder %s3153_s14, %s3153_s14 }
  0x1c   :  { %p3160_p0 = por %p3159_p13, %p3158_p12 }
  0x1e   :  { %p3161_p1 = pnand %p3160_p0, %p3154_p11 }
  0x20   :  { %3164 = shalt.err (!%p3161_p1)
}
  0x21   :  { %s3217_s1 = smov 64   ;;  %s3218_s15 = smov 4  }
  0x22   :  { %24 = dma.hbm_to_vmem [thread:$0]  %s3971_s0, 512, %s3257_s21, [#allocation3], %s3217_s1, %s3217_s1, %s3218_s15  }
  0x23   :  { %s3219_s18 = smov [#allocation6]   ;;  %s3165_s23 = scalar_lea.hbm %s3973_s2, 2048 }
  0x24   :  { %s40_s19 = sshll.u32 %s3219_s18, 4  ;;  %p3166_p2 = scmp.ne.s32.totalorder %s3973_s2, %s3165_s23  ;;  %s41_s19 = int_to_ptr.vmem [resolvable:$true] %s40_s19 }
  0x25   :  { %p3169_p3 = scmp.lt.u32.totalorder %s3165_s23, %s3973_s2 }
  0x27   :  { %p3171_p4 = pnand %p3169_p3, %p3166_p2 }
  0x29   :  { %3174 = shalt.err (!%p3171_p4)
}
  0x2a   :  { %s3175_s28 = scalar_lea.vmem %s41_s19, 2048  ;;  %p3180_p6 = scmp.lt.s32.totalorder %s41_s19, %s41_s19 }
  0x2b   :  { %p3176_p5 = scmp.ne.s32.totalorder %s41_s19, %s3175_s28  ;;  %p3181_p7 = scmp.lt.s32.totalorder %s3175_s28, %s3175_s28 }
  0x2d   :  { %p3182_p8 = por %p3181_p7, %p3180_p6 }
  0x2f   :  { %p3183_p9 = pnand %p3182_p8, %p3176_p5 }
  0x31   :  { %3186 = shalt.err (!%p3183_p9)
}
  0x32   :  { %s3220_s0 = smov 128   ;;  %s3221_s21 = smov 8  }
  0x33   :  { %46 = dma.hbm_to_vmem [thread:$0]  %s3973_s2, 2048, %s41_s19, [#allocation5], %s3220_s0, %s3220_s0, %s3221_s21  }
  0x34   :  { %s3222_s6 = smov [#allocation7]   ;;  %s3187_s10 = scalar_lea.hbm %s3974_s3, 1024 }
  0x35   :  { %s52_s7 = sshll.u32 %s3222_s6, 4  ;;  %p3188_p10 = scmp.ne.s32.totalorder %s3974_s3, %s3187_s10  ;;  %s53_s7 = int_to_ptr.vmem [resolvable:$true] %s52_s7 }
  0x36   :  { %p3191_p11 = scmp.lt.u32.totalorder %s3187_s10, %s3974_s3 }
  0x38   :  { %p3193_p12 = pnand %p3191_p11, %p3188_p10 }
  0x3a   :  { %3196 = shalt.err (!%p3193_p12)
}
  0x3b   :  { %s3197_s16 = scalar_lea.vmem %s53_s7, 1024  ;;  %p3202_p0 = scmp.lt.s32.totalorder %s53_s7, %s53_s7 }
  0x3c   :  { %p3198_p13 = scmp.ne.s32.totalorder %s53_s7, %s3197_s16  ;;  %p3203_p1 = scmp.lt.s32.totalorder %s3197_s16, %s3197_s16 }
  0x3e   :  { %p3204_p2 = por %p3203_p1, %p3202_p0 }
  0x40   :  { %p3205_p3 = pnand %p3204_p2, %p3198_p13 }
  0x42   :  { %3208 = shalt.err (!%p3205_p3)
}
  0x43   :  { %58 = dma.hbm_to_vmem [thread:$0]  %s3974_s3, 1024, %s53_s7, [#allocation8], %s3217_s1, %s3217_s1, %s3218_s15  }
  0x44   :  { %3209 = dma.done.wait [#allocation3], 512  }
  0x45   :  { %3210 = vsyncadd [#allocation3], 4294966784 }
  0x46   :  { %3211 = dma.done.wait [#allocation5], 2176  }
  0x47   :  { %3212 = vsyncadd [#allocation5], 4294965120 }
  0x48   :  { %3213 = dma.done.wait [#allocation8], 1024  }
  0x49   :  { %3214 = vsyncadd [#allocation8], 4294966272  ;;  %v3223_v0 = vmov 0   ;;  %v2948_v1 = vld [vmem:[#allocation6 + $0x4] ss:$8 sps:$4 sm:$0xff]   ;;  %v293_v4 = vlaneseq  ;;  %v3336_v18 = vld [vmem:[#allocation4] sm:$0xff] }
  0x4a   :  { %252 = vmatprep.mubr.bf16.mxu0 %v3223_v0  ;;  %2946 = vset.pattern.permute.xlu0 %v3223_v0  ;;  %v2950_v2 = vld [vmem:[#allocation6] ss:$8 sps:$4 sm:$0xff]   ;;  %v2951_v3 = vld [vmem:[#allocation6 + $0x14] ss:$8 sps:$4 sm:$0xff]   ;;  %v2953_v5 = vld [vmem:[#allocation6 + $0x10] ss:$8 sps:$4 sm:$0xff]  }
  0x4b   :  { %2947 = vset.pattern.permute.xlu1 %v3223_v0  ;;  %220 = vmatprep.subr.bf16.mxu0 %v2948_v1  ;;  %v2954_v6 = vld [vmem:[#allocation6 + $0x24] ss:$8 sps:$4 sm:$0xff]   ;;  %v3322_v7 = vshrl.u32 %v293_v4, 7  ;;  %v2956_v8 = vld [vmem:[#allocation6 + $0x20] ss:$8 sps:$4 sm:$0xff]   ;;  %v2972_v32 = vld [vmem:[#allocation2] sm:$0xff]  }
  0x4c   :  { %221 = vmatpush1.bf16.msra.mxu0 %v2950_v2  ;;  %v2957_v9 = vld [vmem:[#allocation6 + $0x34] ss:$8 sps:$4 sm:$0xff]   ;;  %v2959_v14 = vld [vmem:[#allocation6 + $0x30] ss:$8 sps:$4 sm:$0xff]   ;;  %v2960_v15 = vld [vmem:[#allocation6 + $0x44] ss:$8 sps:$4 sm:$0xff]  }
  0x4d   :  { %222 = vmatprep.subr.bf16.mxu0 %v2951_v3  ;;  %v3325_v10 = vsub.s32 0, %v3322_v7  ;;  %v3328_v11 = vsub.s32 1, %v3322_v7  ;;  %v3331_v12 = vsub.s32 2, %v3322_v7  ;;  %v3334_v13 = vsub.s32 4, %v3322_v7  ;;  %v2962_v16 = vld [vmem:[#allocation6 + $0x40] ss:$8 sps:$4 sm:$0xff]  }
  0x4e   :  { %v2963_v17 = vld [vmem:[#allocation6 + $0x54] ss:$8 sps:$4 sm:$0xff]   ;;  %v3339_v19 = vsub.s32 3, %v3322_v7  ;;  %v2965_v22 = vld [vmem:[#allocation6 + $0x50] ss:$8 sps:$4 sm:$0xff]   ;;  %v3352_v27 = vsub.s32 5, %v3322_v7 }
  0x4f   :  { %v423_v20 = vrot.slane %v3336_v18, %v3328_v11  ;;  %v416_v21 = vrot.slane %v3336_v18, %v3325_v10  ;;  %v430_v23 = vrot.slane %v3336_v18, %v3331_v12  ;;  %v444_v24 = vrot.slane %v3336_v18, %v3334_v13  ;;  %v2966_v25 = vld [vmem:[#allocation6 + $0x64] ss:$8 sps:$4 sm:$0xff]   ;;  %v2968_v28 = vld [vmem:[#allocation6 + $0x60] ss:$8 sps:$4 sm:$0xff]   ;;  %v2969_v29 = vld [vmem:[#allocation6 + $0x74] ss:$8 sps:$4 sm:$0xff]  }
  0x50   :  { %223 = vmatpush1.bf16.msra.mxu0 %v2953_v5  ;;  %v437_v26 = vrot.slane %v3336_v18, %v3339_v19  ;;  %v451_v30 = vrot.slane %v3336_v18, %v3352_v27  ;;  %v2971_v31 = vld [vmem:[#allocation6 + $0x70] ss:$8 sps:$4 sm:$0xff]   ;;  %v2973_v33 = vld [vmem:[#allocation2 + $0x8] sm:$0xff]   ;;  %v2974_v34 = vld [vmem:[#allocation2 + $0x10] sm:$0xff]   ;;  %v3977_v36 = vmov 0.0   ;;  %v3362_v39 = vand.u32 127, %v293_v4 }
  0x51   :  { %224 = vmatprep.subr.bf16.mxu0 %v2954_v6  ;;  %425 = vbcast.lane.b32.xlu1 %v423_v20, 256  ;;  %v2975_v35 = vld [vmem:[#allocation2 + $0x18] sm:$0xff]   ;;  %v3225_v37 = vmov 1966171168   ;;  %vm549_vm1 = vcmask 1041409   ;;  %vm551_vm2 = vcmask 1042434  }
  0x52   :  { %418 = vbcast.lane.b32.xlu0 %v416_v21, 256  ;;  %2854 = vmatprep.subr.bf16.mxu1 %v3977_v36  ;;  %v301_v38 = vunpack.c.l.s4 %v3225_v37  ;;  %vm295_vm0 = vcmp.eq.s32.totalorder %v3362_v39, 1  ;;  %vm553_vm3 = vcmask 1043459   ;;  %vm555_vm4 = vcmask 1044484  }
  0x53   :  { %v2805_v42 = vsel %vm295_vm0, 1.0, %v3977_v36  ;;  %vm557_vm5 = vcmask 1045509   ;;  %vm559_vm6 = vcmask 1046534   ;;  %vm561_vm7 = vcmask 1047559  }
  0x54   :  { %225 = vmatpush1.bf16.msra.mxu0 %v2956_v8  ;;  %v302_v40 = vunpack.c.0.s8 %v301_v38  ;;  %v299_v48 = vcombine.high %v2805_v42, %v2805_v42  ;;  %vm564_vm8 = vcmask 64512   ;;  %vm3226_vm9 = vmmov 0  }
  0x55   :  { %226 = vmatprep.subr.bf16.mxu0 %v2957_v9  ;;  %432 = vbcast.lane.b32.xlu1 %v430_v23, 256 }
  0x56   :  { %446 = vbcast.lane.b32.xlu0 %v444_v24, 256  ;;  %v3366_v41 = vsub.s32 %v302_v40, %v3322_v7  ;;  %2870 = vmatprep.mubr.msk.bf16.mxu1 %vm3226_vm9, %v3977_v36 }
  0x58   :  { %227 = vmatpush1.bf16.msra.mxu0 %v2959_v14  ;;  %v306_v43 = vrot.slane %v2805_v42, %v3366_v41  ;;  %v313_v56 = vrot.slane %v299_v48, %v3366_v41 }
  0x59   :  { %228 = vmatprep.subr.bf16.mxu0 %v2960_v15  ;;  %439 = vbcast.lane.b32.xlu1 %v437_v26, 256 }
  0x5a   :  { %v322_v44 = vrot.slane %v306_v43, %v3366_v41  ;;  %v314_v45 = vcombine.high %v306_v43, %v306_v43  ;;  %v315_v60 = vcombine.high %v313_v56, %v313_v56  ;;  %v329_v1 = vrot.slane %v313_v56, %v3366_v41 }
  0x5c   :  { %229 = vmatpush1.bf16.msra.mxu0 %v2962_v16  ;;  %v351_v46 = vrot.slane %v322_v44, %v3325_v10  ;;  %v336_v47 = vrot.slane %v314_v45, %v3366_v41  ;;  %v344_v53 = vcombine.high %v322_v44, %v322_v44  ;;  %v343_v4 = vrot.slane %v315_v60, %v3366_v41 }
  0x5d   :  { %230 = vmatprep.subr.bf16.mxu0 %v2963_v17  ;;  %453 = vbcast.lane.b32.xlu1 %v451_v30, 256  ;;  %v367_v6 = vrot.slane %v329_v1, %v3325_v10  ;;  %v345_v16 = vcombine.high %v329_v1, %v329_v1 }
  0x5e   :  { %v355_v52 = vrot.slane %v336_v47, %v3325_v10  ;;  %v359_v58 = vrot.slane %v344_v53, %v3325_v10  ;;  %v346_v59 = vcombine.high %v336_v47, %v336_v47  ;;  %v371_v8 = vrot.slane %v343_v4, %v3325_v10 }
  0x5f   :  { %v375_v23 = vrot.slane %v345_v16, %v3325_v10  ;;  %v3480_v16 = vsub.s32 %v3362_v39, %v3322_v7 }
  0x60   :  { %231 = vmatpush1.bf16.msra.mxu0 %v2965_v22  ;;  %v347_v22 = vcombine.high %v343_v4, %v343_v4 }
  0x61   :  { %232 = vmatprep.subr.bf16.mxu0 %v2966_v25 }
  0x62   :  { %v379_v24 = vrot.slane %v347_v22, %v3325_v10 }
  0x64   :  { %233 = vmatpush1.bf16.msra.mxu0 %v2968_v28 }
  0x65   :  { %234 = vmatprep.subr.bf16.mxu0 %v2969_v29 }
  0x68   :  { %235 = vmatpush1.bf16.msra.mxu0 %v2971_v31 }
  0x69   :  { %2874 = vmatprep.subr.bf16.mxu0 %v3977_v36 }
  0x6b   :  { %253 = vmatmul.mubr.bf16.vlgmr.msra.gmra.mrb[0].mxu0 %v2972_v32  ;;  %v3424_v32 = vsub.s32 7, %v3322_v7 }
  0x6c   :  { %262 = vmatprep.mubr.bf16.mxu0 %v3223_v0 }
  0x73   :  { %263 = vmatmul.mubr.bf16.gmra.mrb[4].mxu0 %v2973_v33  ;;  %v3427_v33 = vsub.s32 6, %v3322_v7 }
  0x74   :  { %272 = vmatprep.mubr.bf16.mxu0 %v3223_v0 }
  0x7b   :  { %273 = vmatmul.mubr.bf16.gmra.mrb[8].mxu0 %v2974_v34  ;;  %v465_v34 = vrot.slane %v3336_v18, %v3424_v32 }
  0x7c   :  { %282 = vmatprep.mubr.bf16.mxu0 %v3223_v0  ;;  %v363_v0 = vrot.slane %v346_v59, %v3325_v10 }
  0x83   :  { %283 = vmatmul.mubr.bf16.gmra.mrb[12].mxu0 %v2975_v35  ;;  %v458_v35 = vrot.slane %v3336_v18, %v3427_v33 }
  0x84   :  { %2890 = vmatprep.mubr.msk.bf16.mxu0 %vm3226_vm9, %v3977_v36 }
  0xc3   :  { %v3433_v37 = vpop.permute.xlu1 %425 }
  0xc4   :  { %v3435_v38 = vpop.permute.xlu0 %418 }
  0xc7   :  { %v3437_v40 = vpop.permute.xlu1 %432 }
  0xc8   :  { %v3439_v42 = vpop.permute.xlu0 %446 }
  0xcb   :  { %v3441_v43 = vpop.permute.xlu1 %439 }
 0x13e   :  { %v3373_v49 = vpop.f32.mrb[0].mxu0 }
 0x13f   :  { %v3375_v50 = vpop.f32.mrb[1].mxu0  ;;  %v388_v51 = vmul.f32 %v351_v46, %v3373_v49  ;;  %v3447_v46 = vpop.permute.xlu1 %453 }
 0x140   :  { %3994 = vst [vmem:[#allocation12_spill] sm:$0xff] %v3375_v50  ;;  %v3379_v54 = vpop.f32.mrb[2].mxu0  ;;  %3998 = vst [vmem:[#allocation16_spill] sm:$0xff] %v3447_v46 }
 0x141   :  { %396 = vadd.xlane.f32.xlu0 %v388_v51  ;;  %v3381_v55 = vpop.f32.mrb[3].mxu0  ;;  %v389_v57 = vmul.f32 %v355_v52, %v3379_v54 }
 0x142   :  { %3995 = vst [vmem:[#allocation13_spill] sm:$0xff] %v3381_v55 }
 0x145   :  { %398 = vadd.xlane.f32.xlu0 %v389_v57 }
 0x146   :  { %v3386_v61 = vpop.f32.mrb[4].mxu0 }
 0x147   :  { %v3388_v62 = vpop.f32.mrb[5].mxu0  ;;  %v390_v63 = vmul.f32 %v359_v58, %v3386_v61 }
 0x148   :  { %3996 = vst [vmem:[#allocation14_spill] sm:$0xff] %v3388_v62  ;;  %v3393_v2 = vpop.f32.mrb[6].mxu0 }
 0x149   :  { %400 = vadd.xlane.f32.xlu1 %v390_v63  ;;  %v3395_v3 = vpop.f32.mrb[7].mxu0  ;;  %v391_v5 = vmul.f32 %v363_v0, %v3393_v2 }
 0x14d   :  { %402 = vadd.xlane.f32.xlu1 %v391_v5 }
 0x14e   :  { %v3401_v9 = vpop.f32.mrb[8].mxu0 }
 0x14f   :  { %v3403_v14 = vpop.f32.mrb[9].mxu0  ;;  %v392_v15 = vmul.f32 %v367_v6, %v3401_v9 }
 0x150   :  { %3997 = vst [vmem:[#allocation15_spill] sm:$0xff] %v3403_v14  ;;  %v3406_v17 = vpop.f32.mrb[10].mxu0 }
 0x151   :  { %404 = vadd.xlane.f32.xlu0 %v392_v15  ;;  %v3408_v20 = vpop.f32.mrb[11].mxu0  ;;  %v393_v21 = vmul.f32 %v371_v8, %v3406_v17 }
 0x153   :  { %406 = vadd.xlane.f32.xlu1 %v393_v21 }
 0x156   :  { %v3413_v25 = vpop.f32.mrb[12].mxu0 }
 0x157   :  { %v3415_v26 = vpop.f32.mrb[13].mxu0  ;;  %v394_v28 = vmul.f32 %v375_v23, %v3413_v25 }
 0x158   :  { %v3418_v29 = vpop.f32.mrb[14].mxu0 }
 0x159   :  { %408 = vadd.xlane.f32.xlu0 %v394_v28  ;;  %v3420_v30 = vpop.f32.mrb[15].mxu0  ;;  %v395_v31 = vmul.f32 %v379_v24, %v3418_v29 }
 0x15b   :  { %410 = vadd.xlane.f32.xlu1 %v395_v31 }
 0x16c   :  { %467 = vbcast.lane.b32.xlu1 %v465_v34, 256 }
 0x16f   :  { %460 = vbcast.lane.b32.xlu0 %v458_v35, 256 }
 0x1ce   :  { %v397_v44 = vpop.xlane.xlu0 %396 }
 0x1cf   :  { %v3444_v45 = vadd.f32 %v3435_v38, %v397_v44 }
 0x1d1   :  { %494 = vperm.xlu0 %2946, %v3444_v45  }
 0x1d2   :  { %v399_v18 = vpop.xlane.xlu0 %398 }
 0x1d3   :  { %v478_v47 = vadd.f32 %v3433_v37, %v399_v18 }
 0x1d5   :  { %497 = vperm.xlu1 %2947, %v478_v47  }
 0x1d6   :  { %v401_v48 = vpop.xlane.xlu1 %400 }
 0x1d7   :  { %v3451_v51 = vadd.f32 %v3437_v40, %v401_v48 }
 0x1d9   :  { %500 = vperm.xlu1 %2947, %v3451_v51  }
 0x1da   :  { %v403_v52 = vpop.xlane.xlu1 %402 }
 0x1db   :  { %v3455_v53 = vadd.f32 %v3441_v43, %v403_v52 }
 0x1dd   :  { %503 = vperm.xlu0 %2946, %v3455_v53  }
 0x1de   :  { %v405_v56 = vpop.xlane.xlu0 %404 }
 0x1df   :  { %v3459_v57 = vadd.f32 %v3439_v42, %v405_v56 }
 0x1e0   :  { %v407_v58 = vpop.xlane.xlu1 %406 }
 0x1e1   :  { %v3462_v59 = vadd.f32 %v3447_v46, %v407_v58  ;;  %506 = vperm.xlu1 %2947, %v3459_v57  }
 0x1e3   :  { %509 = vperm.xlu0 %2946, %v3462_v59  }
 0x1e6   :  { %v409_v60 = vpop.xlane.xlu0 %408 }
 0x1e8   :  { %v411_v63 = vpop.xlane.xlu1 %410 }
 0x1ea   :  { %v3466_v0 = vpop.permute.xlu0 %460 }
 0x1eb   :  { %3999 = vst [vmem:[#allocation17_spill] sm:$0xff] %v3466_v0  ;;  %v3469_v1 = vadd.f32 %v3466_v0, %v409_v60 }
 0x1ec   :  { %v3471_v4 = vpop.permute.xlu1 %467 }
 0x1ed   :  { %4000 = vst [vmem:[#allocation18_spill] sm:$0xff] %v3471_v4  ;;  %512 = vperm.xlu1 %2947, %v3469_v1   ;;  %v3475_v5 = vadd.f32 %v3471_v4, %v411_v63 }
 0x1ef   :  { %515 = vperm.xlu0 %2946, %v3475_v5  }
 0x250   :  { %v495_v8 = vpop.permute.xlu0 %494 }
 0x251   :  { %v520_v28 = vrot.slane %v495_v8, %v3480_v16 }
 0x254   :  { %v498_v6 = vpop.permute.xlu1 %497 }
 0x255   :  { %v524_v22 = vrot.slane %v498_v6, %v3480_v16 }
 0x257   :  { %v550_v44 = vsel %vm549_vm1, %v524_v22, %v520_v28 }
 0x258   :  { %v501_v15 = vpop.permute.xlu1 %500 }
 0x259   :  { %v528_v24 = vrot.slane %v501_v15, %v3480_v16 }
 0x25b   :  { %v552_v7 = vsel %vm551_vm2, %v528_v24, %v550_v44 }
 0x25c   :  { %v504_v21 = vpop.permute.xlu0 %503 }
 0x25d   :  { %v532_v31 = vrot.slane %v504_v21, %v3480_v16 }
 0x25f   :  { %v554_v18 = vsel %vm553_vm3, %v532_v31, %v552_v7 }
 0x260   :  { %v507_v23 = vpop.permute.xlu1 %506 }
 0x261   :  { %v536_v34 = vrot.slane %v507_v23, %v3480_v16 }
 0x262   :  { %v510_v35 = vpop.permute.xlu0 %509 }
 0x263   :  { %v540_v48 = vrot.slane %v510_v35, %v3480_v16  ;;  %v556_v52 = vsel %vm555_vm4, %v536_v34, %v554_v18 }
 0x265   :  { %v558_v63 = vsel %vm557_vm5, %v540_v48, %v556_v52 }
 0x26c   :  { %v513_v56 = vpop.permute.xlu1 %512 }
 0x26d   :  { %v544_v58 = vrot.slane %v513_v56, %v3480_v16 }
 0x26e   :  { %v516_v60 = vpop.permute.xlu0 %515 }
 0x26f   :  { %v548_v6 = vrot.slane %v516_v60, %v3480_v16  ;;  %v560_v8 = vsel %vm559_vm6, %v544_v58, %v558_v63 }
 0x271   :  { %v562_v15 = vsel %vm561_vm7, %v548_v6, %v560_v8 }
 0x272   :  { %v565_v21 = vsel %vm564_vm8, %v562_v15, -inf }
 0x273   :  { %566 = vmax.xlane.f32.xlu1 %v565_v21 }
 0x300   :  { %v567_v22 = vpop.xlane.xlu1 %566 }
 0x301   :  { %v572_v23 = vrot.slane %v567_v22, %v3325_v10  ;;  %v576_v24 = vrot.slane %v567_v22, %v3328_v11  ;;  %v580_v28 = vrot.slane %v567_v22, %v3331_v12  ;;  %v584_v44 = vrot.slane %v567_v22, %v3339_v19 }
 0x302   :  { %v588_v48 = vrot.slane %v567_v22, %v3334_v13  ;;  %v592_v58 = vrot.slane %v567_v22, %v3352_v27  ;;  %v596_v63 = vrot.slane %v567_v22, %v3427_v33  ;;  %v600_v15 = vrot.slane %v567_v22, %v3424_v32 }
 0x303   :  { %v609_v31 = vsub.f32 %v3444_v45, %v572_v23  ;;  %v610_v34 = vsub.f32 %v478_v47, %v576_v24  ;;  %v611_v18 = vsub.f32 %v3451_v51, %v580_v28  ;;  %v612_v56 = vsub.f32 %v3455_v53, %v584_v44 }
 0x304   :  { %v613_v45 = vsub.f32 %v3459_v57, %v588_v48  ;;  %v614_v51 = vsub.f32 %v3462_v59, %v592_v58  ;;  %v615_v21 = vsub.f32 %v3469_v1, %v596_v63  ;;  %v616_v24 = vsub.f32 %v3475_v5, %v600_v15 }
 0x305   :  { %v617_v35 = vmul.f32 1.442695, %v609_v31  ;;  %v619_v7 = vmul.f32 1.442695, %v610_v34  ;;  %v621_v52 = vmul.f32 1.442695, %v611_v18 }
 0x306   :  { %v623_v60 = vmul.f32 1.442695, %v612_v56  ;;  %v625_v6 = vmul.f32 1.442695, %v613_v45  ;;  %v627_v53 = vmul.f32 1.442695, %v614_v51 }
 0x307   :  { %2984 = vpow2.f32 %v617_v35  ;;  %v629_v57 = vmul.f32 1.442695, %v615_v21  ;;  %v631_v31 = vmul.f32 1.442695, %v616_v24 }
 0x308   :  { %2986 = vpow2.f32 %v619_v7 }
 0x309   :  { %2988 = vpow2.f32 %v621_v52 }
 0x30a   :  { %2990 = vpow2.f32 %v623_v60 }
 0x30b   :  { %2992 = vpow2.f32 %v625_v6 }
 0x30c   :  { %2994 = vpow2.f32 %v627_v53 }
 0x30d   :  { %2996 = vpow2.f32 %v629_v57 }
 0x30e   :  { %2998 = vpow2.f32 %v631_v31 }
 0x311   :  { %v2985_v47 = vpop.eup %2984 }
 0x312   :  { %642 = vperm.xlu0 %2946, %v2985_v47   ;;  %v2987_v8 = vpop.eup %2986 }
 0x313   :  { %v2989_v23 = vpop.eup %2988 }
 0x314   :  { %v2991_v28 = vpop.eup %2990 }
 0x315   :  { %v2993_v34 = vpop.eup %2992 }
 0x316   :  { %645 = vperm.xlu0 %2946, %v2987_v8   ;;  %v2995_v59 = vpop.eup %2994 }
 0x317   :  { %v2997_v22 = vpop.eup %2996 }
 0x318   :  { %v2999_v35 = vpop.eup %2998 }
 0x31a   :  { %648 = vperm.xlu0 %2946, %v2989_v23  }
 0x31e   :  { %651 = vperm.xlu0 %2946, %v2991_v28  }
 0x322   :  { %654 = vperm.xlu0 %2946, %v2993_v34  }
 0x326   :  { %657 = vperm.xlu0 %2946, %v2995_v59  }
 0x32a   :  { %660 = vperm.xlu0 %2946, %v2997_v22  }
 0x32e   :  { %663 = vperm.xlu0 %2946, %v2999_v35  }
 0x391   :  { %v643_v1 = vpop.permute.xlu0 %642 }
 0x392   :  { %v668_v58 = vrot.slane %v643_v1, %v3480_v16 }
 0x395   :  { %v646_v44 = vpop.permute.xlu0 %645 }
 0x396   :  { %v672_v5 = vrot.slane %v646_v44, %v3480_v16 }
 0x398   :  { %v697_v6 = vsel %vm549_vm1, %v672_v5, %v668_v58 }
 0x399   :  { %v649_v7 = vpop.permute.xlu0 %648 }
 0x39a   :  { %v676_v56 = vrot.slane %v649_v7, %v3480_v16 }
 0x39c   :  { %v698_v15 = vsel %vm551_vm2, %v676_v56, %v697_v6 }
 0x39d   :  { %v652_v18 = vpop.permute.xlu0 %651 }
 0x39e   :  { %v680_v60 = vrot.slane %v652_v18, %v3480_v16 }
 0x3a0   :  { %v699_v21 = vsel %vm553_vm3, %v680_v60, %v698_v15 }
 0x3a1   :  { %v655_v48 = vpop.permute.xlu0 %654 }
 0x3a2   :  { %v684_v45 = vrot.slane %v655_v48, %v3480_v16 }
 0x3a4   :  { %v700_v57 = vsel %vm555_vm4, %v684_v45, %v699_v21 }
 0x3a5   :  { %v658_v52 = vpop.permute.xlu0 %657 }
 0x3a6   :  { %v688_v51 = vrot.slane %v658_v52, %v3480_v16 }
 0x3a8   :  { %v701_v1 = vsel %vm557_vm5, %v688_v51, %v700_v57 }
 0x3a9   :  { %v661_v63 = vpop.permute.xlu0 %660 }
 0x3aa   :  { %v692_v53 = vrot.slane %v661_v63, %v3480_v16 }
 0x3ac   :  { %v702_v44 = vsel %vm559_vm6, %v692_v53, %v701_v1  ;;  %v3574_v1 = vld [vmem:[#allocation7 + $0x30] sm:$0xff]  }
 0x3ad   :  { %v664_v24 = vpop.permute.xlu0 %663 }
 0x3ae   :  { %v696_v31 = vrot.slane %v664_v24, %v3480_v16 }
 0x3b0   :  { %v703_v7 = vsel %vm561_vm7, %v696_v31, %v702_v44  ;;  %v3537_v31 = vld [vmem:[#allocation7] sm:$0xff]   ;;  %v3580_v44 = vld [vmem:[#allocation7 + $0x38] sm:$0xff]  }
 0x3b1   :  { %v705_v18 = vsel %vm564_vm8, %v703_v7, 0.0  ;;  %2855 = vmatpush3.bf16.msra.mxu1 %v3537_v31  ;;  %2875 = vmatpush3.bf16.msra.mxu0 %v3537_v31 }
 0x3b2   :  { %706 = vadd.xlane.f32.xlu0 %v705_v18  ;;  %2856 = vmatprep.subr.bf16.mxu1 %v3977_v36 }
 0x3b3   :  { %2876 = vmatprep.subr.bf16.mxu0 %v3977_v36 }
 0x43f   :  { %v707_v48 = vpop.xlane.xlu0 %706 }
 0x440   :  { %3000 = vrcp.f32 %v707_v48 }
 0x44a   :  { %v3001_v52 = vpop.eup %3000 }
 0x44b   :  { %v729_v5 = vrot.slane %v3001_v52, %v3334_v13  ;;  %v713_v56 = vrot.slane %v3001_v52, %v3325_v10  ;;  %v717_v45 = vrot.slane %v3001_v52, %v3328_v11  ;;  %v721_v6 = vrot.slane %v3001_v52, %v3331_v12 }
 0x44c   :  { %v725_v15 = vrot.slane %v3001_v52, %v3339_v19  ;;  %v733_v21 = vrot.slane %v3001_v52, %v3352_v27  ;;  %v741_v24 = vrot.slane %v3001_v52, %v3424_v32 }
 0x44d   :  { %v754_v58 = vmul.f32 %v2993_v34, %v729_v5  ;;  %v750_v60 = vmul.f32 %v2985_v47, %v713_v56  ;;  %v751_v63 = vmul.f32 %v2987_v8, %v717_v45  ;;  %v752_v51 = vmul.f32 %v2989_v23, %v721_v6  ;;  %v3543_v23 = vld [vmem:[#allocation7 + $0x8] sm:$0xff]  }
 0x44e   :  { %v753_v53 = vmul.f32 %v2991_v28, %v725_v15  ;;  %v755_v57 = vmul.f32 %v2995_v59, %v733_v21  ;;  %v737_v34 = vrot.slane %v3001_v52, %v3427_v33  ;;  %v757_v8 = vmul.f32 %v2999_v35, %v741_v24  ;;  %2857 = vmatpush3.bf16.msra.mxu1 %v3543_v23  ;;  %v3549_v28 = vld [vmem:[#allocation7 + $0x10] sm:$0xff]   ;;  %v3555_v59 = vld [vmem:[#allocation7 + $0x18] sm:$0xff]   ;;  %v3568_v35 = vld [vmem:[#allocation7 + $0x28] sm:$0xff]  }
 0x44f   :  { %780 = vperm.xlu0 %2946, %v754_v58   ;;  %760 = vperm.xlu1 %2947, %v750_v60  }
 0x450   :  { %v756_v47 = vmul.f32 %v2997_v22, %v737_v34  ;;  %2877 = vmatpush3.bf16.msra.mxu0 %v3543_v23  ;;  %2858 = vmatprep.subr.bf16.mxu1 %v3977_v36  ;;  %v3560_v22 = vld [vmem:[#allocation7 + $0x20] sm:$0xff]  }
 0x451   :  { %2878 = vmatprep.subr.bf16.mxu0 %v3977_v36 }
 0x452   :  { %2859 = vmatpush3.bf16.msra.mxu1 %v3549_v28 }
 0x453   :  { %765 = vperm.xlu1 %2947, %v751_v63   ;;  %2860 = vmatprep.subr.bf16.mxu1 %v3977_v36 }
 0x454   :  { %2879 = vmatpush3.bf16.msra.mxu0 %v3549_v28 }
 0x455   :  { %2880 = vmatprep.subr.bf16.mxu0 %v3977_v36 }
 0x456   :  { %2861 = vmatpush3.bf16.msra.mxu1 %v3555_v59 }
 0x457   :  { %770 = vperm.xlu1 %2947, %v752_v51   ;;  %2862 = vmatprep.subr.bf16.mxu1 %v3977_v36 }
 0x458   :  { %2881 = vmatpush3.bf16.msra.mxu0 %v3555_v59 }
 0x459   :  { %2882 = vmatprep.subr.bf16.mxu0 %v3977_v36 }
 0x45a   :  { %2863 = vmatpush3.bf16.msra.mxu1 %v3560_v22 }
 0x45b   :  { %775 = vperm.xlu1 %2947, %v753_v53   ;;  %2864 = vmatprep.subr.bf16.mxu1 %v3977_v36 }
 0x45c   :  { %2883 = vmatpush3.bf16.msra.mxu0 %v3560_v22 }
 0x45d   :  { %2884 = vmatprep.subr.bf16.mxu0 %v3977_v36 }
 0x45e   :  { %2865 = vmatpush3.bf16.msra.mxu1 %v3568_v35 }
 0x45f   :  { %785 = vperm.xlu1 %2947, %v755_v57   ;;  %2866 = vmatprep.subr.bf16.mxu1 %v3977_v36 }
 0x460   :  { %2885 = vmatpush3.bf16.msra.mxu0 %v3568_v35 }
 0x461   :  { %2886 = vmatprep.subr.bf16.mxu0 %v3977_v36 }
 0x462   :  { %2867 = vmatpush3.bf16.msra.mxu1 %v3574_v1 }
 0x463   :  { %790 = vperm.xlu1 %2947, %v756_v47   ;;  %2868 = vmatprep.subr.bf16.mxu1 %v3977_v36 }
 0x464   :  { %2887 = vmatpush3.bf16.msra.mxu0 %v3574_v1 }
 0x465   :  { %2888 = vmatprep.subr.bf16.mxu0 %v3977_v36 }
 0x466   :  { %2869 = vmatpush3.bf16.msra.mxu1 %v3580_v44 }
 0x467   :  { %795 = vperm.xlu1 %2947, %v757_v8   ;;  %2894 = vmatprep.subr.bf16.mxu1 %v3977_v36 }
 0x468   :  { %2889 = vmatpush3.bf16.msra.mxu0 %v3580_v44 }
 0x469   :  { %2914 = vmatprep.subr.bf16.mxu0 %v3977_v36 }
 0x4ce   :  { %v781_v7 = vpop.permute.xlu0 %780  ;;  %v761_v18 = vpop.permute.xlu1 %760 }
 0x4cf   :  { %v802_v48 = vmul.f32 %v781_v7, %v3403_v14  ;;  %v798_v52 = vmul.f32 %v761_v18, %v3375_v50 }
 0x4d1   :  { %v830_v5 = vrot.slane %v802_v48, 4  ;;  %v806_v56 = vrot.slane %v798_v52, 4 }
 0x4d2   :  { %v766_v58 = vpop.permute.xlu1 %765 }
 0x4d3   :  { %v831_v60 = vadd.f32 %v830_v5, %v802_v48  ;;  %v807_v45 = vadd.f32 %v806_v56, %v798_v52  ;;  %v799_v63 = vmul.f32 %v766_v58, %v3381_v55 }
 0x4d5   :  { %v808_v6 = vrot.slane %v807_v45, 2  ;;  %v812_v51 = vrot.slane %v799_v63, 4  ;;  %v832_v53 = vrot.slane %v831_v60, 2 }
 0x4d6   :  { %v771_v15 = vpop.permute.xlu1 %770 }
 0x4d7   :  { %v809_v21 = vadd.f32 %v808_v6, %v807_v45  ;;  %v813_v57 = vadd.f32 %v812_v51, %v799_v63  ;;  %v800_v34 = vmul.f32 %v771_v15, %v3388_v62  ;;  %v833_v18 = vadd.f32 %v832_v53, %v831_v60 }
 0x4d9   :  { %v810_v47 = vrot.slane %v809_v21, 1  ;;  %v814_v24 = vrot.slane %v813_v57, 2  ;;  %v818_v8 = vrot.slane %v800_v34, 4  ;;  %v834_v55 = vrot.slane %v833_v18, 1 }
 0x4da   :  { %v776_v7 = vpop.permute.xlu1 %775 }
 0x4db   :  { %v811_v36 = vadd.f32 %v810_v47, %v809_v21  ;;  %v815_v50 = vadd.f32 %v814_v24, %v813_v57  ;;  %v819_v14 = vadd.f32 %v818_v8, %v800_v34  ;;  %v801_v48 = vmul.f32 %v776_v7, %v3395_v3 }
 0x4dc   :  { %v835_v21 = vadd.f32 %v834_v55, %v833_v18 }
 0x4dd   :  { %v816_v52 = vrot.slane %v815_v50, 1  ;;  %v820_v5 = vrot.slane %v819_v14, 2  ;;  %3002 = vtanh.f32 %v811_v36  ;;  %v824_v56 = vrot.slane %v801_v48, 4 }
 0x4de   :  { %v786_v58 = vpop.permute.xlu1 %785 }
 0x4df   :  { %v817_v45 = vadd.f32 %v816_v52, %v815_v50  ;;  %v821_v63 = vadd.f32 %v820_v5, %v819_v14  ;;  %v803_v6 = vmul.f32 %v786_v58, %v3408_v20  ;;  %v825_v51 = vadd.f32 %v824_v56, %v801_v48 }
 0x4e1   :  { %3004 = vtanh.f32 %v817_v45  ;;  %v822_v15 = vrot.slane %v821_v63, 1  ;;  %v836_v62 = vrot.slane %v803_v6, 4  ;;  %v826_v60 = vrot.slane %v825_v51, 2 }
 0x4e2   :  { %v791_v53 = vpop.permute.xlu1 %790 }
 0x4e3   :  { %v823_v57 = vadd.f32 %v822_v15, %v821_v63  ;;  %v837_v34 = vadd.f32 %v836_v62, %v803_v6  ;;  %v804_v47 = vmul.f32 %v791_v53, %v3415_v26  ;;  %v827_v24 = vadd.f32 %v826_v60, %v825_v51 }
 0x4e5   :  { %3006 = vtanh.f32 %v823_v57  ;;  %v838_v36 = vrot.slane %v837_v34, 2  ;;  %v842_v8 = vrot.slane %v804_v47, 4  ;;  %v828_v7 = vrot.slane %v827_v24, 1 }
 0x4e6   :  { %v796_v50 = vpop.permute.xlu1 %795  ;;  %3008 = vtanh.f32 %v835_v21 }
 0x4e7   :  { %v839_v14 = vadd.f32 %v838_v36, %v837_v34  ;;  %v843_v52 = vadd.f32 %v842_v8, %v804_v47  ;;  %v805_v48 = vmul.f32 %v796_v50, %v3420_v30  ;;  %v3003_v5 = vpop.eup %3002  ;;  %v829_v56 = vadd.f32 %v828_v7, %v827_v24 }
 0x4e8   :  { %v862_v18 = vpack.c.bf16 %v3003_v5, %v3003_v5 }
 0x4e9   :  { %v840_v58 = vrot.slane %v839_v14, 1  ;;  %v844_v45 = vrot.slane %v843_v52, 2  ;;  %v848_v55 = vrot.slane %v805_v48, 4  ;;  %3010 = vtanh.f32 %v829_v56 }
 0x4ea   :  { %v884_v21 = vunpack.c.l.b16 %v862_v18 }
 0x4eb   :  { %v3005_v62 = vpop.eup %3004  ;;  %v841_v63 = vadd.f32 %v840_v58, %v839_v14  ;;  %v845_v6 = vadd.f32 %v844_v45, %v843_v52  ;;  %v849_v51 = vadd.f32 %v848_v55, %v805_v48 }
 0x4ec   :  { %v863_v15 = vpack.c.bf16 %v3005_v62, %v3005_v62 }
 0x4ed   :  { %3012 = vtanh.f32 %v841_v63  ;;  %v846_v60 = vrot.slane %v845_v6, 1  ;;  %v850_v53 = vrot.slane %v849_v51, 2 }
 0x4ee   :  { %v885_v57 = vunpack.c.l.b16 %v863_v15 }
 0x4ef   :  { %v3007_v34 = vpop.eup %3006  ;;  %v847_v47 = vadd.f32 %v846_v60, %v845_v6  ;;  %v851_v36 = vadd.f32 %v850_v53, %v849_v51 }
 0x4f0   :  { %v892_v24 = vsel %vm549_vm1, %v885_v57, %v884_v21  ;;  %v864_v8 = vpack.c.bf16 %v3007_v34, %v3007_v34  ;;  %v3009_v7 = vpop.eup %3008 }
 0x4f1   :  { %3014 = vtanh.f32 %v847_v47  ;;  %v852_v50 = vrot.slane %v851_v36, 1  ;;  %v866_v52 = vpack.c.bf16 %v3009_v7, %v3009_v7  ;;  %v4001_v7 = vmov 0.0  }
 0x4f2   :  { %v886_v5 = vunpack.c.l.b16 %v864_v8 }
 0x4f3   :  { %v853_v56 = vadd.f32 %v852_v50, %v851_v36  ;;  %v3011_v14 = vpop.eup %3010  ;;  %v888_v18 = vunpack.c.l.b16 %v866_v52  ;;  %v3624_v50 = vld [vmem:[%s3975_s4] ss:$0 sm:$0xff] }
 0x4f4   :  { %v893_v48 = vsel %vm551_vm2, %v886_v5, %v892_v24  ;;  %v865_v58 = vpack.c.bf16 %v3011_v14, %v3011_v14 }
 0x4f5   :  { %3016 = vtanh.f32 %v853_v56 }
 0x4f6   :  { %v887_v55 = vunpack.c.l.b16 %v865_v58 }
 0x4f7   :  { %v3013_v45 = vpop.eup %3012 }
 0x4f8   :  { %v867_v62 = vpack.c.bf16 %v3013_v45, %v3013_v45  ;;  %v894_v63 = vsel %vm553_vm3, %v887_v55, %v893_v48 }
 0x4f9   :  { %v895_v51 = vsel %vm555_vm4, %v888_v18, %v894_v63 }
 0x4fa   :  { %v889_v6 = vunpack.c.l.b16 %v867_v62 }
 0x4fb   :  { %v3015_v15 = vpop.eup %3014 }
 0x4fc   :  { %v868_v60 = vpack.c.bf16 %v3015_v15, %v3015_v15  ;;  %v896_v53 = vsel %vm557_vm5, %v889_v6, %v895_v51 }
 0x4fe   :  { %v890_v21 = vunpack.c.l.b16 %v868_v60 }
 0x4ff   :  { %v3017_v57 = vpop.eup %3016 }
 0x500   :  { %v869_v34 = vpack.c.bf16 %v3017_v57, %v3017_v57  ;;  %v897_v47 = vsel %vm559_vm6, %v890_v21, %v896_v53 }
 0x502   :  { %v891_v36 = vunpack.c.l.b16 %v869_v34 }
 0x504   :  { %v898_v24 = vsel %vm561_vm7, %v891_v36, %v897_v47 }
 0x505   :  { %v899_v8 = vpack.c.b16 %v898_v24, %v898_v24 }
 0x507   :  { %2871 = vmatmul.mubr.bf16.vlgmr.msra.gmra.mrb[0].mxu1 %v899_v8 }
 0x508   :  { %2895 = vmatpush3.bf16.msra.mxu1 %v3537_v31  ;;  %2910 = vmatprep.mubr.msk.bf16.mxu1 %vm3226_vm9, %v4001_v7 }
 0x509   :  { %2896 = vmatprep.subr.bf16.mxu1 %v4001_v7 }
 0x50c   :  { %2897 = vmatpush3.bf16.msra.mxu1 %v3543_v23 }
 0x50d   :  { %2898 = vmatprep.subr.bf16.mxu1 %v4001_v7 }
 0x510   :  { %2899 = vmatpush3.bf16.msra.mxu1 %v3549_v28 }
 0x511   :  { %2900 = vmatprep.subr.bf16.mxu1 %v4001_v7 }
 0x514   :  { %2901 = vmatpush3.bf16.msra.mxu1 %v3555_v59 }
 0x515   :  { %2902 = vmatprep.subr.bf16.mxu1 %v4001_v7 }
 0x518   :  { %2903 = vmatpush3.bf16.msra.mxu1 %v3560_v22 }
 0x519   :  { %2904 = vmatprep.subr.bf16.mxu1 %v4001_v7 }
 0x51c   :  { %2905 = vmatpush3.bf16.msra.mxu1 %v3568_v35 }
 0x51d   :  { %2906 = vmatprep.subr.bf16.mxu1 %v4001_v7 }
 0x520   :  { %2907 = vmatpush3.bf16.msra.mxu1 %v3574_v1 }
 0x521   :  { %2908 = vmatprep.subr.bf16.mxu1 %v4001_v7 }
 0x524   :  { %2909 = vmatpush3.bf16.msra.mxu1 %v3580_v44 }
 0x5da   :  { %v983_v5 = vpop.f32.mrb[0].mxu1 }
 0x5db   :  { %v984_v56 = vadd.f32 %v3624_v50, %v983_v5  ;;  %v2872_v14 = vpop.f32.mrb[1].mxu1 }
 0x5dc   :  { %v986_v52 = vpop.f32.mrb[2].mxu1 }
 0x5dd   :  { %989 = vmax.xlane.f32.xlu1 %v984_v56  ;;  %v2873_v48 = vpop.f32.mrb[3].mxu1 }
 0x66a   :  { %v990_v58 = vpop.xlane.xlu1 %989 }
 0x66b   :  { %vm991_vm10 = vcmp.eq.f32.partialorder %v984_v56, %v990_v58 }
 0x66c   :  { %v992_v45 = vsel %vm991_vm10, %v3362_v39, 128 }
 0x66d   :  { %v994_v55 = vshra.s32 %v992_v45, 16  ;;  %v993_v62 = vand.u32 65535, %v992_v45 }
 0x66f   :  { %v996_v18 = vcvt.s32.f32 %v994_v55  ;;  %v995_v6 = vcvt.s32.f32 %v993_v62 }
 0x671   :  { %997 = vmin.xlane.f32.xlu0 %v996_v18 }
 0x6fe   :  { %v998_v63 = vpop.xlane.xlu0 %997 }
 0x6ff   :  { %vm999_vm11 = vcmp.eq.f32.partialorder %v996_v18, %v998_v63  ;;  %v1004_v15 = vcvt.f32.s32 %v998_v63 }
 0x700   :  { %v1000_v51 = vsel %vm999_vm11, %v995_v6, inf }
 0x701   :  { %1001 = vmin.xlane.f32.xlu1 %v1000_v51  ;;  %v1005_v53 = vshll.u32 %v1004_v15, 16 }
 0x78e   :  { %v1002_v60 = vpop.xlane.xlu1 %1001 }
 0x78f   :  { %v1003_v21 = vcvt.f32.s32 %v1002_v60 }
 0x791   :  { %v1006_v57 = vadd.s32 %v1005_v53, %v1003_v21 }
 0x793   :  { %vm1007_vm12 = vcmp.lt.s32.totalorder %v1006_v57, 127 }
 0x794   :  { %v3628_v34 = vsel %vm1007_vm12, %v1006_v57, 127  ;;  %vm2770_vm12 = vcmask 7168  }
 0x795   :  { %4002 = vst [vmem:[#allocation19_spill] sm:$0xff] %v3628_v34  ;;  %vm1009_vm13 = vcmp.eq.s32.totalorder %v3362_v39, %v3628_v34 }
 0x796   :  { %v2815_v47 = vsel %vm1009_vm13, 1.0, %v4001_v7  ;;  %vm2772_vm13 = vcmask 15360  }
 0x797   :  { %v1013_v36 = vcombine.high %v2815_v47, %v2815_v47  ;;  %v1020_v24 = vrot.slane %v2815_v47, %v3366_v41 }
 0x799   :  { %v1036_v8 = vrot.slane %v1020_v24, %v3366_v41  ;;  %v1028_v5 = vcombine.high %v1020_v24, %v1020_v24  ;;  %v1027_v56 = vrot.slane %v1013_v36, %v3366_v41 }
 0x79b   :  { %v1065_v14 = vrot.slane %v1036_v8, %v3325_v10  ;;  %v1050_v52 = vrot.slane %v1028_v5, %v3366_v41  ;;  %v1058_v48 = vcombine.high %v1036_v8, %v1036_v8  ;;  %v1043_v58 = vrot.slane %v1027_v56, %v3366_v41 }
 0x79c   :  { %v1029_v45 = vcombine.high %v1027_v56, %v1027_v56 }
 0x79d   :  { %v1102_v55 = vmul.f32 %v1065_v14, %v3373_v49  ;;  %v1069_v18 = vrot.slane %v1050_v52, %v3325_v10  ;;  %v1073_v62 = vrot.slane %v1058_v48, %v3325_v10  ;;  %v1060_v63 = vcombine.high %v1050_v52, %v1050_v52 }
 0x79e   :  { %v1057_v15 = vrot.slane %v1029_v45, %v3366_v41  ;;  %v1081_v53 = vrot.slane %v1043_v58, %v3325_v10  ;;  %v1059_v21 = vcombine.high %v1043_v58, %v1043_v58 }
 0x79f   :  { %1110 = vadd.xlane.f32.xlu0 %v1102_v55  ;;  %v1103_v6 = vmul.f32 %v1069_v18, %v3379_v54  ;;  %v1077_v51 = vrot.slane %v1060_v63, %v3325_v10  ;;  %v1104_v60 = vmul.f32 %v1073_v62, %v3386_v61 }
 0x7a0   :  { %v1085_v47 = vrot.slane %v1057_v15, %v3325_v10  ;;  %v1061_v36 = vcombine.high %v1057_v15, %v1057_v15  ;;  %v1106_v24 = vmul.f32 %v1081_v53, %v3401_v9  ;;  %v1089_v8 = vrot.slane %v1059_v21, %v3325_v10 }
 0x7a1   :  { %1112 = vadd.xlane.f32.xlu1 %v1103_v6  ;;  %v1105_v57 = vmul.f32 %v1077_v51, %v3393_v2 }
 0x7a2   :  { %v1107_v5 = vmul.f32 %v1085_v47, %v3406_v17  ;;  %v1093_v56 = vrot.slane %v1061_v36, %v3325_v10  ;;  %v1108_v14 = vmul.f32 %v1089_v8, %v3413_v25 }
 0x7a3   :  { %1114 = vadd.xlane.f32.xlu0 %v1104_v60 }
 0x7a4   :  { %v1109_v52 = vmul.f32 %v1093_v56, %v3418_v29 }
 0x7a5   :  { %1116 = vadd.xlane.f32.xlu1 %v1105_v57 }
 0x7a7   :  { %1118 = vadd.xlane.f32.xlu0 %v1106_v24 }
 0x7a9   :  { %1120 = vadd.xlane.f32.xlu1 %v1107_v5 }
 0x7ab   :  { %1122 = vadd.xlane.f32.xlu0 %v1108_v14 }
 0x7ad   :  { %1124 = vadd.xlane.f32.xlu1 %v1109_v52 }
 0x82c   :  { %v1111_v48 = vpop.xlane.xlu0 %1110 }
 0x82d   :  { %v1126_v58 = vadd.f32 %v1111_v48, %v3435_v38 }
 0x82e   :  { %v1113_v45 = vpop.xlane.xlu1 %1112 }
 0x82f   :  { %v1127_v55 = vadd.f32 %v1113_v45, %v3433_v37  ;;  %1143 = vperm.xlu0 %2946, %v1126_v58  }
 0x830   :  { %v1115_v18 = vpop.xlane.xlu0 %1114 }
 0x831   :  { %1146 = vperm.xlu1 %2947, %v1127_v55   ;;  %v1128_v63 = vadd.f32 %v1115_v18, %v3437_v40 }
 0x832   :  { %v1117_v62 = vpop.xlane.xlu1 %1116 }
 0x833   :  { %v1129_v60 = vadd.f32 %v1117_v62, %v3441_v43 }
 0x834   :  { %v1119_v6 = vpop.xlane.xlu0 %1118 }
 0x835   :  { %v1130_v51 = vadd.f32 %v1119_v6, %v3439_v42  ;;  %1149 = vperm.xlu1 %2947, %v1128_v63  }
 0x836   :  { %v1121_v15 = vpop.xlane.xlu1 %1120 }
 0x837   :  { %1155 = vperm.xlu0 %2946, %v1130_v51   ;;  %v1131_v57 = vadd.f32 %v1121_v15, %v3447_v46 }
 0x838   :  { %v1123_v53 = vpop.xlane.xlu0 %1122 }
 0x839   :  { %v3661_v21 = vadd.f32 %v1123_v53, %v3466_v0  ;;  %1152 = vperm.xlu1 %2947, %v1129_v60  }
 0x83a   :  { %v1125_v47 = vpop.xlane.xlu1 %1124 }
 0x83b   :  { %1161 = vperm.xlu0 %2946, %v3661_v21   ;;  %v1133_v36 = vadd.f32 %v1125_v47, %v3471_v4 }
 0x83d   :  { %1158 = vperm.xlu1 %2947, %v1131_v57  }
 0x841   :  { %1164 = vperm.xlu1 %2947, %v1133_v36  }
 0x8ae   :  { %v1144_v8 = vpop.permute.xlu0 %1143 }
 0x8af   :  { %v1169_v52 = vrot.slane %v1144_v8, %v3480_v16 }
 0x8b0   :  { %v1147_v24 = vpop.permute.xlu1 %1146 }
 0x8b1   :  { %v1173_v56 = vrot.slane %v1147_v24, %v3480_v16 }
 0x8b3   :  { %v1198_v18 = vsel %vm549_vm1, %v1173_v56, %v1169_v52 }
 0x8b4   :  { %v1150_v5 = vpop.permute.xlu1 %1149 }
 0x8b5   :  { %v1177_v14 = vrot.slane %v1150_v5, %v3480_v16 }
 0x8b6   :  { %v1156_v48 = vpop.permute.xlu0 %1155 }
 0x8b7   :  { %v1199_v6 = vsel %vm551_vm2, %v1177_v14, %v1198_v18  ;;  %v1185_v53 = vrot.slane %v1156_v48, %v3480_v16 }
 0x8b8   :  { %v1153_v45 = vpop.permute.xlu1 %1152 }
 0x8b9   :  { %v1181_v62 = vrot.slane %v1153_v45, %v3480_v16 }
 0x8ba   :  { %v1162_v34 = vpop.permute.xlu0 %1161 }
 0x8bb   :  { %v1200_v15 = vsel %vm553_vm3, %v1181_v62, %v1199_v6  ;;  %v1193_v4 = vrot.slane %v1162_v34, %v3480_v16 }
 0x8bc   :  { %v1159_v47 = vpop.permute.xlu1 %1158  ;;  %v1201_v5 = vsel %vm555_vm4, %v1185_v53, %v1200_v15 }
 0x8bd   :  { %v1189_v24 = vrot.slane %v1159_v47, %v3480_v16 }
 0x8bf   :  { %v1202_v8 = vsel %vm557_vm5, %v1189_v24, %v1201_v5 }
 0x8c0   :  { %v1165_v0 = vpop.permute.xlu1 %1164  ;;  %v1203_v52 = vsel %vm559_vm6, %v1193_v4, %v1202_v8 }
 0x8c1   :  { %v1197_v56 = vrot.slane %v1165_v0, %v3480_v16 }
 0x8c3   :  { %v1204_v14 = vsel %vm561_vm7, %v1197_v56, %v1203_v52 }
 0x8c4   :  { %v1206_v45 = vsel %vm564_vm8, %v1204_v14, -inf }
 0x8c5   :  { %1207 = vmax.xlane.f32.xlu0 %v1206_v45 }
 0x952   :  { %v1208_v48 = vpop.xlane.xlu0 %1207 }
 0x953   :  { %v1213_v18 = vrot.slane %v1208_v48, %v3325_v10  ;;  %v1217_v62 = vrot.slane %v1208_v48, %v3328_v11  ;;  %v1241_v6 = vrot.slane %v1208_v48, %v3424_v32  ;;  %v1221_v15 = vrot.slane %v1208_v48, %v3331_v12 }
 0x954   :  { %v1225_v4 = vrot.slane %v1208_v48, %v3339_v19  ;;  %v1229_v56 = vrot.slane %v1208_v48, %v3334_v13  ;;  %v1233_v45 = vrot.slane %v1208_v48, %v3352_v27 }
 0x955   :  { %v1250_v34 = vsub.f32 %v1126_v58, %v1213_v18  ;;  %v1251_v53 = vsub.f32 %v1127_v55, %v1217_v62  ;;  %v1257_v0 = vsub.f32 %v1133_v36, %v1241_v6  ;;  %v1252_v24 = vsub.f32 %v1128_v63, %v1221_v15 }
 0x956   :  { %v1253_v52 = vsub.f32 %v1129_v60, %v1225_v4  ;;  %v1254_v46 = vsub.f32 %v1130_v51, %v1229_v56  ;;  %v1237_v36 = vrot.slane %v1208_v48, %v3427_v33  ;;  %v1255_v18 = vsub.f32 %v1131_v57, %v1233_v45 }
 0x957   :  { %v1258_v47 = vmul.f32 1.442695, %v1250_v34  ;;  %v1260_v5 = vmul.f32 1.442695, %v1251_v53  ;;  %v1272_v8 = vmul.f32 1.442695, %v1257_v0 }
 0x958   :  { %v1262_v14 = vmul.f32 1.442695, %v1252_v24  ;;  %v1264_v58 = vmul.f32 1.442695, %v1253_v52  ;;  %v1266_v63 = vmul.f32 1.442695, %v1254_v46  ;;  %v1256_v6 = vsub.f32 %v3661_v21, %v1237_v36 }
 0x959   :  { %3018 = vpow2.f32 %v1258_v47  ;;  %v1268_v60 = vmul.f32 1.442695, %v1255_v18 }
 0x95a   :  { %3020 = vpow2.f32 %v1260_v5  ;;  %v1270_v51 = vmul.f32 1.442695, %v1256_v6 }
 0x95b   :  { %3022 = vpow2.f32 %v1272_v8 }
 0x95c   :  { %3024 = vpow2.f32 %v1262_v14 }
 0x95d   :  { %3026 = vpow2.f32 %v1264_v58 }
 0x95e   :  { %3028 = vpow2.f32 %v1266_v63 }
 0x95f   :  { %3030 = vpow2.f32 %v1268_v60 }
 0x960   :  { %3032 = vpow2.f32 %v1270_v51 }
 0x963   :  { %v3019_v55 = vpop.eup %3018 }
 0x964   :  { %1283 = vperm.xlu1 %2947, %v3019_v55   ;;  %v3021_v62 = vpop.eup %3020 }
 0x965   :  { %v3691_v15 = vpop.eup %3022 }
 0x966   :  { %v3025_v34 = vpop.eup %3024  ;;  %1304 = vperm.xlu0 %2946, %v3691_v15  }
 0x967   :  { %v3027_v53 = vpop.eup %3026 }
 0x968   :  { %1286 = vperm.xlu1 %2947, %v3021_v62   ;;  %v3029_v57 = vpop.eup %3028 }
 0x969   :  { %v3031_v46 = vpop.eup %3030 }
 0x96a   :  { %v3033_v48 = vpop.eup %3032 }
 0x96c   :  { %1289 = vperm.xlu1 %2947, %v3025_v34  }
 0x970   :  { %1292 = vperm.xlu1 %2947, %v3027_v53  }
 0x974   :  { %1295 = vperm.xlu1 %2947, %v3029_v57  }
 0x978   :  { %1298 = vperm.xlu1 %2947, %v3031_v46  }
 0x97c   :  { %1301 = vperm.xlu1 %2947, %v3033_v48  }
 0x9e3   :  { %v1284_v21 = vpop.permute.xlu1 %1283 }
 0x9e4   :  { %v1309_v56 = vrot.slane %v1284_v21, %v3480_v16 }
 0x9e5   :  { %v1305_v18 = vpop.permute.xlu0 %1304 }
 0x9e6   :  { %v1337_v21 = vrot.slane %v1305_v18, %v3480_v16 }
 0x9e7   :  { %v1287_v47 = vpop.permute.xlu1 %1286 }
 0x9e8   :  { %v1313_v5 = vrot.slane %v1287_v47, %v3480_v16 }
 0x9ea   :  { %v1338_v58 = vsel %vm549_vm1, %v1313_v5, %v1309_v56 }
 0x9eb   :  { %v1290_v0 = vpop.permute.xlu1 %1289 }
 0x9ec   :  { %v1317_v8 = vrot.slane %v1290_v0, %v3480_v16 }
 0x9ee   :  { %v1339_v63 = vsel %vm551_vm2, %v1317_v8, %v1338_v58 }
 0x9ef   :  { %v1293_v4 = vpop.permute.xlu1 %1292 }
 0x9f0   :  { %v1321_v52 = vrot.slane %v1293_v4, %v3480_v16 }
 0x9f2   :  { %v1340_v6 = vsel %vm553_vm3, %v1321_v52, %v1339_v63 }
 0x9f3   :  { %v1296_v24 = vpop.permute.xlu1 %1295 }
 0x9f4   :  { %v1325_v45 = vrot.slane %v1296_v24, %v3480_v16 }
 0x9f6   :  { %v1341_v51 = vsel %vm555_vm4, %v1325_v45, %v1340_v6 }
 0x9f7   :  { %v1299_v14 = vpop.permute.xlu1 %1298 }
 0x9f8   :  { %v1329_v36 = vrot.slane %v1299_v14, %v3480_v16 }
 0x9fa   :  { %v1342_v0 = vsel %vm557_vm5, %v1329_v36, %v1341_v51 }
 0x9fb   :  { %v1302_v60 = vpop.permute.xlu1 %1301 }
 0x9fc   :  { %v1333_v47 = vrot.slane %v1302_v60, %v3480_v16 }
 0x9fe   :  { %v1343_v4 = vsel %vm559_vm6, %v1333_v47, %v1342_v0 }
 0x9ff   :  { %v1344_v24 = vsel %vm561_vm7, %v1337_v21, %v1343_v4 }
 0xa00   :  { %v1346_v5 = vsel %vm564_vm8, %v1344_v24, 0.0  ;;  %v4003_v24 = vld [vmem:[#allocation15_spill] sm:$0xff] }
 0xa01   :  { %1347 = vadd.xlane.f32.xlu1 %v1346_v5 }
 0xa8e   :  { %v1348_v56 = vpop.xlane.xlu1 %1347 }
 0xa8f   :  { %3034 = vrcp.f32 %v1348_v56  ;;  %v4004_v56 = vld [vmem:[#allocation12_spill] sm:$0xff] }
 0xa99   :  { %v3035_v8 = vpop.eup %3034 }
 0xa9a   :  { %v1370_v52 = vrot.slane %v3035_v8, %v3334_v13  ;;  %v1354_v14 = vrot.slane %v3035_v8, %v3325_v10  ;;  %v1358_v18 = vrot.slane %v3035_v8, %v3328_v11  ;;  %v1362_v63 = vrot.slane %v3035_v8, %v3331_v12 }
 0xa9b   :  { %v1366_v60 = vrot.slane %v3035_v8, %v3339_v19  ;;  %v1374_v47 = vrot.slane %v3035_v8, %v3352_v27  ;;  %v1382_v0 = vrot.slane %v3035_v8, %v3424_v32 }
 0xa9c   :  { %v1395_v45 = vmul.f32 %v3029_v57, %v1370_v52  ;;  %v1391_v58 = vmul.f32 %v3019_v55, %v1354_v14  ;;  %v1392_v36 = vmul.f32 %v3021_v62, %v1358_v18  ;;  %v1393_v6 = vmul.f32 %v3025_v34, %v1362_v63  ;;  %v4005_v18 = vld [vmem:[#allocation13_spill] sm:$0xff] }
 0xa9d   :  { %v1394_v51 = vmul.f32 %v3027_v53, %v1366_v60  ;;  %v1396_v21 = vmul.f32 %v3031_v46, %v1374_v47  ;;  %v1378_v57 = vrot.slane %v3035_v8, %v3427_v33  ;;  %v1398_v62 = vmul.f32 %v3691_v15, %v1382_v0 }
 0xa9e   :  { %1421 = vperm.xlu1 %2947, %v1395_v45   ;;  %1401 = vperm.xlu0 %2946, %v1391_v58  }
 0xa9f   :  { %v1397_v55 = vmul.f32 %v3033_v48, %v1378_v57 }
 0xaa2   :  { %1406 = vperm.xlu0 %2946, %v1392_v36  }
 0xaa6   :  { %1411 = vperm.xlu0 %2946, %v1393_v6  }
 0xaaa   :  { %1416 = vperm.xlu0 %2946, %v1394_v51   ;;  %v4006_v51 = vld [vmem:[#allocation14_spill] sm:$0xff] }
 0xaae   :  { %1426 = vperm.xlu0 %2946, %v1396_v21  }
 0xab2   :  { %1431 = vperm.xlu0 %2946, %v1397_v55  }
 0xab6   :  { %1436 = vperm.xlu0 %2946, %v1398_v62  }
 0xb1d   :  { %v1422_v4 = vpop.permute.xlu1 %1421  ;;  %v1402_v34 = vpop.permute.xlu0 %1401 }
 0xb1e   :  { %v1443_v5 = vmul.f32 %v1422_v4, %v4003_v24  ;;  %v1439_v53 = vmul.f32 %v1402_v34, %v4004_v56 }
 0xb20   :  { %v1471_v52 = vrot.slane %v1443_v5, 4  ;;  %v1447_v14 = vrot.slane %v1439_v53, 4 }
 0xb21   :  { %v1407_v45 = vpop.permute.xlu0 %1406 }
 0xb22   :  { %v1472_v46 = vadd.f32 %v1471_v52, %v1443_v5  ;;  %v1448_v58 = vadd.f32 %v1447_v14, %v1439_v53  ;;  %v1440_v36 = vmul.f32 %v1407_v45, %v4005_v18 }
 0xb24   :  { %v1449_v48 = vrot.slane %v1448_v58, 2  ;;  %v1453_v63 = vrot.slane %v1440_v36, 4  ;;  %v1473_v6 = vrot.slane %v1472_v46, 2 }
 0xb25   :  { %v1412_v8 = vpop.permute.xlu0 %1411 }
 0xb26   :  { %v1450_v60 = vadd.f32 %v1449_v48, %v1448_v58  ;;  %v1454_v15 = vadd.f32 %v1453_v63, %v1440_v36  ;;  %v1441_v47 = vmul.f32 %v1412_v8, %v4006_v51  ;;  %v1474_v62 = vadd.f32 %v1473_v6, %v1472_v46 }
 0xb28   :  { %v1451_v21 = vrot.slane %v1450_v60, 1  ;;  %v1455_v57 = vrot.slane %v1454_v15, 2  ;;  %v1459_v55 = vrot.slane %v1441_v47, 4  ;;  %v1475_v18 = vrot.slane %v1474_v62, 1 }
 0xb29   :  { %v1417_v0 = vpop.permute.xlu0 %1416 }
 0xb2a   :  { %v1452_v4 = vadd.f32 %v1451_v21, %v1450_v60  ;;  %v1456_v34 = vadd.f32 %v1455_v57, %v1454_v15  ;;  %v1460_v56 = vadd.f32 %v1459_v55, %v1441_v47  ;;  %v1442_v5 = vmul.f32 %v1417_v0, %v3395_v3 }
 0xb2b   :  { %v1476_v60 = vadd.f32 %v1475_v18, %v1474_v62 }
 0xb2c   :  { %v1457_v53 = vrot.slane %v1456_v34, 1  ;;  %v1461_v52 = vrot.slane %v1460_v56, 2  ;;  %3036 = vtanh.f32 %v1452_v4  ;;  %v1465_v14 = vrot.slane %v1442_v5, 4 }
 0xb2d   :  { %v1427_v45 = vpop.permute.xlu0 %1426 }
 0xb2e   :  { %v1458_v58 = vadd.f32 %v1457_v53, %v1456_v34  ;;  %v1462_v36 = vadd.f32 %v1461_v52, %v1460_v56  ;;  %v1444_v48 = vmul.f32 %v1427_v45, %v3408_v20  ;;  %v1466_v63 = vadd.f32 %v1465_v14, %v1442_v5 }
 0xb30   :  { %3038 = vtanh.f32 %v1458_v58  ;;  %v1463_v8 = vrot.slane %v1462_v36, 1  ;;  %v1477_v51 = vrot.slane %v1444_v48, 4  ;;  %v1467_v46 = vrot.slane %v1466_v63, 2 }
 0xb31   :  { %v1432_v6 = vpop.permute.xlu0 %1431 }
 0xb32   :  { %v1464_v15 = vadd.f32 %v1463_v8, %v1462_v36  ;;  %v1478_v47 = vadd.f32 %v1477_v51, %v1444_v48  ;;  %v1445_v21 = vmul.f32 %v1432_v6, %v3415_v26  ;;  %v1468_v57 = vadd.f32 %v1467_v46, %v1466_v63 }
 0xb34   :  { %3040 = vtanh.f32 %v1464_v15  ;;  %v1479_v55 = vrot.slane %v1478_v47, 2  ;;  %v1483_v0 = vrot.slane %v1445_v21, 4  ;;  %v1469_v4 = vrot.slane %v1468_v57, 1 }
 0xb35   :  { %v1437_v34 = vpop.permute.xlu0 %1436  ;;  %3042 = vtanh.f32 %v1476_v60 }
 0xb36   :  { %v1480_v56 = vadd.f32 %v1479_v55, %v1478_v47  ;;  %v1484_v53 = vadd.f32 %v1483_v0, %v1445_v21  ;;  %v1446_v5 = vmul.f32 %v1437_v34, %v3420_v30  ;;  %v3037_v52 = vpop.eup %3036  ;;  %v1470_v14 = vadd.f32 %v1469_v4, %v1468_v57 }
 0xb37   :  { %v1503_v62 = vpack.c.bf16 %v3037_v52, %v3037_v52 }
 0xb38   :  { %v1481_v45 = vrot.slane %v1480_v56, 1  ;;  %v1485_v58 = vrot.slane %v1484_v53, 2  ;;  %v1489_v18 = vrot.slane %v1446_v5, 4  ;;  %3044 = vtanh.f32 %v1470_v14 }
 0xb39   :  { %v1519_v60 = vunpack.c.l.b16 %v1503_v62 }
 0xb3a   :  { %v3039_v51 = vpop.eup %3038  ;;  %v1482_v36 = vadd.f32 %v1481_v45, %v1480_v56  ;;  %v1486_v48 = vadd.f32 %v1485_v58, %v1484_v53  ;;  %v1490_v63 = vadd.f32 %v1489_v18, %v1446_v5 }
 0xb3b   :  { %v1504_v8 = vpack.c.bf16 %v3039_v51, %v3039_v51 }
 0xb3c   :  { %3046 = vtanh.f32 %v1482_v36  ;;  %v1487_v46 = vrot.slane %v1486_v48, 1  ;;  %v1491_v6 = vrot.slane %v1490_v63, 2 }
 0xb3d   :  { %v1520_v15 = vunpack.c.l.b16 %v1504_v8 }
 0xb3e   :  { %v3041_v47 = vpop.eup %3040  ;;  %v1488_v21 = vadd.f32 %v1487_v46, %v1486_v48  ;;  %v1492_v55 = vadd.f32 %v1491_v6, %v1490_v63 }
 0xb3f   :  { %v1527_v57 = vsel %vm549_vm1, %v1520_v15, %v1519_v60  ;;  %v1505_v0 = vpack.c.bf16 %v3041_v47, %v3041_v47  ;;  %v3043_v4 = vpop.eup %3042 }
 0xb40   :  { %3048 = vtanh.f32 %v1488_v21  ;;  %v1493_v34 = vrot.slane %v1492_v55, 1  ;;  %v1507_v53 = vpack.c.bf16 %v3043_v4, %v3043_v4 }
 0xb41   :  { %v1521_v52 = vunpack.c.l.b16 %v1505_v0 }
 0xb42   :  { %v1494_v14 = vadd.f32 %v1493_v34, %v1492_v55  ;;  %v3045_v56 = vpop.eup %3044  ;;  %v1523_v62 = vunpack.c.l.b16 %v1507_v53 }
 0xb43   :  { %v1528_v5 = vsel %vm551_vm2, %v1521_v52, %v1527_v57  ;;  %v1506_v45 = vpack.c.bf16 %v3045_v56, %v3045_v56 }
 0xb44   :  { %3050 = vtanh.f32 %v1494_v14 }
 0xb45   :  { %v1522_v18 = vunpack.c.l.b16 %v1506_v45 }
 0xb46   :  { %v3047_v58 = vpop.eup %3046 }
 0xb47   :  { %v1508_v51 = vpack.c.bf16 %v3047_v58, %v3047_v58  ;;  %v1529_v36 = vsel %vm553_vm3, %v1522_v18, %v1528_v5 }
 0xb48   :  { %v1530_v48 = vsel %vm555_vm4, %v1523_v62, %v1529_v36 }
 0xb49   :  { %v1524_v63 = vunpack.c.l.b16 %v1508_v51 }
 0xb4a   :  { %v3049_v8 = vpop.eup %3048 }
 0xb4b   :  { %v1531_v46 = vsel %vm557_vm5, %v1524_v63, %v1530_v48  ;;  %v1509_v6 = vpack.c.bf16 %v3049_v8, %v3049_v8 }
 0xb4d   :  { %v1525_v60 = vunpack.c.l.b16 %v1509_v6 }
 0xb4e   :  { %v3051_v15 = vpop.eup %3050 }
 0xb4f   :  { %v1510_v47 = vpack.c.bf16 %v3051_v15, %v3051_v15  ;;  %v1532_v21 = vsel %vm559_vm6, %v1525_v60, %v1531_v46 }
 0xb51   :  { %v1526_v55 = vunpack.c.l.b16 %v1510_v47 }
 0xb53   :  { %v1533_v57 = vsel %vm561_vm7, %v1526_v55, %v1532_v21 }
 0xb54   :  { %v1534_v0 = vpack.c.b16 %v1533_v57, %v1533_v57 }
 0xb56   :  { %2891 = vmatmul.mubr.bf16.vlgmr.msra.gmra.mrb[16].mxu0 %v1534_v0 }
 0xb57   :  { %2915 = vmatpush3.bf16.msra.mxu0 %v3537_v31  ;;  %2930 = vmatprep.mubr.msk.bf16.mxu0 %vm3226_vm9, %v4001_v7 }
 0xb58   :  { %2916 = vmatprep.subr.bf16.mxu0 %v4001_v7 }
 0xb5b   :  { %2917 = vmatpush3.bf16.msra.mxu0 %v3543_v23 }
 0xb5c   :  { %2918 = vmatprep.subr.bf16.mxu0 %v4001_v7 }
 0xb5f   :  { %2919 = vmatpush3.bf16.msra.mxu0 %v3549_v28 }
 0xb60   :  { %2920 = vmatprep.subr.bf16.mxu0 %v4001_v7 }
 0xb63   :  { %2921 = vmatpush3.bf16.msra.mxu0 %v3555_v59 }
 0xb64   :  { %2922 = vmatprep.subr.bf16.mxu0 %v4001_v7 }
 0xb67   :  { %2923 = vmatpush3.bf16.msra.mxu0 %v3560_v22 }
 0xb68   :  { %2924 = vmatprep.subr.bf16.mxu0 %v4001_v7 }
 0xb6b   :  { %2925 = vmatpush3.bf16.msra.mxu0 %v3568_v35 }
 0xb6c   :  { %2926 = vmatprep.subr.bf16.mxu0 %v4001_v7 }
 0xb6f   :  { %2927 = vmatpush3.bf16.msra.mxu0 %v3574_v1 }
 0xb70   :  { %2928 = vmatprep.subr.bf16.mxu0 %v4001_v7 }
 0xb73   :  { %2929 = vmatpush3.bf16.msra.mxu0 %v3580_v44 }
 0xc29   :  { %v1570_v31 = vpop.f32.mrb[16].mxu0 }
 0xc2a   :  { %v1571_v23 = vadd.f32 %v3624_v50, %v1570_v31  ;;  %v2892_v28 = vpop.f32.mrb[17].mxu0 }
 0xc2b   :  { %v1573_v59 = vpop.f32.mrb[18].mxu0 }
 0xc2c   :  { %1576 = vmax.xlane.f32.xlu0 %v1571_v23  ;;  %v2893_v4 = vpop.f32.mrb[19].mxu0 }
 0xcb9   :  { %v1577_v22 = vpop.xlane.xlu0 %1576 }
 0xcba   :  { %vm1578_vm14 = vcmp.eq.f32.partialorder %v1571_v23, %v1577_v22 }
 0xcbb   :  { %v1579_v34 = vsel %vm1578_vm14, %v3362_v39, 128 }
 0xcbc   :  { %v1581_v35 = vshra.s32 %v1579_v34, 16  ;;  %v1580_v14 = vand.u32 65535, %v1579_v34 }
 0xcbe   :  { %v1583_v52 = vcvt.s32.f32 %v1581_v35  ;;  %v1582_v56 = vcvt.s32.f32 %v1580_v14 }
 0xcc0   :  { %1584 = vmin.xlane.f32.xlu1 %v1583_v52 }
 0xd4d   :  { %v1585_v1 = vpop.xlane.xlu1 %1584 }
 0xd4e   :  { %vm1586_vm15 = vcmp.eq.f32.partialorder %v1583_v52, %v1585_v1  ;;  %v1591_v44 = vcvt.f32.s32 %v1585_v1 }
 0xd4f   :  { %v1587_v53 = vsel %vm1586_vm15, %v1582_v56, inf }
 0xd50   :  { %1588 = vmin.xlane.f32.xlu0 %v1587_v53  ;;  %v1592_v50 = vshll.u32 %v1591_v44, 16 }
 0xddd   :  { %v1589_v5 = vpop.xlane.xlu0 %1588 }
 0xdde   :  { %v1590_v45 = vcvt.f32.s32 %v1589_v5 }
 0xde0   :  { %v1593_v58 = vadd.s32 %v1592_v50, %v1590_v45 }
 0xde2   :  { %vm1594_vm0 = vcmp.lt.s32.totalorder %v1593_v58, 127 }
 0xde3   :  { %v3753_v18 = vsel %vm1594_vm0, %v1593_v58, 127 }
 0xde4   :  { %vm1596_vm9 = vcmp.eq.s32.totalorder %v3362_v39, %v3753_v18 }
 0xde5   :  { %v2816_v62 = vsel %vm1596_vm9, 1.0, %v4001_v7 }
 0xde6   :  { %v1600_v51 = vcombine.high %v2816_v62, %v2816_v62  ;;  %v1607_v36 = vrot.slane %v2816_v62, %v3366_v41 }
 0xde8   :  { %v1623_v48 = vrot.slane %v1607_v36, %v3366_v41  ;;  %v1615_v63 = vcombine.high %v1607_v36, %v1607_v36  ;;  %v1614_v8 = vrot.slane %v1600_v51, %v3366_v41 }
 0xdea   :  { %v1652_v46 = vrot.slane %v1623_v48, %v3325_v10  ;;  %v1645_v6 = vcombine.high %v1623_v48, %v1623_v48  ;;  %v1637_v60 = vrot.slane %v1615_v63, %v3366_v41  ;;  %v1630_v15 = vrot.slane %v1614_v8, %v3366_v41 }
 0xdeb   :  { %v1616_v57 = vcombine.high %v1614_v8, %v1614_v8 }
 0xdec   :  { %v1689_v47 = vmul.f32 %v1652_v46, %v3373_v49  ;;  %v1660_v21 = vrot.slane %v1645_v6, %v3325_v10  ;;  %v1656_v55 = vrot.slane %v1637_v60, %v3325_v10  ;;  %v1647_v0 = vcombine.high %v1637_v60, %v1637_v60  ;;  %v4007_v60 = vld [vmem:[#allocation16_spill] sm:$0xff] }
 0xded   :  { %v1668_v23 = vrot.slane %v1630_v15, %v3325_v10  ;;  %v1646_v28 = vcombine.high %v1630_v15, %v1630_v15  ;;  %v1644_v22 = vrot.slane %v1616_v57, %v3366_v41 }
 0xdee   :  { %1697 = vadd.xlane.f32.xlu0 %v1689_v47  ;;  %v1691_v31 = vmul.f32 %v1660_v21, %v3386_v61  ;;  %v1690_v59 = vmul.f32 %v1656_v55, %v3379_v54  ;;  %v1664_v4 = vrot.slane %v1647_v0, %v3325_v10  ;;  %v4008_v55 = vld [vmem:[#allocation17_spill] sm:$0xff]  ;;  %v4009_v0 = vld [vmem:[#allocation18_spill] sm:$0xff] }
 0xdef   :  { %v1693_v34 = vmul.f32 %v1668_v23, %v3401_v9  ;;  %v1676_v35 = vrot.slane %v1646_v28, %v3325_v10  ;;  %v1672_v14 = vrot.slane %v1644_v22, %v3325_v10  ;;  %v1648_v1 = vcombine.high %v1644_v22, %v1644_v22 }
 0xdf0   :  { %1701 = vadd.xlane.f32.xlu1 %v1691_v31  ;;  %v1692_v52 = vmul.f32 %v1664_v4, %v3393_v2 }
 0xdf1   :  { %v1695_v56 = vmul.f32 %v1676_v35, %v3413_v25  ;;  %v1694_v53 = vmul.f32 %v1672_v14, %v3406_v17  ;;  %v1680_v44 = vrot.slane %v1648_v1, %v3325_v10 }
 0xdf2   :  { %1699 = vadd.xlane.f32.xlu0 %v1690_v59 }
 0xdf3   :  { %v1696_v5 = vmul.f32 %v1680_v44, %v3418_v29 }
 0xdf4   :  { %1705 = vadd.xlane.f32.xlu1 %v1693_v34 }
 0xdf6   :  { %1703 = vadd.xlane.f32.xlu0 %v1692_v52 }
 0xdf8   :  { %1709 = vadd.xlane.f32.xlu1 %v1695_v56 }
 0xdfa   :  { %1707 = vadd.xlane.f32.xlu0 %v1694_v53 }
 0xdfe   :  { %1711 = vadd.xlane.f32.xlu0 %v1696_v5 }
 0xe7b   :  { %v1698_v50 = vpop.xlane.xlu0 %1697 }
 0xe7c   :  { %v1713_v45 = vadd.f32 %v1698_v50, %v3435_v38 }
 0xe7d   :  { %v1702_v58 = vpop.xlane.xlu1 %1701 }
 0xe7e   :  { %1730 = vperm.xlu1 %2947, %v1713_v45   ;;  %v1715_v51 = vadd.f32 %v1702_v58, %v3437_v40 }
 0xe7f   :  { %v1700_v62 = vpop.xlane.xlu0 %1699 }
 0xe80   :  { %v1714_v36 = vadd.f32 %v1700_v62, %v3433_v37 }
 0xe81   :  { %v1706_v48 = vpop.xlane.xlu1 %1705 }
 0xe82   :  { %1736 = vperm.xlu1 %2947, %v1715_v51   ;;  %1733 = vperm.xlu0 %2946, %v1714_v36   ;;  %v1717_v8 = vadd.f32 %v1706_v48, %v3439_v42 }
 0xe83   :  { %v1704_v63 = vpop.xlane.xlu0 %1703 }
 0xe84   :  { %v1716_v6 = vadd.f32 %v1704_v63, %v3441_v43 }
 0xe85   :  { %v1710_v47 = vpop.xlane.xlu1 %1709 }
 0xe86   :  { %1742 = vperm.xlu1 %2947, %v1717_v8   ;;  %v1719_v57 = vadd.f32 %v1710_v47, %v4008_v55 }
 0xe87   :  { %v1708_v46 = vpop.xlane.xlu0 %1707 }
 0xe88   :  { %v1718_v15 = vadd.f32 %v1708_v46, %v4007_v60 }
 0xe8a   :  { %1739 = vperm.xlu1 %2947, %v1716_v6   ;;  %1745 = vperm.xlu0 %2946, %v1718_v15  }
 0xe8b   :  { %v1712_v21 = vpop.xlane.xlu0 %1711 }
 0xe8c   :  { %v1720_v31 = vadd.f32 %v1712_v21, %v4009_v0 }
 0xe8e   :  { %1748 = vperm.xlu1 %2947, %v1719_v57   ;;  %1751 = vperm.xlu0 %2946, %v1720_v31  }
 0xefd   :  { %v1731_v23 = vpop.permute.xlu1 %1730 }
 0xefe   :  { %v1756_v34 = vrot.slane %v1731_v23, %v3480_v16 }
 0xf01   :  { %v1737_v28 = vpop.permute.xlu1 %1736  ;;  %v1734_v59 = vpop.permute.xlu0 %1733 }
 0xf02   :  { %v1760_v4 = vrot.slane %v1734_v59, %v3480_v16  ;;  %v1764_v35 = vrot.slane %v1737_v28, %v3480_v16 }
 0xf04   :  { %v1785_v52 = vsel %vm549_vm1, %v1760_v4, %v1756_v34 }
 0xf05   :  { %v1743_v22 = vpop.permute.xlu1 %1742  ;;  %v1786_v44 = vsel %vm551_vm2, %v1764_v35, %v1785_v52 }
 0xf06   :  { %v1772_v53 = vrot.slane %v1743_v22, %v3480_v16 }
 0xf09   :  { %v1740_v14 = vpop.permute.xlu1 %1739  ;;  %v1746_v1 = vpop.permute.xlu0 %1745 }
 0xf0a   :  { %v1768_v56 = vrot.slane %v1740_v14, %v3480_v16  ;;  %v1776_v50 = vrot.slane %v1746_v1, %v3480_v16 }
 0xf0c   :  { %v1787_v5 = vsel %vm553_vm3, %v1768_v56, %v1786_v44 }
 0xf0d   :  { %v1788_v58 = vsel %vm555_vm4, %v1772_v53, %v1787_v5  ;;  %v1749_v62 = vpop.permute.xlu1 %1748  ;;  %v1752_v48 = vpop.permute.xlu0 %1751 }
 0xf0e   :  { %v1789_v63 = vsel %vm557_vm5, %v1776_v50, %v1788_v58  ;;  %v1780_v46 = vrot.slane %v1749_v62, %v3480_v16  ;;  %v1784_v47 = vrot.slane %v1752_v48, %v3480_v16 }
 0xf10   :  { %v1790_v21 = vsel %vm559_vm6, %v1780_v46, %v1789_v63 }
 0xf11   :  { %v1791_v23 = vsel %vm561_vm7, %v1784_v47, %v1790_v21 }
 0xf12   :  { %v1793_v28 = vsel %vm564_vm8, %v1791_v23, -inf }
 0xf13   :  { %1794 = vmax.xlane.f32.xlu1 %v1793_v28 }
 0xfa0   :  { %v1795_v59 = vpop.xlane.xlu1 %1794 }
 0xfa1   :  { %v1800_v4 = vrot.slane %v1795_v59, %v3325_v10  ;;  %v1804_v22 = vrot.slane %v1795_v59, %v3328_v11  ;;  %v1808_v34 = vrot.slane %v1795_v59, %v3331_v12  ;;  %v1812_v1 = vrot.slane %v1795_v59, %v3339_v19 }
 0xfa2   :  { %v1816_v44 = vrot.slane %v1795_v59, %v3334_v13  ;;  %v1820_v58 = vrot.slane %v1795_v59, %v3352_v27  ;;  %v1828_v47 = vrot.slane %v1795_v59, %v3424_v32 }
 0xfa3   :  { %v1837_v35 = vsub.f32 %v1713_v45, %v1800_v4  ;;  %v1838_v52 = vsub.f32 %v1714_v36, %v1804_v22  ;;  %v1839_v56 = vsub.f32 %v1715_v51, %v1808_v34  ;;  %v1840_v5 = vsub.f32 %v1716_v6, %v1812_v1 }
 0xfa4   :  { %v1841_v62 = vsub.f32 %v1717_v8, %v1816_v44  ;;  %v1824_v45 = vrot.slane %v1795_v59, %v3427_v33  ;;  %v1842_v36 = vsub.f32 %v1718_v15, %v1820_v58  ;;  %v1844_v28 = vsub.f32 %v1720_v31, %v1828_v47 }
 0xfa5   :  { %v1845_v14 = vmul.f32 1.442695, %v1837_v35  ;;  %v1847_v53 = vmul.f32 1.442695, %v1838_v52  ;;  %v1849_v50 = vmul.f32 1.442695, %v1839_v56 }
 0xfa6   :  { %v1851_v48 = vmul.f32 1.442695, %v1840_v5  ;;  %v1853_v46 = vmul.f32 1.442695, %v1841_v62  ;;  %v1843_v21 = vsub.f32 %v1719_v57, %v1824_v45  ;;  %v1855_v6 = vmul.f32 1.442695, %v1842_v36 }
 0xfa7   :  { %3052 = vpow2.f32 %v1845_v14  ;;  %v1859_v22 = vmul.f32 1.442695, %v1844_v28 }
 0xfa8   :  { %3054 = vpow2.f32 %v1847_v53  ;;  %v1857_v8 = vmul.f32 1.442695, %v1843_v21 }
 0xfa9   :  { %3056 = vpow2.f32 %v1849_v50 }
 0xfaa   :  { %3058 = vpow2.f32 %v1851_v48 }
 0xfab   :  { %3060 = vpow2.f32 %v1853_v46 }
 0xfac   :  { %3062 = vpow2.f32 %v1855_v6 }
 0xfad   :  { %3064 = vpow2.f32 %v1857_v8 }
 0xfae   :  { %3066 = vpow2.f32 %v1859_v22 }
 0xfb1   :  { %v3053_v63 = vpop.eup %3052 }
 0xfb2   :  { %1870 = vperm.xlu0 %2946, %v3053_v63   ;;  %v3055_v51 = vpop.eup %3054 }
 0xfb3   :  { %v3057_v23 = vpop.eup %3056 }
 0xfb4   :  { %v3059_v4 = vpop.eup %3058 }
 0xfb5   :  { %v3061_v34 = vpop.eup %3060 }
 0xfb6   :  { %1873 = vperm.xlu0 %2946, %v3055_v51   ;;  %v3063_v15 = vpop.eup %3062 }
 0xfb7   :  { %v3065_v35 = vpop.eup %3064 }
 0xfb8   :  { %v3067_v59 = vpop.eup %3066 }
 0xfba   :  { %1876 = vperm.xlu0 %2946, %v3057_v23  }
 0xfbe   :  { %1879 = vperm.xlu0 %2946, %v3059_v4  }
 0xfc2   :  { %1882 = vperm.xlu0 %2946, %v3061_v34  }
 0xfc6   :  { %1885 = vperm.xlu0 %2946, %v3063_v15  }
 0xfca   :  { %1888 = vperm.xlu0 %2946, %v3065_v35  }
 0xfce   :  { %1891 = vperm.xlu0 %2946, %v3067_v59  }
0x1031   :  { %v1871_v57 = vpop.permute.xlu0 %1870 }
0x1032   :  { %v1896_v5 = vrot.slane %v1871_v57, %v3480_v16 }
0x1035   :  { %v1874_v52 = vpop.permute.xlu0 %1873 }
0x1036   :  { %v1900_v53 = vrot.slane %v1874_v52, %v3480_v16 }
0x1038   :  { %v1925_v48 = vsel %vm549_vm1, %v1900_v53, %v1896_v5 }
0x1039   :  { %v1877_v14 = vpop.permute.xlu0 %1876 }
0x103a   :  { %v1904_v44 = vrot.slane %v1877_v14, %v3480_v16 }
0x103c   :  { %v1926_v36 = vsel %vm551_vm2, %v1904_v44, %v1925_v48 }
0x103d   :  { %v1880_v1 = vpop.permute.xlu0 %1879 }
0x103e   :  { %v1908_v50 = vrot.slane %v1880_v1, %v3480_v16 }
0x1040   :  { %v1927_v47 = vsel %vm553_vm3, %v1908_v50, %v1926_v36 }
0x1041   :  { %v1883_v31 = vpop.permute.xlu0 %1882 }
0x1042   :  { %v1912_v58 = vrot.slane %v1883_v31, %v3480_v16 }
0x1044   :  { %v1928_v21 = vsel %vm555_vm4, %v1912_v58, %v1927_v47 }
0x1045   :  { %v1886_v56 = vpop.permute.xlu0 %1885 }
0x1046   :  { %v1916_v45 = vrot.slane %v1886_v56, %v3480_v16 }
0x1048   :  { %v1929_v28 = vsel %vm557_vm5, %v1916_v45, %v1928_v21 }
0x1049   :  { %v1889_v62 = vpop.permute.xlu0 %1888 }
0x104a   :  { %v1920_v46 = vrot.slane %v1889_v62, %v3480_v16 }
0x104c   :  { %v1930_v22 = vsel %vm559_vm6, %v1920_v46, %v1929_v28  ;;  %v4010_v28 = vld [vmem:[#allocation12_spill] sm:$0xff] }
0x104d   :  { %v1892_v6 = vpop.permute.xlu0 %1891 }
0x104e   :  { %v1924_v8 = vrot.slane %v1892_v6, %v3480_v16 }
0x1050   :  { %v1931_v57 = vsel %vm561_vm7, %v1924_v8, %v1930_v22 }
0x1051   :  { %v1933_v52 = vsel %vm564_vm8, %v1931_v57, 0.0 }
0x1052   :  { %1934 = vadd.xlane.f32.xlu0 %v1933_v52 }
0x10df   :  { %v1935_v14 = vpop.xlane.xlu0 %1934 }
0x10e0   :  { %3068 = vrcp.f32 %v1935_v14  ;;  %v4011_v14 = vld [vmem:[#allocation13_spill] sm:$0xff] }
0x10ea   :  { %v3069_v1 = vpop.eup %3068 }
0x10eb   :  { %v1957_v31 = vrot.slane %v3069_v1, %v3334_v13  ;;  %v1941_v56 = vrot.slane %v3069_v1, %v3325_v10  ;;  %v1945_v5 = vrot.slane %v3069_v1, %v3328_v11  ;;  %v1949_v58 = vrot.slane %v3069_v1, %v3331_v12 }
0x10ec   :  { %v1953_v48 = vrot.slane %v3069_v1, %v3339_v19  ;;  %v1961_v36 = vrot.slane %v3069_v1, %v3352_v27  ;;  %v1969_v47 = vrot.slane %v3069_v1, %v3424_v32 }
0x10ed   :  { %v1982_v53 = vmul.f32 %v3061_v34, %v1957_v31  ;;  %v1978_v44 = vmul.f32 %v3053_v63, %v1941_v56  ;;  %v1979_v50 = vmul.f32 %v3055_v51, %v1945_v5  ;;  %v1980_v62 = vmul.f32 %v3057_v23, %v1949_v58  ;;  %v4012_v5 = vld [vmem:[#allocation14_spill] sm:$0xff] }
0x10ee   :  { %v1981_v45 = vmul.f32 %v3059_v4, %v1953_v48  ;;  %v1983_v46 = vmul.f32 %v3063_v15, %v1961_v36  ;;  %v1965_v34 = vrot.slane %v3069_v1, %v3427_v33  ;;  %v1985_v51 = vmul.f32 %v3067_v59, %v1969_v47 }
0x10ef   :  { %2008 = vperm.xlu0 %2946, %v1982_v53   ;;  %1988 = vperm.xlu1 %2947, %v1978_v44  }
0x10f0   :  { %v1984_v63 = vmul.f32 %v3065_v35, %v1965_v34 }
0x10f3   :  { %1993 = vperm.xlu1 %2947, %v1979_v50  }
0x10f7   :  { %1998 = vperm.xlu1 %2947, %v1980_v62  }
0x10fb   :  { %2003 = vperm.xlu1 %2947, %v1981_v45  }
0x10ff   :  { %2013 = vperm.xlu1 %2947, %v1983_v46  }
0x1103   :  { %2018 = vperm.xlu1 %2947, %v1984_v63  }
0x1107   :  { %2023 = vperm.xlu1 %2947, %v1985_v51  }
0x116e   :  { %v2009_v21 = vpop.permute.xlu0 %2008  ;;  %v1989_v6 = vpop.permute.xlu1 %1988 }
0x116f   :  { %v2030_v23 = vmul.f32 %v2009_v21, %v4003_v24  ;;  %v2026_v8 = vmul.f32 %v1989_v6, %v4010_v28 }
0x1171   :  { %v2058_v4 = vrot.slane %v2030_v23, 4  ;;  %v2034_v22 = vrot.slane %v2026_v8, 4 }
0x1172   :  { %v1994_v57 = vpop.permute.xlu1 %1993 }
0x1173   :  { %v2059_v52 = vadd.f32 %v2058_v4, %v2030_v23  ;;  %v2035_v15 = vadd.f32 %v2034_v22, %v2026_v8  ;;  %v2027_v31 = vmul.f32 %v1994_v57, %v4011_v14 }
0x1175   :  { %v2036_v56 = vrot.slane %v2035_v15, 2  ;;  %v2040_v35 = vrot.slane %v2027_v31, 4  ;;  %v2060_v1 = vrot.slane %v2059_v52, 2 }
0x1176   :  { %v1999_v53 = vpop.permute.xlu1 %1998 }
0x1177   :  { %v2037_v44 = vadd.f32 %v2036_v56, %v2035_v15  ;;  %v2041_v59 = vadd.f32 %v2040_v35, %v2027_v31  ;;  %v2028_v50 = vmul.f32 %v1999_v53, %v4012_v5  ;;  %v2061_v36 = vadd.f32 %v2060_v1, %v2059_v52 }
0x1179   :  { %v2038_v58 = vrot.slane %v2037_v44, 1  ;;  %v2042_v62 = vrot.slane %v2041_v59, 2  ;;  %v2046_v48 = vrot.slane %v2028_v50, 4  ;;  %v2062_v8 = vrot.slane %v2061_v36, 1 }
0x117a   :  { %v2004_v45 = vpop.permute.xlu1 %2003 }
0x117b   :  { %v2039_v46 = vadd.f32 %v2038_v58, %v2037_v44  ;;  %v2043_v34 = vadd.f32 %v2042_v62, %v2041_v59  ;;  %v2047_v63 = vadd.f32 %v2046_v48, %v2028_v50  ;;  %v2029_v47 = vmul.f32 %v2004_v45, %v3395_v3 }
0x117c   :  { %v2063_v53 = vadd.f32 %v2062_v8, %v2061_v36 }
0x117d   :  { %v2044_v51 = vrot.slane %v2043_v34, 1  ;;  %v2048_v21 = vrot.slane %v2047_v63, 2  ;;  %3070 = vtanh.f32 %v2039_v46  ;;  %v2052_v6 = vrot.slane %v2029_v47, 4 }
0x117e   :  { %v2014_v23 = vpop.permute.xlu1 %2013 }
0x117f   :  { %v2045_v4 = vadd.f32 %v2044_v51, %v2043_v34  ;;  %v2049_v22 = vadd.f32 %v2048_v21, %v2047_v63  ;;  %v2031_v57 = vmul.f32 %v2014_v23, %v3408_v20  ;;  %v2053_v15 = vadd.f32 %v2052_v6, %v2029_v47 }
0x1181   :  { %3072 = vtanh.f32 %v2045_v4  ;;  %v2050_v31 = vrot.slane %v2049_v22, 1  ;;  %v2064_v56 = vrot.slane %v2031_v57, 4  ;;  %v2054_v52 = vrot.slane %v2053_v15, 2 }
0x1182   :  { %v2019_v35 = vpop.permute.xlu1 %2018 }
0x1183   :  { %v2051_v1 = vadd.f32 %v2050_v31, %v2049_v22  ;;  %v2065_v44 = vadd.f32 %v2064_v56, %v2031_v57  ;;  %v2032_v59 = vmul.f32 %v2019_v35, %v3415_v26  ;;  %v2055_v50 = vadd.f32 %v2054_v52, %v2053_v15 }
0x1185   :  { %3074 = vtanh.f32 %v2051_v1  ;;  %v2066_v58 = vrot.slane %v2065_v44, 2  ;;  %v2070_v62 = vrot.slane %v2032_v59, 4  ;;  %v2056_v48 = vrot.slane %v2055_v50, 1 }
0x1186   :  { %v2024_v45 = vpop.permute.xlu1 %2023  ;;  %3076 = vtanh.f32 %v2063_v53 }
0x1187   :  { %v2067_v46 = vadd.f32 %v2066_v58, %v2065_v44  ;;  %v2071_v34 = vadd.f32 %v2070_v62, %v2032_v59  ;;  %v2033_v63 = vmul.f32 %v2024_v45, %v3420_v30  ;;  %v3071_v47 = vpop.eup %3070  ;;  %v2057_v51 = vadd.f32 %v2056_v48, %v2055_v50 }
0x1188   :  { %v2090_v23 = vpack.c.bf16 %v3071_v47, %v3071_v47 }
0x1189   :  { %v2068_v21 = vrot.slane %v2067_v46, 1  ;;  %v2072_v6 = vrot.slane %v2071_v34, 2  ;;  %v2076_v36 = vrot.slane %v2033_v63, 4  ;;  %3078 = vtanh.f32 %v2057_v51 }
0x118a   :  { %v2106_v52 = vunpack.c.l.b16 %v2090_v23 }
0x118b   :  { %v3073_v8 = vpop.eup %3072  ;;  %v2069_v4 = vadd.f32 %v2068_v21, %v2067_v46  ;;  %v2073_v22 = vadd.f32 %v2072_v6, %v2071_v34  ;;  %v2077_v57 = vadd.f32 %v2076_v36, %v2033_v63 }
0x118c   :  { %v2091_v15 = vpack.c.bf16 %v3073_v8, %v3073_v8 }
0x118d   :  { %3080 = vtanh.f32 %v2069_v4  ;;  %v2074_v31 = vrot.slane %v2073_v22, 1  ;;  %v2078_v56 = vrot.slane %v2077_v57, 2 }
0x118e   :  { %v2107_v35 = vunpack.c.l.b16 %v2091_v15 }
0x118f   :  { %v3075_v53 = vpop.eup %3074  ;;  %v2075_v1 = vadd.f32 %v2074_v31, %v2073_v22  ;;  %v2079_v44 = vadd.f32 %v2078_v56, %v2077_v57 }
0x1190   :  { %v2114_v59 = vsel %vm549_vm1, %v2107_v35, %v2106_v52  ;;  %v2092_v50 = vpack.c.bf16 %v3075_v53, %v3075_v53  ;;  %v3077_v58 = vpop.eup %3076 }
0x1191   :  { %3082 = vtanh.f32 %v2075_v1  ;;  %v2080_v62 = vrot.slane %v2079_v44, 1  ;;  %v2094_v34 = vpack.c.bf16 %v3077_v58, %v3077_v58 }
0x1192   :  { %v2108_v48 = vunpack.c.l.b16 %v2092_v50  ;;  %v3854_v50 = vld [vmem:[%s3975_s4] ss:$0 sm:$0xff] }
0x1193   :  { %v2081_v45 = vadd.f32 %v2080_v62, %v2079_v44  ;;  %v3079_v46 = vpop.eup %3078  ;;  %v2110_v6 = vunpack.c.l.b16 %v2094_v34 }
0x1194   :  { %v2115_v63 = vsel %vm551_vm2, %v2108_v48, %v2114_v59  ;;  %v2093_v47 = vpack.c.bf16 %v3079_v46, %v3079_v46 }
0x1195   :  { %3084 = vtanh.f32 %v2081_v45 }
0x1196   :  { %v2109_v21 = vunpack.c.l.b16 %v2093_v47 }
0x1197   :  { %v3081_v51 = vpop.eup %3080 }
0x1198   :  { %v2095_v36 = vpack.c.bf16 %v3081_v51, %v3081_v51  ;;  %v2116_v23 = vsel %vm553_vm3, %v2109_v21, %v2115_v63 }
0x1199   :  { %v2117_v4 = vsel %vm555_vm4, %v2110_v6, %v2116_v23 }
0x119a   :  { %v2111_v8 = vunpack.c.l.b16 %v2095_v36 }
0x119b   :  { %v3083_v22 = vpop.eup %3082 }
0x119c   :  { %v2096_v57 = vpack.c.bf16 %v3083_v22, %v3083_v22  ;;  %v2118_v15 = vsel %vm557_vm5, %v2111_v8, %v2117_v4 }
0x119e   :  { %v2112_v31 = vunpack.c.l.b16 %v2096_v57 }
0x119f   :  { %v3085_v56 = vpop.eup %3084 }
0x11a0   :  { %v2097_v52 = vpack.c.bf16 %v3085_v56, %v3085_v56  ;;  %v2119_v35 = vsel %vm559_vm6, %v2112_v31, %v2118_v15  ;;  %v4013_v15 = vld [vmem:[#allocation19_spill] sm:$0xff] }
0x11a1   :  { %v2771_v31 = vsel %vm2770_vm12, %v4013_v15, %v3753_v18 }
0x11a2   :  { %v2113_v53 = vunpack.c.l.b16 %v2097_v52 }
0x11a4   :  { %v2120_v1 = vsel %vm561_vm7, %v2113_v53, %v2119_v35 }
0x11a5   :  { %v2121_v44 = vpack.c.b16 %v2120_v1, %v2120_v1 }
0x11a7   :  { %2911 = vmatmul.mubr.bf16.vlgmr.msra.gmra.mrb[4].mxu1 %v2121_v44 }
0x127a   :  { %v2157_v59 = vpop.f32.mrb[4].mxu1 }
0x127b   :  { %v2158_v58 = vadd.f32 %v3854_v50, %v2157_v59  ;;  %v2912_v62 = vpop.f32.mrb[5].mxu1 }
0x127c   :  { %v2160_v48 = vpop.f32.mrb[6].mxu1 }
0x127d   :  { %2163 = vmax.xlane.f32.xlu1 %v2158_v58  ;;  %v2913_v45 = vpop.f32.mrb[7].mxu1 }
0x130a   :  { %v2164_v46 = vpop.xlane.xlu1 %2163 }
0x130b   :  { %vm2165_vm10 = vcmp.eq.f32.partialorder %v2158_v58, %v2164_v46 }
0x130c   :  { %v2166_v34 = vsel %vm2165_vm10, %v3362_v39, 128 }
0x130d   :  { %v2168_v63 = vshra.s32 %v2166_v34, 16  ;;  %v2167_v51 = vand.u32 65535, %v2166_v34 }
0x130f   :  { %v2170_v47 = vcvt.s32.f32 %v2168_v63  ;;  %v2169_v21 = vcvt.s32.f32 %v2167_v51 }
0x1311   :  { %2171 = vmin.xlane.f32.xlu0 %v2170_v47 }
0x139e   :  { %v2172_v6 = vpop.xlane.xlu0 %2171 }
0x139f   :  { %vm2173_vm11 = vcmp.eq.f32.partialorder %v2170_v47, %v2172_v6  ;;  %v2178_v23 = vcvt.f32.s32 %v2172_v6 }
0x13a0   :  { %v2174_v36 = vsel %vm2173_vm11, %v2169_v21, inf }
0x13a1   :  { %2175 = vmin.xlane.f32.xlu1 %v2174_v36  ;;  %v2179_v4 = vshll.u32 %v2178_v23, 16 }
0x142e   :  { %v2176_v8 = vpop.xlane.xlu1 %2175 }
0x142f   :  { %v2177_v22 = vcvt.f32.s32 %v2176_v8 }
0x1431   :  { %v2180_v57 = vadd.s32 %v2179_v4, %v2177_v22 }
0x1433   :  { %vm2181_vm14 = vcmp.lt.s32.totalorder %v2180_v57, 127 }
0x1434   :  { %v2182_v56 = vsel %vm2181_vm14, %v2180_v57, 127 }
0x1435   :  { %vm2183_vm15 = vcmp.eq.s32.totalorder %v3362_v39, %v2182_v56  ;;  %v3861_v52 = vsel %vm2772_vm13, %v2771_v31, %v2182_v56 }
0x1436   :  { %v2817_v35 = vsel %vm2183_vm15, 1.0, %v4001_v7 }
0x1437   :  { %v2187_v53 = vcombine.high %v2817_v35, %v2817_v35  ;;  %v2194_v1 = vrot.slane %v2817_v35, %v3366_v41 }
0x1439   :  { %v2201_v44 = vrot.slane %v2187_v53, %v3366_v41  ;;  %v2202_v59 = vcombine.high %v2194_v1, %v2194_v1  ;;  %v2210_v58 = vrot.slane %v2194_v1, %v3366_v41 }
0x143b   :  { %v2239_v62 = vrot.slane %v2210_v58, %v3325_v10  ;;  %v2224_v48 = vrot.slane %v2202_v59, %v3366_v41  ;;  %v2232_v18 = vcombine.high %v2210_v58, %v2210_v58  ;;  %v2217_v45 = vrot.slane %v2201_v44, %v3366_v41 }
0x143c   :  { %v2203_v46 = vcombine.high %v2201_v44, %v2201_v44 }
0x143d   :  { %v2276_v34 = vmul.f32 %v2239_v62, %v3373_v49  ;;  %v2243_v7 = vrot.slane %v2224_v48, %v3325_v10  ;;  %v2247_v63 = vrot.slane %v2232_v18, %v3325_v10  ;;  %v2234_v47 = vcombine.high %v2224_v48, %v2224_v48 }
0x143e   :  { %v2231_v6 = vrot.slane %v2203_v46, %v3366_v41  ;;  %v2255_v23 = vrot.slane %v2217_v45, %v3325_v10  ;;  %v2233_v8 = vcombine.high %v2217_v45, %v2217_v45 }
0x143f   :  { %2284 = vadd.xlane.f32.xlu0 %v2276_v34  ;;  %v2277_v51 = vmul.f32 %v2243_v7, %v3379_v54  ;;  %v2251_v21 = vrot.slane %v2234_v47, %v3325_v10  ;;  %v2278_v36 = vmul.f32 %v2247_v63, %v3386_v61 }
0x1440   :  { %v2259_v4 = vrot.slane %v2231_v6, %v3325_v10  ;;  %v2235_v22 = vcombine.high %v2231_v6, %v2231_v6  ;;  %v2280_v57 = vmul.f32 %v2255_v23, %v3401_v9  ;;  %v2263_v54 = vrot.slane %v2233_v8, %v3325_v10 }
0x1441   :  { %2286 = vadd.xlane.f32.xlu1 %v2277_v51  ;;  %v2279_v49 = vmul.f32 %v2251_v21, %v3393_v2 }
0x1442   :  { %v2281_v41 = vmul.f32 %v2259_v4, %v3406_v17  ;;  %v2267_v15 = vrot.slane %v2235_v22, %v3325_v10  ;;  %v2282_v61 = vmul.f32 %v2263_v54, %v3413_v25 }
0x1443   :  { %2288 = vadd.xlane.f32.xlu0 %v2278_v36 }
0x1444   :  { %v2283_v31 = vmul.f32 %v2267_v15, %v3418_v29 }
0x1445   :  { %2290 = vadd.xlane.f32.xlu1 %v2279_v49 }
0x1447   :  { %2292 = vadd.xlane.f32.xlu0 %v2280_v57 }
0x1449   :  { %2294 = vadd.xlane.f32.xlu1 %v2281_v41 }
0x144b   :  { %2296 = vadd.xlane.f32.xlu0 %v2282_v61 }
0x144d   :  { %2298 = vadd.xlane.f32.xlu1 %v2283_v31 }
0x14cc   :  { %v2285_v2 = vpop.xlane.xlu0 %2284 }
0x14cd   :  { %v2300_v56 = vadd.f32 %v2285_v2, %v3435_v38 }
0x14ce   :  { %v2287_v35 = vpop.xlane.xlu1 %2286 }
0x14cf   :  { %v2301_v9 = vadd.f32 %v2287_v35, %v3433_v37  ;;  %2317 = vperm.xlu0 %2946, %v2300_v56  }
0x14d0   :  { %v2289_v53 = vpop.xlane.xlu0 %2288 }
0x14d1   :  { %2320 = vperm.xlu1 %2947, %v2301_v9   ;;  %v2302_v17 = vadd.f32 %v2289_v53, %v3437_v40 }
0x14d2   :  { %v2291_v1 = vpop.xlane.xlu1 %2290 }
0x14d3   :  { %v2303_v29 = vadd.f32 %v2291_v1, %v3441_v43 }
0x14d4   :  { %v2293_v44 = vpop.xlane.xlu0 %2292 }
0x14d5   :  { %v2304_v59 = vadd.f32 %v2293_v44, %v3439_v42  ;;  %2323 = vperm.xlu1 %2947, %v2302_v17  }
0x14d6   :  { %v2295_v25 = vpop.xlane.xlu1 %2294 }
0x14d7   :  { %2329 = vperm.xlu0 %2946, %v2304_v59   ;;  %v2305_v37 = vadd.f32 %v2295_v25, %v4007_v60 }
0x14d8   :  { %v2297_v58 = vpop.xlane.xlu0 %2296 }
0x14d9   :  { %v3892_v38 = vadd.f32 %v2297_v58, %v4008_v55  ;;  %2326 = vperm.xlu1 %2947, %v2303_v29  }
0x14da   :  { %v2299_v62 = vpop.xlane.xlu1 %2298 }
0x14db   :  { %2335 = vperm.xlu0 %2946, %v3892_v38   ;;  %v2307_v40 = vadd.f32 %v2299_v62, %v4009_v0 }
0x14dd   :  { %2332 = vperm.xlu1 %2947, %v2305_v37  }
0x14e1   :  { %2338 = vperm.xlu1 %2947, %v2307_v40  }
0x154e   :  { %v2318_v48 = vpop.permute.xlu0 %2317 }
0x154f   :  { %v2343_v55 = vrot.slane %v2318_v48, %v3480_v16 }
0x1550   :  { %v2321_v42 = vpop.permute.xlu1 %2320 }
0x1551   :  { %v2347_v43 = vrot.slane %v2321_v42, %v3480_v16 }
0x1553   :  { %v2372_v60 = vsel %vm549_vm1, %v2347_v43, %v2343_v55 }
0x1554   :  { %v2324_v18 = vpop.permute.xlu1 %2323 }
0x1555   :  { %v2351_v45 = vrot.slane %v2324_v18, %v3480_v16 }
0x1556   :  { %v2330_v46 = vpop.permute.xlu0 %2329 }
0x1557   :  { %v2373_v63 = vsel %vm551_vm2, %v2351_v45, %v2372_v60  ;;  %v2359_v47 = vrot.slane %v2330_v46, %v3480_v16 }
0x1558   :  { %v2327_v34 = vpop.permute.xlu1 %2326 }
0x1559   :  { %v2355_v7 = vrot.slane %v2327_v34, %v3480_v16 }
0x155a   :  { %v2336_v21 = vpop.permute.xlu0 %2335 }
0x155b   :  { %v2374_v0 = vsel %vm553_vm3, %v2355_v7, %v2373_v63  ;;  %v2367_v8 = vrot.slane %v2336_v21, %v3480_v16 }
0x155c   :  { %v2333_v51 = vpop.permute.xlu1 %2332  ;;  %v2375_v36 = vsel %vm555_vm4, %v2359_v47, %v2374_v0 }
0x155d   :  { %v2363_v6 = vrot.slane %v2333_v51, %v3480_v16 }
0x155f   :  { %v2376_v23 = vsel %vm557_vm5, %v2363_v6, %v2375_v36 }
0x1560   :  { %v2339_v49 = vpop.permute.xlu1 %2338  ;;  %v2377_v22 = vsel %vm559_vm6, %v2367_v8, %v2376_v23 }
0x1561   :  { %v2371_v4 = vrot.slane %v2339_v49, %v3480_v16 }
0x1563   :  { %v2378_v57 = vsel %vm561_vm7, %v2371_v4, %v2377_v22 }
0x1564   :  { %v2380_v54 = vsel %vm564_vm8, %v2378_v57, -inf }
0x1565   :  { %2381 = vmax.xlane.f32.xlu0 %v2380_v54 }
0x15f2   :  { %v2382_v41 = vpop.xlane.xlu0 %2381 }
0x15f3   :  { %v2387_v15 = vrot.slane %v2382_v41, %v3325_v10  ;;  %v2391_v61 = vrot.slane %v2382_v41, %v3328_v11  ;;  %v2415_v31 = vrot.slane %v2382_v41, %v3424_v32  ;;  %v2395_v2 = vrot.slane %v2382_v41, %v3331_v12 }
0x15f4   :  { %v2399_v25 = vrot.slane %v2382_v41, %v3339_v19  ;;  %v2403_v48 = vrot.slane %v2382_v41, %v3334_v13  ;;  %v2407_v45 = vrot.slane %v2382_v41, %v3352_v27 }
0x15f5   :  { %v2424_v35 = vsub.f32 %v2300_v56, %v2387_v15  ;;  %v2425_v53 = vsub.f32 %v2301_v9, %v2391_v61  ;;  %v2431_v44 = vsub.f32 %v2307_v40, %v2415_v31  ;;  %v2426_v58 = vsub.f32 %v2302_v17, %v2395_v2 }
0x15f6   :  { %v2427_v18 = vsub.f32 %v2303_v29, %v2399_v25  ;;  %v2428_v55 = vsub.f32 %v2304_v59, %v2403_v48  ;;  %v2411_v40 = vrot.slane %v2382_v41, %v3427_v33  ;;  %v2429_v46 = vsub.f32 %v2305_v37, %v2407_v45 }
0x15f7   :  { %v2432_v1 = vmul.f32 1.442695, %v2424_v35  ;;  %v2434_v62 = vmul.f32 1.442695, %v2425_v53  ;;  %v2446_v42 = vmul.f32 1.442695, %v2431_v44 }
0x15f8   :  { %v2436_v43 = vmul.f32 1.442695, %v2426_v58  ;;  %v2438_v56 = vmul.f32 1.442695, %v2427_v18  ;;  %v2440_v17 = vmul.f32 1.442695, %v2428_v55  ;;  %v2430_v60 = vsub.f32 %v3892_v38, %v2411_v40 }
0x15f9   :  { %3086 = vpow2.f32 %v2432_v1  ;;  %v2442_v29 = vmul.f32 1.442695, %v2429_v46 }
0x15fa   :  { %3088 = vpow2.f32 %v2434_v62  ;;  %v2444_v59 = vmul.f32 1.442695, %v2430_v60 }
0x15fb   :  { %3090 = vpow2.f32 %v2446_v42 }
0x15fc   :  { %3092 = vpow2.f32 %v2436_v43 }
0x15fd   :  { %3094 = vpow2.f32 %v2438_v56 }
0x15fe   :  { %3096 = vpow2.f32 %v2440_v17 }
0x15ff   :  { %3098 = vpow2.f32 %v2442_v29 }
0x1600   :  { %3100 = vpow2.f32 %v2444_v59 }
0x1603   :  { %v3087_v9 = vpop.eup %3086 }
0x1604   :  { %2457 = vperm.xlu1 %2947, %v3087_v9   ;;  %v3089_v34 = vpop.eup %3088 }
0x1605   :  { %v3922_v7 = vpop.eup %3090 }
0x1606   :  { %v3093_v63 = vpop.eup %3092  ;;  %2478 = vperm.xlu0 %2946, %v3922_v7  }
0x1607   :  { %v3095_v0 = vpop.eup %3094 }
0x1608   :  { %2460 = vperm.xlu1 %2947, %v3089_v34   ;;  %v3097_v37 = vpop.eup %3096 }
0x1609   :  { %v3099_v47 = vpop.eup %3098 }
0x160a   :  { %v3101_v51 = vpop.eup %3100 }
0x160c   :  { %2463 = vperm.xlu1 %2947, %v3093_v63  }
0x1610   :  { %2466 = vperm.xlu1 %2947, %v3095_v0  }
0x1614   :  { %2469 = vperm.xlu1 %2947, %v3097_v37  }
0x1618   :  { %2472 = vperm.xlu1 %2947, %v3099_v47  }
0x161c   :  { %2475 = vperm.xlu1 %2947, %v3101_v51  }
0x1683   :  { %v2458_v38 = vpop.permute.xlu1 %2457 }
0x1684   :  { %v2483_v4 = vrot.slane %v2458_v38, %v3480_v16 }
0x1685   :  { %v2479_v61 = vpop.permute.xlu0 %2478 }
0x1686   :  { %v2511_v44 = vrot.slane %v2479_v61, %v3480_v16 }
0x1687   :  { %v2461_v21 = vpop.permute.xlu1 %2460 }
0x1688   :  { %v2487_v8 = vrot.slane %v2461_v21, %v3480_v16 }
0x168a   :  { %v2512_v41 = vsel %vm549_vm1, %v2487_v8, %v2483_v4 }
0x168b   :  { %v2464_v6 = vpop.permute.xlu1 %2463 }
0x168c   :  { %v2491_v49 = vrot.slane %v2464_v6, %v3480_v16 }
0x168e   :  { %v2513_v31 = vsel %vm551_vm2, %v2491_v49, %v2512_v41 }
0x168f   :  { %v2467_v36 = vpop.permute.xlu1 %2466 }
0x1690   :  { %v2495_v22 = vrot.slane %v2467_v36, %v3480_v16 }
0x1692   :  { %v2514_v2 = vsel %vm553_vm3, %v2495_v22, %v2513_v31 }
0x1693   :  { %v2470_v23 = vpop.permute.xlu1 %2469 }
0x1694   :  { %v2499_v54 = vrot.slane %v2470_v23, %v3480_v16 }
0x1696   :  { %v2515_v53 = vsel %vm555_vm4, %v2499_v54, %v2514_v2 }
0x1697   :  { %v2473_v57 = vpop.permute.xlu1 %2472 }
0x1698   :  { %v2503_v15 = vrot.slane %v2473_v57, %v3480_v16 }
0x169a   :  { %v2516_v25 = vsel %vm557_vm5, %v2503_v15, %v2515_v53 }
0x169b   :  { %v2476_v35 = vpop.permute.xlu1 %2475 }
0x169c   :  { %v2507_v1 = vrot.slane %v2476_v35, %v3480_v16 }
0x169e   :  { %v2517_v58 = vsel %vm559_vm6, %v2507_v1, %v2516_v25 }
0x169f   :  { %v2518_v62 = vsel %vm561_vm7, %v2511_v44, %v2517_v58 }
0x16a0   :  { %v2520_v42 = vsel %vm564_vm8, %v2518_v62, 0.0 }
0x16a1   :  { %2521 = vadd.xlane.f32.xlu1 %v2520_v42 }
0x172e   :  { %v2522_v48 = vpop.xlane.xlu1 %2521 }
0x172f   :  { %3102 = vrcp.f32 %v2522_v48 }
0x1739   :  { %v3103_v18 = vpop.eup %3102 }
0x173a   :  { %v2544_v43 = vrot.slane %v3103_v18, %v3334_v13  ;;  %v2528_v45 = vrot.slane %v3103_v18, %v3325_v10  ;;  %v2532_v16 = vrot.slane %v3103_v18, %v3328_v11  ;;  %v2536_v46 = vrot.slane %v3103_v18, %v3331_v12 }
0x173b   :  { %v2540_v60 = vrot.slane %v3103_v18, %v3339_v19  ;;  %v2548_v59 = vrot.slane %v3103_v18, %v3352_v27  ;;  %v2552_v10 = vrot.slane %v3103_v18, %v3427_v33  ;;  %v2556_v11 = vrot.slane %v3103_v18, %v3424_v32 }
0x173c   :  { %v2569_v55 = vmul.f32 %v3097_v37, %v2544_v43  ;;  %v2565_v56 = vmul.f32 %v3087_v9, %v2528_v45  ;;  %v2566_v40 = vmul.f32 %v3089_v34, %v2532_v16  ;;  %v2567_v17 = vmul.f32 %v3093_v63, %v2536_v46 }
0x173d   :  { %v2568_v29 = vmul.f32 %v3095_v0, %v2540_v60  ;;  %v2570_v13 = vmul.f32 %v3099_v47, %v2548_v59  ;;  %v2571_v9 = vmul.f32 %v3101_v51, %v2552_v10  ;;  %v2572_v34 = vmul.f32 %v3922_v7, %v2556_v11 }
0x173e   :  { %2595 = vperm.xlu1 %2947, %v2569_v55   ;;  %2575 = vperm.xlu0 %2946, %v2565_v56  }
0x1742   :  { %2580 = vperm.xlu0 %2946, %v2566_v40  }
0x1746   :  { %2585 = vperm.xlu0 %2946, %v2567_v17  }
0x174a   :  { %2590 = vperm.xlu0 %2946, %v2568_v29  }
0x174e   :  { %2600 = vperm.xlu0 %2946, %v2570_v13  }
0x1752   :  { %2605 = vperm.xlu0 %2946, %v2571_v9  }
0x1756   :  { %2610 = vperm.xlu0 %2946, %v2572_v34  }
0x17bd   :  { %v2596_v12 = vpop.permute.xlu1 %2595  ;;  %v2576_v63 = vpop.permute.xlu0 %2575 }
0x17be   :  { %v2617_v19 = vmul.f32 %v2596_v12, %v4003_v24  ;;  %v2613_v0 = vmul.f32 %v2576_v63, %v4010_v28 }
0x17c0   :  { %v2645_v37 = vrot.slane %v2617_v19, 4  ;;  %v2621_v27 = vrot.slane %v2613_v0, 4 }
0x17c1   :  { %v2581_v38 = vpop.permute.xlu0 %2580 }
0x17c2   :  { %v2646_v47 = vadd.f32 %v2645_v37, %v2617_v19  ;;  %v2622_v21 = vadd.f32 %v2621_v27, %v2613_v0  ;;  %v2614_v33 = vmul.f32 %v2581_v38, %v4011_v14 }
0x17c4   :  { %v2623_v51 = vrot.slane %v2622_v21, 2  ;;  %v2627_v6 = vrot.slane %v2614_v33, 4  ;;  %v2647_v36 = vrot.slane %v2646_v47, 2 }
0x17c5   :  { %v2586_v32 = vpop.permute.xlu0 %2585 }
0x17c6   :  { %v2624_v23 = vadd.f32 %v2623_v51, %v2622_v21  ;;  %v2628_v7 = vadd.f32 %v2627_v6, %v2614_v33  ;;  %v2615_v8 = vmul.f32 %v2586_v32, %v4012_v5  ;;  %v2648_v28 = vadd.f32 %v2647_v36, %v2646_v47 }
0x17c8   :  { %v2625_v49 = vrot.slane %v2624_v23, 1  ;;  %v2629_v4 = vrot.slane %v2628_v7, 2  ;;  %v2633_v24 = vrot.slane %v2615_v8, 4  ;;  %v2649_v35 = vrot.slane %v2648_v28, 1 }
0x17c9   :  { %v2591_v22 = vpop.permute.xlu0 %2590 }
0x17ca   :  { %v2626_v57 = vadd.f32 %v2625_v49, %v2624_v23  ;;  %v2630_v54 = vadd.f32 %v2629_v4, %v2628_v7  ;;  %v2634_v41 = vadd.f32 %v2633_v24, %v2615_v8  ;;  %v2616_v15 = vmul.f32 %v2591_v22, %v3395_v3 }
0x17cb   :  { %v2650_v48 = vadd.f32 %v2649_v35, %v2648_v28 }
0x17cc   :  { %v2631_v61 = vrot.slane %v2630_v54, 1  ;;  %v2635_v14 = vrot.slane %v2634_v41, 2  ;;  %3104 = vtanh.f32 %v2626_v57  ;;  %v2639_v31 = vrot.slane %v2616_v15, 4 }
0x17cd   :  { %v2601_v2 = vpop.permute.xlu0 %2600 }
0x17ce   :  { %v2632_v53 = vadd.f32 %v2631_v61, %v2630_v54  ;;  %v2636_v1 = vadd.f32 %v2635_v14, %v2634_v41  ;;  %v2618_v5 = vmul.f32 %v2601_v2, %v3408_v20  ;;  %v2640_v44 = vadd.f32 %v2639_v31, %v2616_v15 }
0x17d0   :  { %3106 = vtanh.f32 %v2632_v53  ;;  %v2637_v25 = vrot.slane %v2636_v1, 1  ;;  %v2651_v58 = vrot.slane %v2618_v5, 4  ;;  %v2641_v62 = vrot.slane %v2640_v44, 2 }
0x17d1   :  { %v2606_v42 = vpop.permute.xlu0 %2605 }
0x17d2   :  { %v2638_v18 = vadd.f32 %v2637_v25, %v2636_v1  ;;  %v2652_v43 = vadd.f32 %v2651_v58, %v2618_v5  ;;  %v2619_v3 = vmul.f32 %v2606_v42, %v3415_v26  ;;  %v2642_v45 = vadd.f32 %v2641_v62, %v2640_v44 }
0x17d4   :  { %3108 = vtanh.f32 %v2638_v18  ;;  %v2653_v55 = vrot.slane %v2652_v43, 2  ;;  %v2657_v56 = vrot.slane %v2619_v3, 4  ;;  %v2643_v16 = vrot.slane %v2642_v45, 1 }
0x17d5   :  { %v2611_v40 = vpop.permute.xlu0 %2610  ;;  %3110 = vtanh.f32 %v2650_v48 }
0x17d6   :  { %v2654_v46 = vadd.f32 %v2653_v55, %v2652_v43  ;;  %v2658_v20 = vadd.f32 %v2657_v56, %v2619_v3  ;;  %v2620_v17 = vmul.f32 %v2611_v40, %v3420_v30  ;;  %v3105_v60 = vpop.eup %3104  ;;  %v2644_v29 = vadd.f32 %v2643_v16, %v2642_v45 }
0x17d7   :  { %v2677_v9 = vpack.c.bf16 %v3105_v60, %v3105_v60 }
0x17d8   :  { %v2655_v59 = vrot.slane %v2654_v46, 1  ;;  %v2659_v13 = vrot.slane %v2658_v20, 2  ;;  %v2663_v10 = vrot.slane %v2620_v17, 4  ;;  %3112 = vtanh.f32 %v2644_v29 }
0x17d9   :  { %v2693_v37 = vunpack.c.l.b16 %v2677_v9 }
0x17da   :  { %v3107_v11 = vpop.eup %3106  ;;  %v2656_v26 = vadd.f32 %v2655_v59, %v2654_v46  ;;  %v2660_v34 = vadd.f32 %v2659_v13, %v2658_v20  ;;  %v2664_v12 = vadd.f32 %v2663_v10, %v2620_v17 }
0x17db   :  { %v2678_v63 = vpack.c.bf16 %v3107_v11, %v3107_v11 }
0x17dc   :  { %3114 = vtanh.f32 %v2656_v26  ;;  %v2661_v19 = vrot.slane %v2660_v34, 1  ;;  %v2665_v0 = vrot.slane %v2664_v12, 2 }
0x17dd   :  { %v2694_v27 = vunpack.c.l.b16 %v2678_v63 }
0x17de   :  { %v3109_v38 = vpop.eup %3108  ;;  %v2662_v47 = vadd.f32 %v2661_v19, %v2660_v34  ;;  %v2666_v30 = vadd.f32 %v2665_v0, %v2664_v12 }
0x17df   :  { %v2701_v21 = vsel %vm549_vm1, %v2694_v27, %v2693_v37  ;;  %v2679_v33 = vpack.c.bf16 %v3109_v38, %v3109_v38  ;;  %v3111_v51 = vpop.eup %3110 }
0x17e0   :  { %3116 = vtanh.f32 %v2662_v47  ;;  %v2667_v6 = vrot.slane %v2666_v30, 1  ;;  %v2681_v7 = vpack.c.bf16 %v3111_v51, %v3111_v51 }
0x17e1   :  { %v2695_v32 = vunpack.c.l.b16 %v2679_v33 }
0x17e2   :  { %v2668_v36 = vadd.f32 %v2667_v6, %v2666_v30  ;;  %v3113_v23 = vpop.eup %3112  ;;  %v2697_v22 = vunpack.c.l.b16 %v2681_v7 }
0x17e3   :  { %v2702_v8 = vsel %vm551_vm2, %v2695_v32, %v2701_v21  ;;  %v2680_v49 = vpack.c.bf16 %v3113_v23, %v3113_v23 }
0x17e4   :  { %3118 = vtanh.f32 %v2668_v36 }
0x17e5   :  { %v2696_v24 = vunpack.c.l.b16 %v2680_v49 }
0x17e6   :  { %v3115_v4 = vpop.eup %3114 }
0x17e7   :  { %v2682_v28 = vpack.c.bf16 %v3115_v4, %v3115_v4  ;;  %v2703_v57 = vsel %vm553_vm3, %v2696_v24, %v2702_v8  ;;  %vm2774_vm3 = vcmask 23552  }
0x17e8   :  { %v2704_v41 = vsel %vm555_vm4, %v2697_v22, %v2703_v57  ;;  %vm2776_vm4 = vcmask 31744  }
0x17e9   :  { %v2698_v54 = vunpack.c.l.b16 %v2682_v28 }
0x17ea   :  { %v3117_v15 = vpop.eup %3116 }
0x17eb   :  { %v2683_v61 = vpack.c.bf16 %v3117_v15, %v3117_v15  ;;  %v2705_v14 = vsel %vm557_vm5, %v2698_v54, %v2704_v41 }
0x17ed   :  { %v2699_v31 = vunpack.c.l.b16 %v2683_v61 }
0x17ee   :  { %v3119_v2 = vpop.eup %3118 }
0x17ef   :  { %v2684_v35 = vpack.c.bf16 %v3119_v2, %v3119_v2  ;;  %v2706_v53 = vsel %vm559_vm6, %v2699_v31, %v2705_v14 }
0x17f1   :  { %v2700_v1 = vunpack.c.l.b16 %v2684_v35 }
0x17f3   :  { %v2707_v5 = vsel %vm561_vm7, %v2700_v1, %v2706_v53 }
0x17f4   :  { %v2708_v44 = vpack.c.b16 %v2707_v5, %v2707_v5 }
0x17f6   :  { %2931 = vmatmul.mubr.bf16.vlgmr.msra.gmra.mrb[20].mxu0 %v2708_v44 }
0x18c9   :  { %v2744_v25 = vpop.f32.mrb[20].mxu0 }
0x18ca   :  { %v2745_v58 = vadd.f32 %v3854_v50, %v2744_v25  ;;  %v2932_v62 = vpop.f32.mrb[21].mxu0 }
0x18cb   :  { %v2747_v42 = vpop.f32.mrb[22].mxu0 }
0x18cc   :  { %2750 = vmax.xlane.f32.xlu0 %v2745_v58  ;;  %v2933_v48 = vpop.f32.mrb[23].mxu0 }
0x1959   :  { %v2751_v18 = vpop.xlane.xlu0 %2750 }
0x195a   :  { %vm2752_vm1 = vcmp.eq.f32.partialorder %v2745_v58, %v2751_v18 }
0x195b   :  { %v2753_v43 = vsel %vm2752_vm1, %v3362_v39, 128 }
0x195c   :  { %v2755_v3 = vshra.s32 %v2753_v43, 16  ;;  %v2754_v55 = vand.u32 65535, %v2753_v43 }
0x195e   :  { %v2757_v45 = vcvt.s32.f32 %v2755_v3  ;;  %v2756_v56 = vcvt.s32.f32 %v2754_v55 }
0x1960   :  { %2758 = vmin.xlane.f32.xlu1 %v2757_v45 }
0x19ed   :  { %v2759_v16 = vpop.xlane.xlu1 %2758 }
0x19ee   :  { %vm2760_vm2 = vcmp.eq.f32.partialorder %v2757_v45, %v2759_v16  ;;  %v2765_v46 = vcvt.f32.s32 %v2759_v16 }
0x19ef   :  { %v2761_v40 = vsel %vm2760_vm2, %v2756_v56, inf }
0x19f0   :  { %2762 = vmin.xlane.f32.xlu0 %v2761_v40  ;;  %v2766_v50 = vshll.u32 %v2765_v46, 16 }
0x1a7d   :  { %v2763_v20 = vpop.xlane.xlu0 %2762 }
0x1a7e   :  { %v2764_v17 = vcvt.f32.s32 %v2763_v20 }
0x1a80   :  { %v2767_v60 = vadd.s32 %v2766_v50, %v2764_v17 }
0x1a82   :  { %vm2768_vm5 = vcmp.lt.s32.totalorder %v2767_v60, 127 }
0x1a83   :  { %v2769_v29 = vsel %vm2768_vm5, %v2767_v60, 127 }
0x1a84   :  { %v2775_v39 = vsel %vm2774_vm3, %v3861_v52, %v2769_v29 }
0x1a85   :  { %2777 = vst.msk [vmem:[%s3976_s5] sm:$0xff] %vm2776_vm4, %v2775_v39 }
0x1a86   :  { %2782 = vsyncpa [#allocation3], 1 }
0x1a87   :  { %2783 = vsyncpa [#allocation5], 1 }
0x1a88   :  { %2784 = vsyncpa [#allocation8], 1 }

// kernel: tpu_custom_call.1
= control target key start
LH: loop header
LB: loop body
LE: loop exit
PB: predicated region body
PF: predicated region fallthrough
CT: control target
= control target key end

     0   :  { %10 = vsyncpa [#allocation3], 0  ;;  %s3971_s0 = inlined_call_operand.hbm [shape: bf16[8,8,128], index: 0, kind: input, shape index: {}]   ;;  %s3972_s1 = inlined_call_operand.hbm [shape: f32[8,8], index: 1, kind: input, shape index: {}]   ;;  %s3973_s2 = inlined_call_operand.hbm [shape: bf16[128,256], index: 2, kind: input, shape index: {}]   ;;  %s3974_s3 = inlined_call_operand.hbm [shape: bf16[128,128], index: 3, kind: input, shape index: {}]   ;;  %s3975_s4 = inlined_call_operand.vmem [shape: f32[1,128], index: 4, kind: input, shape index: {}]   ;;  %s3976_s5 = inlined_call_operand.vmem [shape: s32[8,4], index: 5, kind: output, shape index: {}]  }
   0x1   :  { %11 = vsyncpa [#allocation5], 0 }
   0x2   :  { %12 = vsyncpa [#allocation8], 0  ;;  %s3215_s18 = smov [#allocation4]   ;;  %s3216_s20 = smov [#allocation2]  }
   0x3   :  { %s31_s19 = sshll.u32 %s3215_s18, 4  ;;  %s18_s21 = sshll.u32 %s3216_s20, 4  ;;  %s32_s19 = int_to_ptr.vmem [resolvable:$true] %s31_s19  ;;  %s3257_s21 = int_to_ptr.vmem [resolvable:$true] %s18_s21 }
   0x4   :  { %s3121_s24 = scalar_lea.hbm %s3972_s1, 128 }
   0x5   :  { %p3122_p0 = scmp.ne.s32.totalorder %s3972_s1, %s3121_s24  ;;  %p3125_p1 = scmp.lt.u32.totalorder %s3121_s24, %s3972_s1 }
   0x7   :  { %p3127_p2 = pnand %p3125_p1, %p3122_p0 }
   0x9   :  { %3130 = shalt.err (!%p3127_p2)
}
   0xa   :  { %s3131_s29 = scalar_lea.vmem %s32_s19, 128  ;;  %p3136_p4 = scmp.lt.s32.totalorder %s32_s19, %s32_s19 }
   0xb   :  { %p3132_p3 = scmp.ne.s32.totalorder %s32_s19, %s3131_s29  ;;  %p3137_p5 = scmp.lt.s32.totalorder %s3131_s29, %s3131_s29 }
   0xd   :  { %p3138_p6 = por %p3137_p5, %p3136_p4 }
   0xf   :  { %p3139_p7 = pnand %p3138_p6, %p3132_p3 }
  0x11   :  { %3142 = shalt.err (!%p3139_p7)
}
  0x12   :  { %34 = dma.hbm_to_vmem [thread:$0]  %s3972_s1, 128, %s32_s19, [#allocation5]  }
  0x13   :  { %s3143_s9 = scalar_lea.hbm %s3971_s0, 512 }
  0x14   :  { %p3144_p8 = scmp.ne.s32.totalorder %s3971_s0, %s3143_s9  ;;  %p3147_p9 = scmp.lt.u32.totalorder %s3143_s9, %s3971_s0 }
  0x16   :  { %p3149_p10 = pnand %p3147_p9, %p3144_p8 }
  0x18   :  { %3152 = shalt.err (!%p3149_p10)
}
  0x19   :  { %s3153_s14 = scalar_lea.vmem %s3257_s21, 512  ;;  %p3158_p12 = scmp.lt.s32.totalorder %s3257_s21, %s3257_s21 }
  0x1a   :  { %p3154_p11 = scmp.ne.s32.totalorder %s3257_s21, %s3153_s14  ;;  %p3159_p13 = scmp.lt.s32.totalorder %s3153_s14, %s3153_s14 }
  0x1c   :  { %p3160_p0 = por %p3159_p13, %p3158_p12 }
  0x1e   :  { %p3161_p1 = pnand %p3160_p0, %p3154_p11 }
  0x20   :  { %3164 = shalt.err (!%p3161_p1)
}
  0x21   :  { %s3217_s1 = smov 64   ;;  %s3218_s15 = smov 4  }
  0x22   :  { %24 = dma.hbm_to_vmem [thread:$0]  %s3971_s0, 512, %s3257_s21, [#allocation3], %s3217_s1, %s3217_s1, %s3218_s15  }
  0x23   :  { %s3219_s18 = smov [#allocation6]   ;;  %s3165_s23 = scalar_lea.hbm %s3973_s2, 2048 }
  0x24   :  { %s40_s19 = sshll.u32 %s3219_s18, 4  ;;  %p3166_p2 = scmp.ne.s32.totalorder %s3973_s2, %s3165_s23  ;;  %s41_s19 = int_to_ptr.vmem [resolvable:$true] %s40_s19 }
  0x25   :  { %p3169_p3 = scmp.lt.u32.totalorder %s3165_s23, %s3973_s2 }
  0x27   :  { %p3171_p4 = pnand %p3169_p3, %p3166_p2 }
  0x29   :  { %3174 = shalt.err (!%p3171_p4)
}
  0x2a   :  { %s3175_s28 = scalar_lea.vmem %s41_s19, 2048  ;;  %p3180_p6 = scmp.lt.s32.totalorder %s41_s19, %s41_s19 }
  0x2b   :  { %p3176_p5 = scmp.ne.s32.totalorder %s41_s19, %s3175_s28  ;;  %p3181_p7 = scmp.lt.s32.totalorder %s3175_s28, %s3175_s28 }
  0x2d   :  { %p3182_p8 = por %p3181_p7, %p3180_p6 }
  0x2f   :  { %p3183_p9 = pnand %p3182_p8, %p3176_p5 }
  0x31   :  { %3186 = shalt.err (!%p3183_p9)
}
  0x32   :  { %s3220_s0 = smov 128   ;;  %s3221_s21 = smov 8  }
  0x33   :  { %46 = dma.hbm_to_vmem [thread:$0]  %s3973_s2, 2048, %s41_s19, [#allocation5], %s3220_s0, %s3220_s0, %s3221_s21  }
  0x34   :  { %s3222_s6 = smov [#allocation7]   ;;  %s3187_s10 = scalar_lea.hbm %s3974_s3, 1024 }
  0x35   :  { %s52_s7 = sshll.u32 %s3222_s6, 4  ;;  %p3188_p10 = scmp.ne.s32.totalorder %s3974_s3, %s3187_s10  ;;  %s53_s7 = int_to_ptr.vmem [resolvable:$true] %s52_s7 }
  0x36   :  { %p3191_p11 = scmp.lt.u32.totalorder %s3187_s10, %s3974_s3 }
  0x38   :  { %p3193_p12 = pnand %p3191_p11, %p3188_p10 }
  0x3a   :  { %3196 = shalt.err (!%p3193_p12)
}
  0x3b   :  { %s3197_s16 = scalar_lea.vmem %s53_s7, 1024  ;;  %p3202_p0 = scmp.lt.s32.totalorder %s53_s7, %s53_s7 }
  0x3c   :  { %p3198_p13 = scmp.ne.s32.totalorder %s53_s7, %s3197_s16  ;;  %p3203_p1 = scmp.lt.s32.totalorder %s3197_s16, %s3197_s16 }
  0x3e   :  { %p3204_p2 = por %p3203_p1, %p3202_p0 }
  0x40   :  { %p3205_p3 = pnand %p3204_p2, %p3198_p13 }
  0x42   :  { %3208 = shalt.err (!%p3205_p3)
}
  0x43   :  { %58 = dma.hbm_to_vmem [thread:$0]  %s3974_s3, 1024, %s53_s7, [#allocation8], %s3217_s1, %s3217_s1, %s3218_s15  }
  0x44   :  { %3209 = dma.done.wait [#allocation3], 512  }
  0x45   :  { %3210 = vsyncadd [#allocation3], 4294966784 }
  0x46   :  { %3211 = dma.done.wait [#allocation5], 2176  }
  0x47   :  { %3212 = vsyncadd [#allocation5], 4294965120 }
  0x48   :  { %3213 = dma.done.wait [#allocation8], 1024  }
  0x49   :  { %3214 = vsyncadd [#allocation8], 4294966272  ;;  %v3223_v0 = vmov 0   ;;  %v2948_v1 = vld [vmem:[#allocation6 + $0x4] ss:$8 sps:$4 sm:$0xff]   ;;  %v293_v4 = vlaneseq  ;;  %v3336_v18 = vld [vmem:[#allocation4] sm:$0xff] }
  0x4a   :  { %252 = vmatprep.mubr.bf16.mxu0 %v3223_v0  ;;  %2946 = vset.pattern.permute.xlu0 %v3223_v0  ;;  %v2950_v2 = vld [vmem:[#allocation6] ss:$8 sps:$4 sm:$0xff]   ;;  %v2951_v3 = vld [vmem:[#allocation6 + $0x14] ss:$8 sps:$4 sm:$0xff]   ;;  %v2953_v5 = vld [vmem:[#allocation6 + $0x10] ss:$8 sps:$4 sm:$0xff]  }
  0x4b   :  { %2947 = vset.pattern.permute.xlu1 %v3223_v0  ;;  %220 = vmatprep.subr.bf16.mxu0 %v2948_v1  ;;  %v2954_v6 = vld [vmem:[#allocation6 + $0x24] ss:$8 sps:$4 sm:$0xff]   ;;  %v3322_v7 = vshrl.u32 %v293_v4, 7  ;;  %v2956_v8 = vld [vmem:[#allocation6 + $0x20] ss:$8 sps:$4 sm:$0xff]   ;;  %v2972_v32 = vld [vmem:[#allocation2] sm:$0xff]  }
  0x4c   :  { %221 = vmatpush1.bf16.msra.mxu0 %v2950_v2  ;;  %v2957_v9 = vld [vmem:[#allocation6 + $0x34] ss:$8 sps:$4 sm:$0xff]   ;;  %v2959_v14 = vld [vmem:[#allocation6 + $0x30] ss:$8 sps:$4 sm:$0xff]   ;;  %v2960_v15 = vld [vmem:[#allocation6 + $0x44] ss:$8 sps:$4 sm:$0xff]  }
  0x4d   :  { %222 = vmatprep.subr.bf16.mxu0 %v2951_v3  ;;  %v3325_v10 = vsub.s32 0, %v3322_v7  ;;  %v3328_v11 = vsub.s32 1, %v3322_v7  ;;  %v3331_v12 = vsub.s32 2, %v3322_v7  ;;  %v3334_v13 = vsub.s32 4, %v3322_v7  ;;  %v2962_v16 = vld [vmem:[#allocation6 + $0x40] ss:$8 sps:$4 sm:$0xff]  }
  0x4e   :  { %v2963_v17 = vld [vmem:[#allocation6 + $0x54] ss:$8 sps:$4 sm:$0xff]   ;;  %v3339_v19 = vsub.s32 3, %v3322_v7  ;;  %v2965_v22 = vld [vmem:[#allocation6 + $0x50] ss:$8 sps:$4 sm:$0xff]   ;;  %v3352_v27 = vsub.s32 5, %v3322_v7 }
  0x4f   :  { %v423_v20 = vrot.slane %v3336_v18, %v3328_v11  ;;  %v416_v21 = vrot.slane %v3336_v18, %v3325_v10  ;;  %v430_v23 = vrot.slane %v3336_v18, %v3331_v12  ;;  %v444_v24 = vrot.slane %v3336_v18, %v3334_v13  ;;  %v2966_v25 = vld [vmem:[#allocation6 + $0x64] ss:$8 sps:$4 sm:$0xff]   ;;  %v2968_v28 = vld [vmem:[#allocation6 + $0x60] ss:$8 sps:$4 sm:$0xff]   ;;  %v2969_v29 = vld [vmem:[#allocation6 + $0x74] ss:$8 sps:$4 sm:$0xff]  }
  0x50   :  { %223 = vmatpush1.bf16.msra.mxu0 %v2953_v5  ;;  %v437_v26 = vrot.slane %v3336_v18, %v3339_v19  ;;  %v451_v30 = vrot.slane %v3336_v18, %v3352_v27  ;;  %v2971_v31 = vld [vmem:[#allocation6 + $0x70] ss:$8 sps:$4 sm:$0xff]   ;;  %v2973_v33 = vld [vmem:[#allocation2 + $0x8] sm:$0xff]   ;;  %v2974_v34 = vld [vmem:[#allocation2 + $0x10] sm:$0xff]   ;;  %v3977_v36 = vmov 0.0   ;;  %v3362_v39 = vand.u32 127, %v293_v4 }
  0x51   :  { %224 = vmatprep.subr.bf16.mxu0 %v2954_v6  ;;  %425 = vbcast.lane.b32.xlu1 %v423_v20, 256  ;;  %v2975_v35 = vld [vmem:[#allocation2 + $0x18] sm:$0xff]   ;;  %v3225_v37 = vmov 1966171168   ;;  %vm549_vm1 = vcmask 1041409   ;;  %vm551_vm2 = vcmask 1042434  }
  0x52   :  { %418 = vbcast.lane.b32.xlu0 %v416_v21, 256  ;;  %2854 = vmatprep.subr.bf16.mxu1 %v3977_v36  ;;  %v301_v38 = vunpack.c.l.s4 %v3225_v37  ;;  %vm295_vm0 = vcmp.eq.s32.totalorder %v3362_v39, 1  ;;  %vm553_vm3 = vcmask 1043459   ;;  %vm555_vm4 = vcmask 1044484  }
  0x53   :  { %v2805_v42 = vsel %vm295_vm0, 1.0, %v3977_v36  ;;  %vm557_vm5 = vcmask 1045509   ;;  %vm559_vm6 = vcmask 1046534   ;;  %vm561_vm7 = vcmask 1047559  }
  0x54   :  { %225 = vmatpush1.bf16.msra.mxu0 %v2956_v8  ;;  %v302_v40 = vunpack.c.0.s8 %v301_v38  ;;  %v299_v48 = vcombine.high %v2805_v42, %v2805_v42  ;;  %vm564_vm8 = vcmask 64512   ;;  %vm3226_vm9 = vmmov 0  }
  0x55   :  { %226 = vmatprep.subr.bf16.mxu0 %v2957_v9  ;;  %432 = vbcast.lane.b32.xlu1 %v430_v23, 256 }
  0x56   :  { %446 = vbcast.lane.b32.xlu0 %v444_v24, 256  ;;  %v3366_v41 = vsub.s32 %v302_v40, %v3322_v7  ;;  %2870 = vmatprep.mubr.msk.bf16.mxu1 %vm3226_vm9, %v3977_v36 }
  0x58   :  { %227 = vmatpush1.bf16.msra.mxu0 %v2959_v14  ;;  %v306_v43 = vrot.slane %v2805_v42, %v3366_v41  ;;  %v313_v56 = vrot.slane %v299_v48, %v3366_v41 }
  0x59   :  { %228 = vmatprep.subr.bf16.mxu0 %v2960_v15  ;;  %439 = vbcast.lane.b32.xlu1 %v437_v26, 256 }
  0x5a   :  { %v322_v44 = vrot.slane %v306_v43, %v3366_v41  ;;  %v314_v45 = vcombine.high %v306_v43, %v306_v43  ;;  %v315_v60 = vcombine.high %v313_v56, %v313_v56  ;;  %v329_v1 = vrot.slane %v313_v56, %v3366_v41 }
  0x5c   :  { %229 = vmatpush1.bf16.msra.mxu0 %v2962_v16  ;;  %v351_v46 = vrot.slane %v322_v44, %v3325_v10  ;;  %v336_v47 = vrot.slane %v314_v45, %v3366_v41  ;;  %v344_v53 = vcombine.high %v322_v44, %v322_v44  ;;  %v343_v4 = vrot.slane %v315_v60, %v3366_v41 }
  0x5d   :  { %230 = vmatprep.subr.bf16.mxu0 %v2963_v17  ;;  %453 = vbcast.lane.b32.xlu1 %v451_v30, 256  ;;  %v367_v6 = vrot.slane %v329_v1, %v3325_v10  ;;  %v345_v16 = vcombine.high %v329_v1, %v329_v1 }
  0x5e   :  { %v355_v52 = vrot.slane %v336_v47, %v3325_v10  ;;  %v359_v58 = vrot.slane %v344_v53, %v3325_v10  ;;  %v346_v59 = vcombine.high %v336_v47, %v336_v47  ;;  %v371_v8 = vrot.slane %v343_v4, %v3325_v10 }
  0x5f   :  { %v375_v23 = vrot.slane %v345_v16, %v3325_v10  ;;  %v3480_v16 = vsub.s32 %v3362_v39, %v3322_v7 }
  0x60   :  { %231 = vmatpush1.bf16.msra.mxu0 %v2965_v22  ;;  %v347_v22 = vcombine.high %v343_v4, %v343_v4 }
  0x61   :  { %232 = vmatprep.subr.bf16.mxu0 %v2966_v25 }
  0x62   :  { %v379_v24 = vrot.slane %v347_v22, %v3325_v10 }
  0x64   :  { %233 = vmatpush1.bf16.msra.mxu0 %v2968_v28 }
  0x65   :  { %234 = vmatprep.subr.bf16.mxu0 %v2969_v29 }
  0x68   :  { %235 = vmatpush1.bf16.msra.mxu0 %v2971_v31 }
  0x69   :  { %2874 = vmatprep.subr.bf16.mxu0 %v3977_v36 }
  0x6b   :  { %253 = vmatmul.mubr.bf16.vlgmr.msra.gmra.mrb[0].mxu0 %v2972_v32  ;;  %v3424_v32 = vsub.s32 7, %v3322_v7 }
  0x6c   :  { %262 = vmatprep.mubr.bf16.mxu0 %v3223_v0 }
  0x73   :  { %263 = vmatmul.mubr.bf16.gmra.mrb[4].mxu0 %v2973_v33  ;;  %v3427_v33 = vsub.s32 6, %v3322_v7 }
  0x74   :  { %272 = vmatprep.mubr.bf16.mxu0 %v3223_v0 }
  0x7b   :  { %273 = vmatmul.mubr.bf16.gmra.mrb[8].mxu0 %v2974_v34  ;;  %v465_v34 = vrot.slane %v3336_v18, %v3424_v32 }
  0x7c   :  { %282 = vmatprep.mubr.bf16.mxu0 %v3223_v0  ;;  %v363_v0 = vrot.slane %v346_v59, %v3325_v10 }
  0x83   :  { %283 = vmatmul.mubr.bf16.gmra.mrb[12].mxu0 %v2975_v35  ;;  %v458_v35 = vrot.slane %v3336_v18, %v3427_v33 }
  0x84   :  { %2890 = vmatprep.mubr.msk.bf16.mxu0 %vm3226_vm9, %v3977_v36 }
  0xc3   :  { %v3433_v37 = vpop.permute.xlu1 %425 }
  0xc4   :  { %v3435_v38 = vpop.permute.xlu0 %418 }
  0xc7   :  { %v3437_v40 = vpop.permute.xlu1 %432 }
  0xc8   :  { %v3439_v42 = vpop.permute.xlu0 %446 }
  0xcb   :  { %v3441_v43 = vpop.permute.xlu1 %439 }
 0x13e   :  { %v3373_v49 = vpop.f32.mrb[0].mxu0 }
 0x13f   :  { %v3375_v50 = vpop.f32.mrb[1].mxu0  ;;  %v388_v51 = vmul.f32 %v351_v46, %v3373_v49  ;;  %v3447_v46 = vpop.permute.xlu1 %453 }
 0x140   :  { %3994 = vst [vmem:[#allocation12_spill] sm:$0xff] %v3375_v50  ;;  %v3379_v54 = vpop.f32.mrb[2].mxu0  ;;  %3998 = vst [vmem:[#allocation16_spill] sm:$0xff] %v3447_v46 }
 0x141   :  { %396 = vadd.xlane.f32.xlu0 %v388_v51  ;;  %v3381_v55 = vpop.f32.mrb[3].mxu0  ;;  %v389_v57 = vmul.f32 %v355_v52, %v3379_v54 }
 0x142   :  { %3995 = vst [vmem:[#allocation13_spill] sm:$0xff] %v3381_v55 }
 0x145   :  { %398 = vadd.xlane.f32.xlu0 %v389_v57 }
 0x146   :  { %v3386_v61 = vpop.f32.mrb[4].mxu0 }
 0x147   :  { %v3388_v62 = vpop.f32.mrb[5].mxu0  ;;  %v390_v63 = vmul.f32 %v359_v58, %v3386_v61 }
 0x148   :  { %3996 = vst [vmem:[#allocation14_spill] sm:$0xff] %v3388_v62  ;;  %v3393_v2 = vpop.f32.mrb[6].mxu0 }
 0x149   :  { %400 = vadd.xlane.f32.xlu1 %v390_v63  ;;  %v3395_v3 = vpop.f32.mrb[7].mxu0  ;;  %v391_v5 = vmul.f32 %v363_v0, %v3393_v2 }
 0x14d   :  { %402 = vadd.xlane.f32.xlu1 %v391_v5 }
 0x14e   :  { %v3401_v9 = vpop.f32.mrb[8].mxu0 }
 0x14f   :  { %v3403_v14 = vpop.f32.mrb[9].mxu0  ;;  %v392_v15 = vmul.f32 %v367_v6, %v3401_v9 }
 0x150   :  { %3997 = vst [vmem:[#allocation15_spill] sm:$0xff] %v3403_v14  ;;  %v3406_v17 = vpop.f32.mrb[10].mxu0 }
 0x151   :  { %404 = vadd.xlane.f32.xlu0 %v392_v15  ;;  %v3408_v20 = vpop.f32.mrb[11].mxu0  ;;  %v393_v21 = vmul.f32 %v371_v8, %v3406_v17 }
 0x153   :  { %406 = vadd.xlane.f32.xlu1 %v393_v21 }
 0x156   :  { %v3413_v25 = vpop.f32.mrb[12].mxu0 }
 0x157   :  { %v3415_v26 = vpop.f32.mrb[13].mxu0  ;;  %v394_v28 = vmul.f32 %v375_v23, %v3413_v25 }
 0x158   :  { %v3418_v29 = vpop.f32.mrb[14].mxu0 }
 0x159   :  { %408 = vadd.xlane.f32.xlu0 %v394_v28  ;;  %v3420_v30 = vpop.f32.mrb[15].mxu0  ;;  %v395_v31 = vmul.f32 %v379_v24, %v3418_v29 }
 0x15b   :  { %410 = vadd.xlane.f32.xlu1 %v395_v31 }
 0x16c   :  { %467 = vbcast.lane.b32.xlu1 %v465_v34, 256 }
 0x16f   :  { %460 = vbcast.lane.b32.xlu0 %v458_v35, 256 }
 0x1ce   :  { %v397_v44 = vpop.xlane.xlu0 %396 }
 0x1cf   :  { %v3444_v45 = vadd.f32 %v3435_v38, %v397_v44 }
 0x1d1   :  { %494 = vperm.xlu0 %2946, %v3444_v45  }
 0x1d2   :  { %v399_v18 = vpop.xlane.xlu0 %398 }
 0x1d3   :  { %v478_v47 = vadd.f32 %v3433_v37, %v399_v18 }
 0x1d5   :  { %497 = vperm.xlu1 %2947, %v478_v47  }
 0x1d6   :  { %v401_v48 = vpop.xlane.xlu1 %400 }
 0x1d7   :  { %v3451_v51 = vadd.f32 %v3437_v40, %v401_v48 }
 0x1d9   :  { %500 = vperm.xlu1 %2947, %v3451_v51  }
 0x1da   :  { %v403_v52 = vpop.xlane.xlu1 %402 }
 0x1db   :  { %v3455_v53 = vadd.f32 %v3441_v43, %v403_v52 }
 0x1dd   :  { %503 = vperm.xlu0 %2946, %v3455_v53  }
 0x1de   :  { %v405_v56 = vpop.xlane.xlu0 %404 }
 0x1df   :  { %v3459_v57 = vadd.f32 %v3439_v42, %v405_v56 }
 0x1e0   :  { %v407_v58 = vpop.xlane.xlu1 %406 }
 0x1e1   :  { %v3462_v59 = vadd.f32 %v3447_v46, %v407_v58  ;;  %506 = vperm.xlu1 %2947, %v3459_v57  }
 0x1e3   :  { %509 = vperm.xlu0 %2946, %v3462_v59  }
 0x1e6   :  { %v409_v60 = vpop.xlane.xlu0 %408 }
 0x1e8   :  { %v411_v63 = vpop.xlane.xlu1 %410 }
 0x1ea   :  { %v3466_v0 = vpop.permute.xlu0 %460 }
 0x1eb   :  { %3999 = vst [vmem:[#allocation17_spill] sm:$0xff] %v3466_v0  ;;  %v3469_v1 = vadd.f32 %v3466_v0, %v409_v60 }
 0x1ec   :  { %v3471_v4 = vpop.permute.xlu1 %467 }
 0x1ed   :  { %4000 = vst [vmem:[#allocation18_spill] sm:$0xff] %v3471_v4  ;;  %512 = vperm.xlu1 %2947, %v3469_v1   ;;  %v3475_v5 = vadd.f32 %v3471_v4, %v411_v63 }
 0x1ef   :  { %515 = vperm.xlu0 %2946, %v3475_v5  }
 0x250   :  { %v495_v8 = vpop.permute.xlu0 %494 }
 0x251   :  { %v520_v28 = vrot.slane %v495_v8, %v3480_v16 }
 0x254   :  { %v498_v6 = vpop.permute.xlu1 %497 }
 0x255   :  { %v524_v22 = vrot.slane %v498_v6, %v3480_v16 }
 0x257   :  { %v550_v44 = vsel %vm549_vm1, %v524_v22, %v520_v28 }
 0x258   :  { %v501_v15 = vpop.permute.xlu1 %500 }
 0x259   :  { %v528_v24 = vrot.slane %v501_v15, %v3480_v16 }
 0x25b   :  { %v552_v7 = vsel %vm551_vm2, %v528_v24, %v550_v44 }
 0x25c   :  { %v504_v21 = vpop.permute.xlu0 %503 }
 0x25d   :  { %v532_v31 = vrot.slane %v504_v21, %v3480_v16 }
 0x25f   :  { %v554_v18 = vsel %vm553_vm3, %v532_v31, %v552_v7 }
 0x260   :  { %v507_v23 = vpop.permute.xlu1 %506 }
 0x261   :  { %v536_v34 = vrot.slane %v507_v23, %v3480_v16 }
 0x262   :  { %v510_v35 = vpop.permute.xlu0 %509 }
 0x263   :  { %v540_v48 = vrot.slane %v510_v35, %v3480_v16  ;;  %v556_v52 = vsel %vm555_vm4, %v536_v34, %v554_v18 }
 0x265   :  { %v558_v63 = vsel %vm557_vm5, %v540_v48, %v556_v52 }
 0x26c   :  { %v513_v56 = vpop.permute.xlu1 %512 }
 0x26d   :  { %v544_v58 = vrot.slane %v513_v56, %v3480_v16 }
 0x26e   :  { %v516_v60 = vpop.permute.xlu0 %515 }
 0x26f   :  { %v548_v6 = vrot.slane %v516_v60, %v3480_v16  ;;  %v560_v8 = vsel %vm559_vm6, %v544_v58, %v558_v63 }
 0x271   :  { %v562_v15 = vsel %vm561_vm7, %v548_v6, %v560_v8 }
 0x272   :  { %v565_v21 = vsel %vm564_vm8, %v562_v15, -inf }
 0x273   :  { %566 = vmax.xlane.f32.xlu1 %v565_v21 }
 0x300   :  { %v567_v22 = vpop.xlane.xlu1 %566 }
 0x301   :  { %v572_v23 = vrot.slane %v567_v22, %v3325_v10  ;;  %v576_v24 = vrot.slane %v567_v22, %v3328_v11  ;;  %v580_v28 = vrot.slane %v567_v22, %v3331_v12  ;;  %v584_v44 = vrot.slane %v567_v22, %v3339_v19 }
 0x302   :  { %v588_v48 = vrot.slane %v567_v22, %v3334_v13  ;;  %v592_v58 = vrot.slane %v567_v22, %v3352_v27  ;;  %v596_v63 = vrot.slane %v567_v22, %v3427_v33  ;;  %v600_v15 = vrot.slane %v567_v22, %v3424_v32 }
 0x303   :  { %v609_v31 = vsub.f32 %v3444_v45, %v572_v23  ;;  %v610_v34 = vsub.f32 %v478_v47, %v576_v24  ;;  %v611_v18 = vsub.f32 %v3451_v51, %v580_v28  ;;  %v612_v56 = vsub.f32 %v3455_v53, %v584_v44 }
 0x304   :  { %v613_v45 = vsub.f32 %v3459_v57, %v588_v48  ;;  %v614_v51 = vsub.f32 %v3462_v59, %v592_v58  ;;  %v615_v21 = vsub.f32 %v3469_v1, %v596_v63  ;;  %v616_v24 = vsub.f32 %v3475_v5, %v600_v15 }
 0x305   :  { %v617_v35 = vmul.f32 1.442695, %v609_v31  ;;  %v619_v7 = vmul.f32 1.442695, %v610_v34  ;;  %v621_v52 = vmul.f32 1.442695, %v611_v18 }
 0x306   :  { %v623_v60 = vmul.f32 1.442695, %v612_v56  ;;  %v625_v6 = vmul.f32 1.442695, %v613_v45  ;;  %v627_v53 = vmul.f32 1.442695, %v614_v51 }
 0x307   :  { %2984 = vpow2.f32 %v617_v35  ;;  %v629_v57 = vmul.f32 1.442695, %v615_v21  ;;  %v631_v31 = vmul.f32 1.442695, %v616_v24 }
 0x308   :  { %2986 = vpow2.f32 %v619_v7 }
 0x309   :  { %2988 = vpow2.f32 %v621_v52 }
 0x30a   :  { %2990 = vpow2.f32 %v623_v60 }
 0x30b   :  { %2992 = vpow2.f32 %v625_v6 }
 0x30c   :  { %2994 = vpow2.f32 %v627_v53 }
 0x30d   :  { %2996 = vpow2.f32 %v629_v57 }
 0x30e   :  { %2998 = vpow2.f32 %v631_v31 }
 0x311   :  { %v2985_v47 = vpop.eup %2984 }
 0x312   :  { %642 = vperm.xlu0 %2946, %v2985_v47   ;;  %v2987_v8 = vpop.eup %2986 }
 0x313   :  { %v2989_v23 = vpop.eup %2988 }
 0x314   :  { %v2991_v28 = vpop.eup %2990 }
 0x315   :  { %v2993_v34 = vpop.eup %2992 }
 0x316   :  { %645 = vperm.xlu0 %2946, %v2987_v8   ;;  %v2995_v59 = vpop.eup %2994 }
 0x317   :  { %v2997_v22 = vpop.eup %2996 }
 0x318   :  { %v2999_v35 = vpop.eup %2998 }
 0x31a   :  { %648 = vperm.xlu0 %2946, %v2989_v23  }
 0x31e   :  { %651 = vperm.xlu0 %2946, %v2991_v28  }
 0x322   :  { %654 = vperm.xlu0 %2946, %v2993_v34  }
 0x326   :  { %657 = vperm.xlu0 %2946, %v2995_v59  }
 0x32a   :  { %660 = vperm.xlu0 %2946, %v2997_v22  }
 0x32e   :  { %663 = vperm.xlu0 %2946, %v2999_v35  }
 0x391   :  { %v643_v1 = vpop.permute.xlu0 %642 }
 0x392   :  { %v668_v58 = vrot.slane %v643_v1, %v3480_v16 }
 0x395   :  { %v646_v44 = vpop.permute.xlu0 %645 }
 0x396   :  { %v672_v5 = vrot.slane %v646_v44, %v3480_v16 }
 0x398   :  { %v697_v6 = vsel %vm549_vm1, %v672_v5, %v668_v58 }
 0x399   :  { %v649_v7 = vpop.permute.xlu0 %648 }
 0x39a   :  { %v676_v56 = vrot.slane %v649_v7, %v3480_v16 }
 0x39c   :  { %v698_v15 = vsel %vm551_vm2, %v676_v56, %v697_v6 }
 0x39d   :  { %v652_v18 = vpop.permute.xlu0 %651 }
 0x39e   :  { %v680_v60 = vrot.slane %v652_v18, %v3480_v16 }
 0x3a0   :  { %v699_v21 = vsel %vm553_vm3, %v680_v60, %v698_v15 }
 0x3a1   :  { %v655_v48 = vpop.permute.xlu0 %654 }
 0x3a2   :  { %v684_v45 = vrot.slane %v655_v48, %v3480_v16 }
 0x3a4   :  { %v700_v57 = vsel %vm555_vm4, %v684_v45, %v699_v21 }
 0x3a5   :  { %v658_v52 = vpop.permute.xlu0 %657 }
 0x3a6   :  { %v688_v51 = vrot.slane %v658_v52, %v3480_v16 }
 0x3a8   :  { %v701_v1 = vsel %vm557_vm5, %v688_v51, %v700_v57 }
 0x3a9   :  { %v661_v63 = vpop.permute.xlu0 %660 }
 0x3aa   :  { %v692_v53 = vrot.slane %v661_v63, %v3480_v16 }
 0x3ac   :  { %v702_v44 = vsel %vm559_vm6, %v692_v53, %v701_v1  ;;  %v3574_v1 = vld [vmem:[#allocation7 + $0x30] sm:$0xff]  }
 0x3ad   :  { %v664_v24 = vpop.permute.xlu0 %663 }
 0x3ae   :  { %v696_v31 = vrot.slane %v664_v24, %v3480_v16 }
 0x3b0   :  { %v703_v7 = vsel %vm561_vm7, %v696_v31, %v702_v44  ;;  %v3537_v31 = vld [vmem:[#allocation7] sm:$0xff]   ;;  %v3580_v44 = vld [vmem:[#allocation7 + $0x38] sm:$0xff]  }
 0x3b1   :  { %v705_v18 = vsel %vm564_vm8, %v703_v7, 0.0  ;;  %2855 = vmatpush3.bf16.msra.mxu1 %v3537_v31  ;;  %2875 = vmatpush3.bf16.msra.mxu0 %v3537_v31 }
 0x3b2   :  { %706 = vadd.xlane.f32.xlu0 %v705_v18  ;;  %2856 = vmatprep.subr.bf16.mxu1 %v3977_v36 }
 0x3b3   :  { %2876 = vmatprep.subr.bf16.mxu0 %v3977_v36 }
 0x43f   :  { %v707_v48 = vpop.xlane.xlu0 %706 }
 0x440   :  { %3000 = vrcp.f32 %v707_v48 }
 0x44a   :  { %v3001_v52 = vpop.eup %3000 }
 0x44b   :  { %v729_v5 = vrot.slane %v3001_v52, %v3334_v13  ;;  %v713_v56 = vrot.slane %v3001_v52, %v3325_v10  ;;  %v717_v45 = vrot.slane %v3001_v52, %v3328_v11  ;;  %v721_v6 = vrot.slane %v3001_v52, %v3331_v12 }
 0x44c   :  { %v725_v15 = vrot.slane %v3001_v52, %v3339_v19  ;;  %v733_v21 = vrot.slane %v3001_v52, %v3352_v27  ;;  %v741_v24 = vrot.slane %v3001_v52, %v3424_v32 }
 0x44d   :  { %v754_v58 = vmul.f32 %v2993_v34, %v729_v5  ;;  %v750_v60 = vmul.f32 %v2985_v47, %v713_v56  ;;  %v751_v63 = vmul.f32 %v2987_v8, %v717_v45  ;;  %v752_v51 = vmul.f32 %v2989_v23, %v721_v6  ;;  %v3543_v23 = vld [vmem:[#allocation7 + $0x8] sm:$0xff]  }
 0x44e   :  { %v753_v53 = vmul.f32 %v2991_v28, %v725_v15  ;;  %v755_v57 = vmul.f32 %v2995_v59, %v733_v21  ;;  %v737_v34 = vrot.slane %v3001_v52, %v3427_v33  ;;  %v757_v8 = vmul.f32 %v2999_v35, %v741_v24  ;;  %2857 = vmatpush3.bf16.msra.mxu1 %v3543_v23  ;;  %v3549_v28 = vld [vmem:[#allocation7 + $0x10] sm:$0xff]   ;;  %v3555_v59 = vld [vmem:[#allocation7 + $0x18] sm:$0xff]   ;;  %v3568_v35 = vld [vmem:[#allocation7 + $0x28] sm:$0xff]  }
 0x44f   :  { %780 = vperm.xlu0 %2946, %v754_v58   ;;  %760 = vperm.xlu1 %2947, %v750_v60  }
 0x450   :  { %v756_v47 = vmul.f32 %v2997_v22, %v737_v34  ;;  %2877 = vmatpush3.bf16.msra.mxu0 %v3543_v23  ;;  %2858 = vmatprep.subr.bf16.mxu1 %v3977_v36  ;;  %v3560_v22 = vld [vmem:[#allocation7 + $0x20] sm:$0xff]  }
 0x451   :  { %2878 = vmatprep.subr.bf16.mxu0 %v3977_v36 }
 0x452   :  { %2859 = vmatpush3.bf16.msra.mxu1 %v3549_v28 }
 0x453   :  { %765 = vperm.xlu1 %2947, %v751_v63   ;;  %2860 = vmatprep.subr.bf16.mxu1 %v3977_v36 }
 0x454   :  { %2879 = vmatpush3.bf16.msra.mxu0 %v3549_v28 }
 0x455   :  { %2880 = vmatprep.subr.bf16.mxu0 %v3977_v36 }
 0x456   :  { %2861 = vmatpush3.bf16.msra.mxu1 %v3555_v59 }
 0x457   :  { %770 = vperm.xlu1 %2947, %v752_v51   ;;  %2862 = vmatprep.subr.bf16.mxu1 %v3977_v36 }
 0x458   :  { %2881 = vmatpush3.bf16.msra.mxu0 %v3555_v59 }
 0x459   :  { %2882 = vmatprep.subr.bf16.mxu0 %v3977_v36 }
 0x45a   :  { %2863 = vmatpush3.bf16.msra.mxu1 %v3560_v22 }
 0x45b   :  { %775 = vperm.xlu1 %2947, %v753_v53   ;;  %2864 = vmatprep.subr.bf16.mxu1 %v3977_v36 }
 0x45c   :  { %2883 = vmatpush3.bf16.msra.mxu0 %v3560_v22 }
 0x45d   :  { %2884 = vmatprep.subr.bf16.mxu0 %v3977_v36 }
 0x45e   :  { %2865 = vmatpush3.bf16.msra.mxu1 %v3568_v35 }
 0x45f   :  { %785 = vperm.xlu1 %2947, %v755_v57   ;;  %2866 = vmatprep.subr.bf16.mxu1 %v3977_v36 }
 0x460   :  { %2885 = vmatpush3.bf16.msra.mxu0 %v3568_v35 }
 0x461   :  { %2886 = vmatprep.subr.bf16.mxu0 %v3977_v36 }
 0x462   :  { %2867 = vmatpush3.bf16.msra.mxu1 %v3574_v1 }
 0x463   :  { %790 = vperm.xlu1 %2947, %v756_v47   ;;  %2868 = vmatprep.subr.bf16.mxu1 %v3977_v36 }
 0x464   :  { %2887 = vmatpush3.bf16.msra.mxu0 %v3574_v1 }
 0x465   :  { %2888 = vmatprep.subr.bf16.mxu0 %v3977_v36 }
 0x466   :  { %2869 = vmatpush3.bf16.msra.mxu1 %v3580_v44 }
 0x467   :  { %795 = vperm.xlu1 %2947, %v757_v8   ;;  %2894 = vmatprep.subr.bf16.mxu1 %v3977_v36 }
 0x468   :  { %2889 = vmatpush3.bf16.msra.mxu0 %v3580_v44 }
 0x469   :  { %2914 = vmatprep.subr.bf16.mxu0 %v3977_v36 }
 0x4ce   :  { %v781_v7 = vpop.permute.xlu0 %780  ;;  %v761_v18 = vpop.permute.xlu1 %760 }
 0x4cf   :  { %v802_v48 = vmul.f32 %v781_v7, %v3403_v14  ;;  %v798_v52 = vmul.f32 %v761_v18, %v3375_v50 }
 0x4d1   :  { %v830_v5 = vrot.slane %v802_v48, 4  ;;  %v806_v56 = vrot.slane %v798_v52, 4 }
 0x4d2   :  { %v766_v58 = vpop.permute.xlu1 %765 }
 0x4d3   :  { %v831_v60 = vadd.f32 %v830_v5, %v802_v48  ;;  %v807_v45 = vadd.f32 %v806_v56, %v798_v52  ;;  %v799_v63 = vmul.f32 %v766_v58, %v3381_v55 }
 0x4d5   :  { %v808_v6 = vrot.slane %v807_v45, 2  ;;  %v812_v51 = vrot.slane %v799_v63, 4  ;;  %v832_v53 = vrot.slane %v831_v60, 2 }
 0x4d6   :  { %v771_v15 = vpop.permute.xlu1 %770 }
 0x4d7   :  { %v809_v21 = vadd.f32 %v808_v6, %v807_v45  ;;  %v813_v57 = vadd.f32 %v812_v51, %v799_v63  ;;  %v800_v34 = vmul.f32 %v771_v15, %v3388_v62  ;;  %v833_v18 = vadd.f32 %v832_v53, %v831_v60 }
 0x4d9   :  { %v810_v47 = vrot.slane %v809_v21, 1  ;;  %v814_v24 = vrot.slane %v813_v57, 2  ;;  %v818_v8 = vrot.slane %v800_v34, 4  ;;  %v834_v55 = vrot.slane %v833_v18, 1 }
 0x4da   :  { %v776_v7 = vpop.permute.xlu1 %775 }
 0x4db   :  { %v811_v36 = vadd.f32 %v810_v47, %v809_v21  ;;  %v815_v50 = vadd.f32 %v814_v24, %v813_v57  ;;  %v819_v14 = vadd.f32 %v818_v8, %v800_v34  ;;  %v801_v48 = vmul.f32 %v776_v7, %v3395_v3 }
 0x4dc   :  { %v835_v21 = vadd.f32 %v834_v55, %v833_v18 }
 0x4dd   :  { %v816_v52 = vrot.slane %v815_v50, 1  ;;  %v820_v5 = vrot.slane %v819_v14, 2  ;;  %3002 = vtanh.f32 %v811_v36  ;;  %v824_v56 = vrot.slane %v801_v48, 4 }
 0x4de   :  { %v786_v58 = vpop.permute.xlu1 %785 }
 0x4df   :  { %v817_v45 = vadd.f32 %v816_v52, %v815_v50  ;;  %v821_v63 = vadd.f32 %v820_v5, %v819_v14  ;;  %v803_v6 = vmul.f32 %v786_v58, %v3408_v20  ;;  %v825_v51 = vadd.f32 %v824_v56, %v801_v48 }
 0x4e1   :  { %3004 = vtanh.f32 %v817_v45  ;;  %v822_v15 = vrot.slane %v821_v63, 1  ;;  %v836_v62 = vrot.slane %v803_v6, 4  ;;  %v826_v60 = vrot.slane %v825_v51, 2 }
 0x4e2   :  { %v791_v53 = vpop.permute.xlu1 %790 }
 0x4e3   :  { %v823_v57 = vadd.f32 %v822_v15, %v821_v63  ;;  %v837_v34 = vadd.f32 %v836_v62, %v803_v6  ;;  %v804_v47 = vmul.f32 %v791_v53, %v3415_v26  ;;  %v827_v24 = vadd.f32 %v826_v60, %v825_v51 }
 0x4e5   :  { %3006 = vtanh.f32 %v823_v57  ;;  %v838_v36 = vrot.slane %v837_v34, 2  ;;  %v842_v8 = vrot.slane %v804_v47, 4  ;;  %v828_v7 = vrot.slane %v827_v24, 1 }
 0x4e6   :  { %v796_v50 = vpop.permute.xlu1 %795  ;;  %3008 = vtanh.f32 %v835_v21 }
 0x4e7   :  { %v839_v14 = vadd.f32 %v838_v36, %v837_v34  ;;  %v843_v52 = vadd.f32 %v842_v8, %v804_v47  ;;  %v805_v48 = vmul.f32 %v796_v50, %v3420_v30  ;;  %v3003_v5 = vpop.eup %3002  ;;  %v829_v56 = vadd.f32 %v828_v7, %v827_v24 }
 0x4e8   :  { %v862_v18 = vpack.c.bf16 %v3003_v5, %v3003_v5 }
 0x4e9   :  { %v840_v58 = vrot.slane %v839_v14, 1  ;;  %v844_v45 = vrot.slane %v843_v52, 2  ;;  %v848_v55 = vrot.slane %v805_v48, 4  ;;  %3010 = vtanh.f32 %v829_v56 }
 0x4ea   :  { %v884_v21 = vunpack.c.l.b16 %v862_v18 }
 0x4eb   :  { %v3005_v62 = vpop.eup %3004  ;;  %v841_v63 = vadd.f32 %v840_v58, %v839_v14  ;;  %v845_v6 = vadd.f32 %v844_v45, %v843_v52  ;;  %v849_v51 = vadd.f32 %v848_v55, %v805_v48 }
 0x4ec   :  { %v863_v15 = vpack.c.bf16 %v3005_v62, %v3005_v62 }
 0x4ed   :  { %3012 = vtanh.f32 %v841_v63  ;;  %v846_v60 = vrot.slane %v845_v6, 1  ;;  %v850_v53 = vrot.slane %v849_v51, 2 }
 0x4ee   :  { %v885_v57 = vunpack.c.l.b16 %v863_v15 }
 0x4ef   :  { %v3007_v34 = vpop.eup %3006  ;;  %v847_v47 = vadd.f32 %v846_v60, %v845_v6  ;;  %v851_v36 = vadd.f32 %v850_v53, %v849_v51 }
 0x4f0   :  { %v892_v24 = vsel %vm549_vm1, %v885_v57, %v884_v21  ;;  %v864_v8 = vpack.c.bf16 %v3007_v34, %v3007_v34  ;;  %v3009_v7 = vpop.eup %3008 }
 0x4f1   :  { %3014 = vtanh.f32 %v847_v47  ;;  %v852_v50 = vrot.slane %v851_v36, 1  ;;  %v866_v52 = vpack.c.bf16 %v3009_v7, %v3009_v7  ;;  %v4001_v7 = vmov 0.0  }
 0x4f2   :  { %v886_v5 = vunpack.c.l.b16 %v864_v8 }
 0x4f3   :  { %v853_v56 = vadd.f32 %v852_v50, %v851_v36  ;;  %v3011_v14 = vpop.eup %3010  ;;  %v888_v18 = vunpack.c.l.b16 %v866_v52  ;;  %v3624_v50 = vld [vmem:[%s3975_s4] ss:$0 sm:$0xff] }
 0x4f4   :  { %v893_v48 = vsel %vm551_vm2, %v886_v5, %v892_v24  ;;  %v865_v58 = vpack.c.bf16 %v3011_v14, %v3011_v14 }
 0x4f5   :  { %3016 = vtanh.f32 %v853_v56 }
 0x4f6   :  { %v887_v55 = vunpack.c.l.b16 %v865_v58 }
 0x4f7   :  { %v3013_v45 = vpop.eup %3012 }
 0x4f8   :  { %v867_v62 = vpack.c.bf16 %v3013_v45, %v3013_v45  ;;  %v894_v63 = vsel %vm553_vm3, %v887_v55, %v893_v48 }
 0x4f9   :  { %v895_v51 = vsel %vm555_vm4, %v888_v18, %v894_v63 }
 0x4fa   :  { %v889_v6 = vunpack.c.l.b16 %v867_v62 }
 0x4fb   :  { %v3015_v15 = vpop.eup %3014 }
 0x4fc   :  { %v868_v60 = vpack.c.bf16 %v3015_v15, %v3015_v15  ;;  %v896_v53 = vsel %vm557_vm5, %v889_v6, %v895_v51 }
 0x4fe   :  { %v890_v21 = vunpack.c.l.b16 %v868_v60 }
 0x4ff   :  { %v3017_v57 = vpop.eup %3016 }
 0x500   :  { %v869_v34 = vpack.c.bf16 %v3017_v57, %v3017_v57  ;;  %v897_v47 = vsel %vm559_vm6, %v890_v21, %v896_v53 }
 0x502   :  { %v891_v36 = vunpack.c.l.b16 %v869_v34 }
 0x504   :  { %v898_v24 = vsel %vm561_vm7, %v891_v36, %v897_v47 }
 0x505   :  { %v899_v8 = vpack.c.b16 %v898_v24, %v898_v24 }
 0x507   :  { %2871 = vmatmul.mubr.bf16.vlgmr.msra.gmra.mrb[0].mxu1 %v899_v8 }
 0x508   :  { %2895 = vmatpush3.bf16.msra.mxu1 %v3537_v31  ;;  %2910 = vmatprep.mubr.msk.bf16.mxu1 %vm3226_vm9, %v4001_v7 }
 0x509   :  { %2896 = vmatprep.subr.bf16.mxu1 %v4001_v7 }
 0x50c   :  { %2897 = vmatpush3.bf16.msra.mxu1 %v3543_v23 }
 0x50d   :  { %2898 = vmatprep.subr.bf16.mxu1 %v4001_v7 }
 0x510   :  { %2899 = vmatpush3.bf16.msra.mxu1 %v3549_v28 }
 0x511   :  { %2900 = vmatprep.subr.bf16.mxu1 %v4001_v7 }
 0x514   :  { %2901 = vmatpush3.bf16.msra.mxu1 %v3555_v59 }
 0x515   :  { %2902 = vmatprep.subr.bf16.mxu1 %v4001_v7 }
 0x518   :  { %2903 = vmatpush3.bf16.msra.mxu1 %v3560_v22 }
 0x519   :  { %2904 = vmatprep.subr.bf16.mxu1 %v4001_v7 }
 0x51c   :  { %2905 = vmatpush3.bf16.msra.mxu1 %v3568_v35 }
 0x51d   :  { %2906 = vmatprep.subr.bf16.mxu1 %v4001_v7 }
 0x520   :  { %2907 = vmatpush3.bf16.msra.mxu1 %v3574_v1 }
 0x521   :  { %2908 = vmatprep.subr.bf16.mxu1 %v4001_v7 }
 0x524   :  { %2909 = vmatpush3.bf16.msra.mxu1 %v3580_v44 }
 0x5da   :  { %v983_v5 = vpop.f32.mrb[0].mxu1 }
 0x5db   :  { %v984_v56 = vadd.f32 %v3624_v50, %v983_v5  ;;  %v2872_v14 = vpop.f32.mrb[1].mxu1 }
 0x5dc   :  { %v986_v52 = vpop.f32.mrb[2].mxu1 }
 0x5dd   :  { %989 = vmax.xlane.f32.xlu1 %v984_v56  ;;  %v2873_v48 = vpop.f32.mrb[3].mxu1 }
 0x66a   :  { %v990_v58 = vpop.xlane.xlu1 %989 }
 0x66b   :  { %vm991_vm10 = vcmp.eq.f32.partialorder %v984_v56, %v990_v58 }
 0x66c   :  { %v992_v45 = vsel %vm991_vm10, %v3362_v39, 128 }
 0x66d   :  { %v994_v55 = vshra.s32 %v992_v45, 16  ;;  %v993_v62 = vand.u32 65535, %v992_v45 }
 0x66f   :  { %v996_v18 = vcvt.s32.f32 %v994_v55  ;;  %v995_v6 = vcvt.s32.f32 %v993_v62 }
 0x671   :  { %997 = vmin.xlane.f32.xlu0 %v996_v18 }
 0x6fe   :  { %v998_v63 = vpop.xlane.xlu0 %997 }
 0x6ff   :  { %vm999_vm11 = vcmp.eq.f32.partialorder %v996_v18, %v998_v63  ;;  %v1004_v15 = vcvt.f32.s32 %v998_v63 }
 0x700   :  { %v1000_v51 = vsel %vm999_vm11, %v995_v6, inf }
 0x701   :  { %1001 = vmin.xlane.f32.xlu1 %v1000_v51  ;;  %v1005_v53 = vshll.u32 %v1004_v15, 16 }
 0x78e   :  { %v1002_v60 = vpop.xlane.xlu1 %1001 }
 0x78f   :  { %v1003_v21 = vcvt.f32.s32 %v1002_v60 }
 0x791   :  { %v1006_v57 = vadd.s32 %v1005_v53, %v1003_v21 }
 0x793   :  { %vm1007_vm12 = vcmp.lt.s32.totalorder %v1006_v57, 127 }
 0x794   :  { %v3628_v34 = vsel %vm1007_vm12, %v1006_v57, 127  ;;  %vm2770_vm12 = vcmask 7168  }
 0x795   :  { %4002 = vst [vmem:[#allocation19_spill] sm:$0xff] %v3628_v34  ;;  %vm1009_vm13 = vcmp.eq.s32.totalorder %v3362_v39, %v3628_v34 }
 0x796   :  { %v2815_v47 = vsel %vm1009_vm13, 1.0, %v4001_v7  ;;  %vm2772_vm13 = vcmask 15360  }
 0x797   :  { %v1013_v36 = vcombine.high %v2815_v47, %v2815_v47  ;;  %v1020_v24 = vrot.slane %v2815_v47, %v3366_v41 }
 0x799   :  { %v1036_v8 = vrot.slane %v1020_v24, %v3366_v41  ;;  %v1028_v5 = vcombine.high %v1020_v24, %v1020_v24  ;;  %v1027_v56 = vrot.slane %v1013_v36, %v3366_v41 }
 0x79b   :  { %v1065_v14 = vrot.slane %v1036_v8, %v3325_v10  ;;  %v1050_v52 = vrot.slane %v1028_v5, %v3366_v41  ;;  %v1058_v48 = vcombine.high %v1036_v8, %v1036_v8  ;;  %v1043_v58 = vrot.slane %v1027_v56, %v3366_v41 }
 0x79c   :  { %v1029_v45 = vcombine.high %v1027_v56, %v1027_v56 }
 0x79d   :  { %v1102_v55 = vmul.f32 %v1065_v14, %v3373_v49  ;;  %v1069_v18 = vrot.slane %v1050_v52, %v3325_v10  ;;  %v1073_v62 = vrot.slane %v1058_v48, %v3325_v10  ;;  %v1060_v63 = vcombine.high %v1050_v52, %v1050_v52 }
 0x79e   :  { %v1057_v15 = vrot.slane %v1029_v45, %v3366_v41  ;;  %v1081_v53 = vrot.slane %v1043_v58, %v3325_v10  ;;  %v1059_v21 = vcombine.high %v1043_v58, %v1043_v58 }
 0x79f   :  { %1110 = vadd.xlane.f32.xlu0 %v1102_v55  ;;  %v1103_v6 = vmul.f32 %v1069_v18, %v3379_v54  ;;  %v1077_v51 = vrot.slane %v1060_v63, %v3325_v10  ;;  %v1104_v60 = vmul.f32 %v1073_v62, %v3386_v61 }
 0x7a0   :  { %v1085_v47 = vrot.slane %v1057_v15, %v3325_v10  ;;  %v1061_v36 = vcombine.high %v1057_v15, %v1057_v15  ;;  %v1106_v24 = vmul.f32 %v1081_v53, %v3401_v9  ;;  %v1089_v8 = vrot.slane %v1059_v21, %v3325_v10 }
 0x7a1   :  { %1112 = vadd.xlane.f32.xlu1 %v1103_v6  ;;  %v1105_v57 = vmul.f32 %v1077_v51, %v3393_v2 }
 0x7a2   :  { %v1107_v5 = vmul.f32 %v1085_v47, %v3406_v17  ;;  %v1093_v56 = vrot.slane %v1061_v36, %v3325_v10  ;;  %v1108_v14 = vmul.f32 %v1089_v8, %v3413_v25 }
 0x7a3   :  { %1114 = vadd.xlane.f32.xlu0 %v1104_v60 }
 0x7a4   :  { %v1109_v52 = vmul.f32 %v1093_v56, %v3418_v29 }
 0x7a5   :  { %1116 = vadd.xlane.f32.xlu1 %v1105_v57 }
 0x7a7   :  { %1118 = vadd.xlane.f32.xlu0 %v1106_v24 }
 0x7a9   :  { %1120 = vadd.xlane.f32.xlu1 %v1107_v5 }
 0x7ab   :  { %1122 = vadd.xlane.f32.xlu0 %v1108_v14 }
 0x7ad   :  { %1124 = vadd.xlane.f32.xlu1 %v1109_v52 }
 0x82c   :  { %v1111_v48 = vpop.xlane.xlu0 %1110 }
 0x82d   :  { %v1126_v58 = vadd.f32 %v1111_v48, %v3435_v38 }
 0x82e   :  { %v1113_v45 = vpop.xlane.xlu1 %1112 }
 0x82f   :  { %v1127_v55 = vadd.f32 %v1113_v45, %v3433_v37  ;;  %1143 = vperm.xlu0 %2946, %v1126_v58  }
 0x830   :  { %v1115_v18 = vpop.xlane.xlu0 %1114 }
 0x831   :  { %1146 = vperm.xlu1 %2947, %v1127_v55   ;;  %v1128_v63 = vadd.f32 %v1115_v18, %v3437_v40 }
 0x832   :  { %v1117_v62 = vpop.xlane.xlu1 %1116 }
 0x833   :  { %v1129_v60 = vadd.f32 %v1117_v62, %v3441_v43 }
 0x834   :  { %v1119_v6 = vpop.xlane.xlu0 %1118 }
 0x835   :  { %v1130_v51 = vadd.f32 %v1119_v6, %v3439_v42  ;;  %1149 = vperm.xlu1 %2947, %v1128_v63  }
 0x836   :  { %v1121_v15 = vpop.xlane.xlu1 %1120 }
 0x837   :  { %1155 = vperm.xlu0 %2946, %v1130_v51   ;;  %v1131_v57 = vadd.f32 %v1121_v15, %v3447_v46 }
 0x838   :  { %v1123_v53 = vpop.xlane.xlu0 %1122 }
 0x839   :  { %v3661_v21 = vadd.f32 %v1123_v53, %v3466_v0  ;;  %1152 = vperm.xlu1 %2947, %v1129_v60  }
 0x83a   :  { %v1125_v47 = vpop.xlane.xlu1 %1124 }
 0x83b   :  { %1161 = vperm.xlu0 %2946, %v3661_v21   ;;  %v1133_v36 = vadd.f32 %v1125_v47, %v3471_v4 }
 0x83d   :  { %1158 = vperm.xlu1 %2947, %v1131_v57  }
 0x841   :  { %1164 = vperm.xlu1 %2947, %v1133_v36  }
 0x8ae   :  { %v1144_v8 = vpop.permute.xlu0 %1143 }
 0x8af   :  { %v1169_v52 = vrot.slane %v1144_v8, %v3480_v16 }
 0x8b0   :  { %v1147_v24 = vpop.permute.xlu1 %1146 }
 0x8b1   :  { %v1173_v56 = vrot.slane %v1147_v24, %v3480_v16 }
 0x8b3   :  { %v1198_v18 = vsel %vm549_vm1, %v1173_v56, %v1169_v52 }
 0x8b4   :  { %v1150_v5 = vpop.permute.xlu1 %1149 }
 0x8b5   :  { %v1177_v14 = vrot.slane %v1150_v5, %v3480_v16 }
 0x8b6   :  { %v1156_v48 = vpop.permute.xlu0 %1155 }
 0x8b7   :  { %v1199_v6 = vsel %vm551_vm2, %v1177_v14, %v1198_v18  ;;  %v1185_v53 = vrot.slane %v1156_v48, %v3480_v16 }
 0x8b8   :  { %v1153_v45 = vpop.permute.xlu1 %1152 }
 0x8b9   :  { %v1181_v62 = vrot.slane %v1153_v45, %v3480_v16 }
 0x8ba   :  { %v1162_v34 = vpop.permute.xlu0 %1161 }
 0x8bb   :  { %v1200_v15 = vsel %vm553_vm3, %v1181_v62, %v1199_v6  ;;  %v1193_v4 = vrot.slane %v1162_v34, %v3480_v16 }
 0x8bc   :  { %v1159_v47 = vpop.permute.xlu1 %1158  ;;  %v1201_v5 = vsel %vm555_vm4, %v1185_v53, %v1200_v15 }
 0x8bd   :  { %v1189_v24 = vrot.slane %v1159_v47, %v3480_v16 }
 0x8bf   :  { %v1202_v8 = vsel %vm557_vm5, %v1189_v24, %v1201_v5 }
 0x8c0   :  { %v1165_v0 = vpop.permute.xlu1 %1164  ;;  %v1203_v52 = vsel %vm559_vm6, %v1193_v4, %v1202_v8 }
 0x8c1   :  { %v1197_v56 = vrot.slane %v1165_v0, %v3480_v16 }
 0x8c3   :  { %v1204_v14 = vsel %vm561_vm7, %v1197_v56, %v1203_v52 }
 0x8c4   :  { %v1206_v45 = vsel %vm564_vm8, %v1204_v14, -inf }
 0x8c5   :  { %1207 = vmax.xlane.f32.xlu0 %v1206_v45 }
 0x952   :  { %v1208_v48 = vpop.xlane.xlu0 %1207 }
 0x953   :  { %v1213_v18 = vrot.slane %v1208_v48, %v3325_v10  ;;  %v1217_v62 = vrot.slane %v1208_v48, %v3328_v11  ;;  %v1241_v6 = vrot.slane %v1208_v48, %v3424_v32  ;;  %v1221_v15 = vrot.slane %v1208_v48, %v3331_v12 }
 0x954   :  { %v1225_v4 = vrot.slane %v1208_v48, %v3339_v19  ;;  %v1229_v56 = vrot.slane %v1208_v48, %v3334_v13  ;;  %v1233_v45 = vrot.slane %v1208_v48, %v3352_v27 }
 0x955   :  { %v1250_v34 = vsub.f32 %v1126_v58, %v1213_v18  ;;  %v1251_v53 = vsub.f32 %v1127_v55, %v1217_v62  ;;  %v1257_v0 = vsub.f32 %v1133_v36, %v1241_v6  ;;  %v1252_v24 = vsub.f32 %v1128_v63, %v1221_v15 }
 0x956   :  { %v1253_v52 = vsub.f32 %v1129_v60, %v1225_v4  ;;  %v1254_v46 = vsub.f32 %v1130_v51, %v1229_v56  ;;  %v1237_v36 = vrot.slane %v1208_v48, %v3427_v33  ;;  %v1255_v18 = vsub.f32 %v1131_v57, %v1233_v45 }
 0x957   :  { %v1258_v47 = vmul.f32 1.442695, %v1250_v34  ;;  %v1260_v5 = vmul.f32 1.442695, %v1251_v53  ;;  %v1272_v8 = vmul.f32 1.442695, %v1257_v0 }
 0x958   :  { %v1262_v14 = vmul.f32 1.442695, %v1252_v24  ;;  %v1264_v58 = vmul.f32 1.442695, %v1253_v52  ;;  %v1266_v63 = vmul.f32 1.442695, %v1254_v46  ;;  %v1256_v6 = vsub.f32 %v3661_v21, %v1237_v36 }
 0x959   :  { %3018 = vpow2.f32 %v1258_v47  ;;  %v1268_v60 = vmul.f32 1.442695, %v1255_v18 }
 0x95a   :  { %3020 = vpow2.f32 %v1260_v5  ;;  %v1270_v51 = vmul.f32 1.442695, %v1256_v6 }
 0x95b   :  { %3022 = vpow2.f32 %v1272_v8 }
 0x95c   :  { %3024 = vpow2.f32 %v1262_v14 }
 0x95d   :  { %3026 = vpow2.f32 %v1264_v58 }
 0x95e   :  { %3028 = vpow2.f32 %v1266_v63 }
 0x95f   :  { %3030 = vpow2.f32 %v1268_v60 }
 0x960   :  { %3032 = vpow2.f32 %v1270_v51 }
 0x963   :  { %v3019_v55 = vpop.eup %3018 }
 0x964   :  { %1283 = vperm.xlu1 %2947, %v3019_v55   ;;  %v3021_v62 = vpop.eup %3020 }
 0x965   :  { %v3691_v15 = vpop.eup %3022 }
 0x966   :  { %v3025_v34 = vpop.eup %3024  ;;  %1304 = vperm.xlu0 %2946, %v3691_v15  }
 0x967   :  { %v3027_v53 = vpop.eup %3026 }
 0x968   :  { %1286 = vperm.xlu1 %2947, %v3021_v62   ;;  %v3029_v57 = vpop.eup %3028 }
 0x969   :  { %v3031_v46 = vpop.eup %3030 }
 0x96a   :  { %v3033_v48 = vpop.eup %3032 }
 0x96c   :  { %1289 = vperm.xlu1 %2947, %v3025_v34  }
 0x970   :  { %1292 = vperm.xlu1 %2947, %v3027_v53  }
 0x974   :  { %1295 = vperm.xlu1 %2947, %v3029_v57  }
 0x978   :  { %1298 = vperm.xlu1 %2947, %v3031_v46  }
 0x97c   :  { %1301 = vperm.xlu1 %2947, %v3033_v48  }
 0x9e3   :  { %v1284_v21 = vpop.permute.xlu1 %1283 }
 0x9e4   :  { %v1309_v56 = vrot.slane %v1284_v21, %v3480_v16 }
 0x9e5   :  { %v1305_v18 = vpop.permute.xlu0 %1304 }
 0x9e6   :  { %v1337_v21 = vrot.slane %v1305_v18, %v3480_v16 }
 0x9e7   :  { %v1287_v47 = vpop.permute.xlu1 %1286 }
 0x9e8   :  { %v1313_v5 = vrot.slane %v1287_v47, %v3480_v16 }
 0x9ea   :  { %v1338_v58 = vsel %vm549_vm1, %v1313_v5, %v1309_v56 }
 0x9eb   :  { %v1290_v0 = vpop.permute.xlu1 %1289 }
 0x9ec   :  { %v1317_v8 = vrot.slane %v1290_v0, %v3480_v16 }
 0x9ee   :  { %v1339_v63 = vsel %vm551_vm2, %v1317_v8, %v1338_v58 }
 0x9ef   :  { %v1293_v4 = vpop.permute.xlu1 %1292 }
 0x9f0   :  { %v1321_v52 = vrot.slane %v1293_v4, %v3480_v16 }
 0x9f2   :  { %v1340_v6 = vsel %vm553_vm3, %v1321_v52, %v1339_v63 }
 0x9f3   :  { %v1296_v24 = vpop.permute.xlu1 %1295 }
 0x9f4   :  { %v1325_v45 = vrot.slane %v1296_v24, %v3480_v16 }
 0x9f6   :  { %v1341_v51 = vsel %vm555_vm4, %v1325_v45, %v1340_v6 }
 0x9f7   :  { %v1299_v14 = vpop.permute.xlu1 %1298 }
 0x9f8   :  { %v1329_v36 = vrot.slane %v1299_v14, %v3480_v16 }
 0x9fa   :  { %v1342_v0 = vsel %vm557_vm5, %v1329_v36, %v1341_v51 }
 0x9fb   :  { %v1302_v60 = vpop.permute.xlu1 %1301 }
 0x9fc   :  { %v1333_v47 = vrot.slane %v1302_v60, %v3480_v16 }
 0x9fe   :  { %v1343_v4 = vsel %vm559_vm6, %v1333_v47, %v1342_v0 }
 0x9ff   :  { %v1344_v24 = vsel %vm561_vm7, %v1337_v21, %v1343_v4 }
 0xa00   :  { %v1346_v5 = vsel %vm564_vm8, %v1344_v24, 0.0  ;;  %v4003_v24 = vld [vmem:[#allocation15_spill] sm:$0xff] }
 0xa01   :  { %1347 = vadd.xlane.f32.xlu1 %v1346_v5 }
 0xa8e   :  { %v1348_v56 = vpop.xlane.xlu1 %1347 }
 0xa8f   :  { %3034 = vrcp.f32 %v1348_v56  ;;  %v4004_v56 = vld [vmem:[#allocation12_spill] sm:$0xff] }
 0xa99   :  { %v3035_v8 = vpop.eup %3034 }
 0xa9a   :  { %v1370_v52 = vrot.slane %v3035_v8, %v3334_v13  ;;  %v1354_v14 = vrot.slane %v3035_v8, %v3325_v10  ;;  %v1358_v18 = vrot.slane %v3035_v8, %v3328_v11  ;;  %v1362_v63 = vrot.slane %v3035_v8, %v3331_v12 }
 0xa9b   :  { %v1366_v60 = vrot.slane %v3035_v8, %v3339_v19  ;;  %v1374_v47 = vrot.slane %v3035_v8, %v3352_v27  ;;  %v1382_v0 = vrot.slane %v3035_v8, %v3424_v32 }
 0xa9c   :  { %v1395_v45 = vmul.f32 %v3029_v57, %v1370_v52  ;;  %v1391_v58 = vmul.f32 %v3019_v55, %v1354_v14  ;;  %v1392_v36 = vmul.f32 %v3021_v62, %v1358_v18  ;;  %v1393_v6 = vmul.f32 %v3025_v34, %v1362_v63  ;;  %v4005_v18 = vld [vmem:[#allocation13_spill] sm:$0xff] }
 0xa9d   :  { %v1394_v51 = vmul.f32 %v3027_v53, %v1366_v60  ;;  %v1396_v21 = vmul.f32 %v3031_v46, %v1374_v47  ;;  %v1378_v57 = vrot.slane %v3035_v8, %v3427_v33  ;;  %v1398_v62 = vmul.f32 %v3691_v15, %v1382_v0 }
 0xa9e   :  { %1421 = vperm.xlu1 %2947, %v1395_v45   ;;  %1401 = vperm.xlu0 %2946, %v1391_v58  }
 0xa9f   :  { %v1397_v55 = vmul.f32 %v3033_v48, %v1378_v57 }
 0xaa2   :  { %1406 = vperm.xlu0 %2946, %v1392_v36  }
 0xaa6   :  { %1411 = vperm.xlu0 %2946, %v1393_v6  }
 0xaaa   :  { %1416 = vperm.xlu0 %2946, %v1394_v51   ;;  %v4006_v51 = vld [vmem:[#allocation14_spill] sm:$0xff] }
 0xaae   :  { %1426 = vperm.xlu0 %2946, %v1396_v21  }
 0xab2   :  { %1431 = vperm.xlu0 %2946, %v1397_v55  }
 0xab6   :  { %1436 = vperm.xlu0 %2946, %v1398_v62  }
 0xb1d   :  { %v1422_v4 = vpop.permute.xlu1 %1421  ;;  %v1402_v34 = vpop.permute.xlu0 %1401 }
 0xb1e   :  { %v1443_v5 = vmul.f32 %v1422_v4, %v4003_v24  ;;  %v1439_v53 = vmul.f32 %v1402_v34, %v4004_v56 }
 0xb20   :  { %v1471_v52 = vrot.slane %v1443_v5, 4  ;;  %v1447_v14 = vrot.slane %v1439_v53, 4 }
 0xb21   :  { %v1407_v45 = vpop.permute.xlu0 %1406 }
 0xb22   :  { %v1472_v46 = vadd.f32 %v1471_v52, %v1443_v5  ;;  %v1448_v58 = vadd.f32 %v1447_v14, %v1439_v53  ;;  %v1440_v36 = vmul.f32 %v1407_v45, %v4005_v18 }
 0xb24   :  { %v1449_v48 = vrot.slane %v1448_v58, 2  ;;  %v1453_v63 = vrot.slane %v1440_v36, 4  ;;  %v1473_v6 = vrot.slane %v1472_v46, 2 }
 0xb25   :  { %v1412_v8 = vpop.permute.xlu0 %1411 }
 0xb26   :  { %v1450_v60 = vadd.f32 %v1449_v48, %v1448_v58  ;;  %v1454_v15 = vadd.f32 %v1453_v63, %v1440_v36  ;;  %v1441_v47 = vmul.f32 %v1412_v8, %v4006_v51  ;;  %v1474_v62 = vadd.f32 %v1473_v6, %v1472_v46 }
 0xb28   :  { %v1451_v21 = vrot.slane %v1450_v60, 1  ;;  %v1455_v57 = vrot.slane %v1454_v15, 2  ;;  %v1459_v55 = vrot.slane %v1441_v47, 4  ;;  %v1475_v18 = vrot.slane %v1474_v62, 1 }
 0xb29   :  { %v1417_v0 = vpop.permute.xlu0 %1416 }
 0xb2a   :  { %v1452_v4 = vadd.f32 %v1451_v21, %v1450_v60  ;;  %v1456_v34 = vadd.f32 %v1455_v57, %v1454_v15  ;;  %v1460_v56 = vadd.f32 %v1459_v55, %v1441_v47  ;;  %v1442_v5 = vmul.f32 %v1417_v0, %v3395_v3 }
 0xb2b   :  { %v1476_v60 = vadd.f32 %v1475_v18, %v1474_v62 }
 0xb2c   :  { %v1457_v53 = vrot.slane %v1456_v34, 1  ;;  %v1461_v52 = vrot.slane %v1460_v56, 2  ;;  %3036 = vtanh.f32 %v1452_v4  ;;  %v1465_v14 = vrot.slane %v1442_v5, 4 }
 0xb2d   :  { %v1427_v45 = vpop.permute.xlu0 %1426 }
 0xb2e   :  { %v1458_v58 = vadd.f32 %v1457_v53, %v1456_v34  ;;  %v1462_v36 = vadd.f32 %v1461_v52, %v1460_v56  ;;  %v1444_v48 = vmul.f32 %v1427_v45, %v3408_v20  ;;  %v1466_v63 = vadd.f32 %v1465_v14, %v1442_v5 }
 0xb30   :  { %3038 = vtanh.f32 %v1458_v58  ;;  %v1463_v8 = vrot.slane %v1462_v36, 1  ;;  %v1477_v51 = vrot.slane %v1444_v48, 4  ;;  %v1467_v46 = vrot.slane %v1466_v63, 2 }
 0xb31   :  { %v1432_v6 = vpop.permute.xlu0 %1431 }
 0xb32   :  { %v1464_v15 = vadd.f32 %v1463_v8, %v1462_v36  ;;  %v1478_v47 = vadd.f32 %v1477_v51, %v1444_v48  ;;  %v1445_v21 = vmul.f32 %v1432_v6, %v3415_v26  ;;  %v1468_v57 = vadd.f32 %v1467_v46, %v1466_v63 }
 0xb34   :  { %3040 = vtanh.f32 %v1464_v15  ;;  %v1479_v55 = vrot.slane %v1478_v47, 2  ;;  %v1483_v0 = vrot.slane %v1445_v21, 4  ;;  %v1469_v4 = vrot.slane %v1468_v57, 1 }
 0xb35   :  { %v1437_v34 = vpop.permute.xlu0 %1436  ;;  %3042 = vtanh.f32 %v1476_v60 }
 0xb36   :  { %v1480_v56 = vadd.f32 %v1479_v55, %v1478_v47  ;;  %v1484_v53 = vadd.f32 %v1483_v0, %v1445_v21  ;;  %v1446_v5 = vmul.f32 %v1437_v34, %v3420_v30  ;;  %v3037_v52 = vpop.eup %3036  ;;  %v1470_v14 = vadd.f32 %v1469_v4, %v1468_v57 }
 0xb37   :  { %v1503_v62 = vpack.c.bf16 %v3037_v52, %v3037_v52 }
 0xb38   :  { %v1481_v45 = vrot.slane %v1480_v56, 1  ;;  %v1485_v58 = vrot.slane %v1484_v53, 2  ;;  %v1489_v18 = vrot.slane %v1446_v5, 4  ;;  %3044 = vtanh.f32 %v1470_v14 }
 0xb39   :  { %v1519_v60 = vunpack.c.l.b16 %v1503_v62 }
 0xb3a   :  { %v3039_v51 = vpop.eup %3038  ;;  %v1482_v36 = vadd.f32 %v1481_v45, %v1480_v56  ;;  %v1486_v48 = vadd.f32 %v1485_v58, %v1484_v53  ;;  %v1490_v63 = vadd.f32 %v1489_v18, %v1446_v5 }
 0xb3b   :  { %v1504_v8 = vpack.c.bf16 %v3039_v51, %v3039_v51 }
 0xb3c   :  { %3046 = vtanh.f32 %v1482_v36  ;;  %v1487_v46 = vrot.slane %v1486_v48, 1  ;;  %v1491_v6 = vrot.slane %v1490_v63, 2 }
 0xb3d   :  { %v1520_v15 = vunpack.c.l.b16 %v1504_v8 }
 0xb3e   :  { %v3041_v47 = vpop.eup %3040  ;;  %v1488_v21 = vadd.f32 %v1487_v46, %v1486_v48  ;;  %v1492_v55 = vadd.f32 %v1491_v6, %v1490_v63 }
 0xb3f   :  { %v1527_v57 = vsel %vm549_vm1, %v1520_v15, %v1519_v60  ;;  %v1505_v0 = vpack.c.bf16 %v3041_v47, %v3041_v47  ;;  %v3043_v4 = vpop.eup %3042 }
 0xb40   :  { %3048 = vtanh.f32 %v1488_v21  ;;  %v1493_v34 = vrot.slane %v1492_v55, 1  ;;  %v1507_v53 = vpack.c.bf16 %v3043_v4, %v3043_v4 }
 0xb41   :  { %v1521_v52 = vunpack.c.l.b16 %v1505_v0 }
 0xb42   :  { %v1494_v14 = vadd.f32 %v1493_v34, %v1492_v55  ;;  %v3045_v56 = vpop.eup %3044  ;;  %v1523_v62 = vunpack.c.l.b16 %v1507_v53 }
 0xb43   :  { %v1528_v5 = vsel %vm551_vm2, %v1521_v52, %v1527_v57  ;;  %v1506_v45 = vpack.c.bf16 %v3045_v56, %v3045_v56 }
 0xb44   :  { %3050 = vtanh.f32 %v1494_v14 }
 0xb45   :  { %v1522_v18 = vunpack.c.l.b16 %v1506_v45 }
 0xb46   :  { %v3047_v58 = vpop.eup %3046 }
 0xb47   :  { %v1508_v51 = vpack.c.bf16 %v3047_v58, %v3047_v58  ;;  %v1529_v36 = vsel %vm553_vm3, %v1522_v18, %v1528_v5 }
 0xb48   :  { %v1530_v48 = vsel %vm555_vm4, %v1523_v62, %v1529_v36 }
 0xb49   :  { %v1524_v63 = vunpack.c.l.b16 %v1508_v51 }
 0xb4a   :  { %v3049_v8 = vpop.eup %3048 }
 0xb4b   :  { %v1531_v46 = vsel %vm557_vm5, %v1524_v63, %v1530_v48  ;;  %v1509_v6 = vpack.c.bf16 %v3049_v8, %v3049_v8 }
 0xb4d   :  { %v1525_v60 = vunpack.c.l.b16 %v1509_v6 }
 0xb4e   :  { %v3051_v15 = vpop.eup %3050 }
 0xb4f   :  { %v1510_v47 = vpack.c.bf16 %v3051_v15, %v3051_v15  ;;  %v1532_v21 = vsel %vm559_vm6, %v1525_v60, %v1531_v46 }
 0xb51   :  { %v1526_v55 = vunpack.c.l.b16 %v1510_v47 }
 0xb53   :  { %v1533_v57 = vsel %vm561_vm7, %v1526_v55, %v1532_v21 }
 0xb54   :  { %v1534_v0 = vpack.c.b16 %v1533_v57, %v1533_v57 }
 0xb56   :  { %2891 = vmatmul.mubr.bf16.vlgmr.msra.gmra.mrb[16].mxu0 %v1534_v0 }
 0xb57   :  { %2915 = vmatpush3.bf16.msra.mxu0 %v3537_v31  ;;  %2930 = vmatprep.mubr.msk.bf16.mxu0 %vm3226_vm9, %v4001_v7 }
 0xb58   :  { %2916 = vmatprep.subr.bf16.mxu0 %v4001_v7 }
 0xb5b   :  { %2917 = vmatpush3.bf16.msra.mxu0 %v3543_v23 }
 0xb5c   :  { %2918 = vmatprep.subr.bf16.mxu0 %v4001_v7 }
 0xb5f   :  { %2919 = vmatpush3.bf16.msra.mxu0 %v3549_v28 }
 0xb60   :  { %2920 = vmatprep.subr.bf16.mxu0 %v4001_v7 }
 0xb63   :  { %2921 = vmatpush3.bf16.msra.mxu0 %v3555_v59 }
 0xb64   :  { %2922 = vmatprep.subr.bf16.mxu0 %v4001_v7 }
 0xb67   :  { %2923 = vmatpush3.bf16.msra.mxu0 %v3560_v22 }
 0xb68   :  { %2924 = vmatprep.subr.bf16.mxu0 %v4001_v7 }
 0xb6b   :  { %2925 = vmatpush3.bf16.msra.mxu0 %v3568_v35 }
 0xb6c   :  { %2926 = vmatprep.subr.bf16.mxu0 %v4001_v7 }
 0xb6f   :  { %2927 = vmatpush3.bf16.msra.mxu0 %v3574_v1 }
 0xb70   :  { %2928 = vmatprep.subr.bf16.mxu0 %v4001_v7 }
 0xb73   :  { %2929 = vmatpush3.bf16.msra.mxu0 %v3580_v44 }
 0xc29   :  { %v1570_v31 = vpop.f32.mrb[16].mxu0 }
 0xc2a   :  { %v1571_v23 = vadd.f32 %v3624_v50, %v1570_v31  ;;  %v2892_v28 = vpop.f32.mrb[17].mxu0 }
 0xc2b   :  { %v1573_v59 = vpop.f32.mrb[18].mxu0 }
 0xc2c   :  { %1576 = vmax.xlane.f32.xlu0 %v1571_v23  ;;  %v2893_v4 = vpop.f32.mrb[19].mxu0 }
 0xcb9   :  { %v1577_v22 = vpop.xlane.xlu0 %1576 }
 0xcba   :  { %vm1578_vm14 = vcmp.eq.f32.partialorder %v1571_v23, %v1577_v22 }
 0xcbb   :  { %v1579_v34 = vsel %vm1578_vm14, %v3362_v39, 128 }
 0xcbc   :  { %v1581_v35 = vshra.s32 %v1579_v34, 16  ;;  %v1580_v14 = vand.u32 65535, %v1579_v34 }
 0xcbe   :  { %v1583_v52 = vcvt.s32.f32 %v1581_v35  ;;  %v1582_v56 = vcvt.s32.f32 %v1580_v14 }
 0xcc0   :  { %1584 = vmin.xlane.f32.xlu1 %v1583_v52 }
 0xd4d   :  { %v1585_v1 = vpop.xlane.xlu1 %1584 }
 0xd4e   :  { %vm1586_vm15 = vcmp.eq.f32.partialorder %v1583_v52, %v1585_v1  ;;  %v1591_v44 = vcvt.f32.s32 %v1585_v1 }
 0xd4f   :  { %v1587_v53 = vsel %vm1586_vm15, %v1582_v56, inf }
 0xd50   :  { %1588 = vmin.xlane.f32.xlu0 %v1587_v53  ;;  %v1592_v50 = vshll.u32 %v1591_v44, 16 }
 0xddd   :  { %v1589_v5 = vpop.xlane.xlu0 %1588 }
 0xdde   :  { %v1590_v45 = vcvt.f32.s32 %v1589_v5 }
 0xde0   :  { %v1593_v58 = vadd.s32 %v1592_v50, %v1590_v45 }
 0xde2   :  { %vm1594_vm0 = vcmp.lt.s32.totalorder %v1593_v58, 127 }
 0xde3   :  { %v3753_v18 = vsel %vm1594_vm0, %v1593_v58, 127 }
 0xde4   :  { %vm1596_vm9 = vcmp.eq.s32.totalorder %v3362_v39, %v3753_v18 }
 0xde5   :  { %v2816_v62 = vsel %vm1596_vm9, 1.0, %v4001_v7 }
 0xde6   :  { %v1600_v51 = vcombine.high %v2816_v62, %v2816_v62  ;;  %v1607_v36 = vrot.slane %v2816_v62, %v3366_v41 }
 0xde8   :  { %v1623_v48 = vrot.slane %v1607_v36, %v3366_v41  ;;  %v1615_v63 = vcombine.high %v1607_v36, %v1607_v36  ;;  %v1614_v8 = vrot.slane %v1600_v51, %v3366_v41 }
 0xdea   :  { %v1652_v46 = vrot.slane %v1623_v48, %v3325_v10  ;;  %v1645_v6 = vcombine.high %v1623_v48, %v1623_v48  ;;  %v1637_v60 = vrot.slane %v1615_v63, %v3366_v41  ;;  %v1630_v15 = vrot.slane %v1614_v8, %v3366_v41 }
 0xdeb   :  { %v1616_v57 = vcombine.high %v1614_v8, %v1614_v8 }
 0xdec   :  { %v1689_v47 = vmul.f32 %v1652_v46, %v3373_v49  ;;  %v1660_v21 = vrot.slane %v1645_v6, %v3325_v10  ;;  %v1656_v55 = vrot.slane %v1637_v60, %v3325_v10  ;;  %v1647_v0 = vcombine.high %v1637_v60, %v1637_v60  ;;  %v4007_v60 = vld [vmem:[#allocation16_spill] sm:$0xff] }
 0xded   :  { %v1668_v23 = vrot.slane %v1630_v15, %v3325_v10  ;;  %v1646_v28 = vcombine.high %v1630_v15, %v1630_v15  ;;  %v1644_v22 = vrot.slane %v1616_v57, %v3366_v41 }
 0xdee   :  { %1697 = vadd.xlane.f32.xlu0 %v1689_v47  ;;  %v1691_v31 = vmul.f32 %v1660_v21, %v3386_v61  ;;  %v1690_v59 = vmul.f32 %v1656_v55, %v3379_v54  ;;  %v1664_v4 = vrot.slane %v1647_v0, %v3325_v10  ;;  %v4008_v55 = vld [vmem:[#allocation17_spill] sm:$0xff]  ;;  %v4009_v0 = vld [vmem:[#allocation18_spill] sm:$0xff] }
 0xdef   :  { %v1693_v34 = vmul.f32 %v1668_v23, %v3401_v9  ;;  %v1676_v35 = vrot.slane %v1646_v28, %v3325_v10  ;;  %v1672_v14 = vrot.slane %v1644_v22, %v3325_v10  ;;  %v1648_v1 = vcombine.high %v1644_v22, %v1644_v22 }
 0xdf0   :  { %1701 = vadd.xlane.f32.xlu1 %v1691_v31  ;;  %v1692_v52 = vmul.f32 %v1664_v4, %v3393_v2 }
 0xdf1   :  { %v1695_v56 = vmul.f32 %v1676_v35, %v3413_v25  ;;  %v1694_v53 = vmul.f32 %v1672_v14, %v3406_v17  ;;  %v1680_v44 = vrot.slane %v1648_v1, %v3325_v10 }
 0xdf2   :  { %1699 = vadd.xlane.f32.xlu0 %v1690_v59 }
 0xdf3   :  { %v1696_v5 = vmul.f32 %v1680_v44, %v3418_v29 }
 0xdf4   :  { %1705 = vadd.xlane.f32.xlu1 %v1693_v34 }
 0xdf6   :  { %1703 = vadd.xlane.f32.xlu0 %v1692_v52 }
 0xdf8   :  { %1709 = vadd.xlane.f32.xlu1 %v1695_v56 }
 0xdfa   :  { %1707 = vadd.xlane.f32.xlu0 %v1694_v53 }
 0xdfe   :  { %1711 = vadd.xlane.f32.xlu0 %v1696_v5 }
 0xe7b   :  { %v1698_v50 = vpop.xlane.xlu0 %1697 }
 0xe7c   :  { %v1713_v45 = vadd.f32 %v1698_v50, %v3435_v38 }
 0xe7d   :  { %v1702_v58 = vpop.xlane.xlu1 %1701 }
 0xe7e   :  { %1730 = vperm.xlu1 %2947, %v1713_v45   ;;  %v1715_v51 = vadd.f32 %v1702_v58, %v3437_v40 }
 0xe7f   :  { %v1700_v62 = vpop.xlane.xlu0 %1699 }
 0xe80   :  { %v1714_v36 = vadd.f32 %v1700_v62, %v3433_v37 }
 0xe81   :  { %v1706_v48 = vpop.xlane.xlu1 %1705 }
 0xe82   :  { %1736 = vperm.xlu1 %2947, %v1715_v51   ;;  %1733 = vperm.xlu0 %2946, %v1714_v36   ;;  %v1717_v8 = vadd.f32 %v1706_v48, %v3439_v42 }
 0xe83   :  { %v1704_v63 = vpop.xlane.xlu0 %1703 }
 0xe84   :  { %v1716_v6 = vadd.f32 %v1704_v63, %v3441_v43 }
 0xe85   :  { %v1710_v47 = vpop.xlane.xlu1 %1709 }
 0xe86   :  { %1742 = vperm.xlu1 %2947, %v1717_v8   ;;  %v1719_v57 = vadd.f32 %v1710_v47, %v4008_v55 }
 0xe87   :  { %v1708_v46 = vpop.xlane.xlu0 %1707 }
 0xe88   :  { %v1718_v15 = vadd.f32 %v1708_v46, %v4007_v60 }
 0xe8a   :  { %1739 = vperm.xlu1 %2947, %v1716_v6   ;;  %1745 = vperm.xlu0 %2946, %v1718_v15  }
 0xe8b   :  { %v1712_v21 = vpop.xlane.xlu0 %1711 }
 0xe8c   :  { %v1720_v31 = vadd.f32 %v1712_v21, %v4009_v0 }
 0xe8e   :  { %1748 = vperm.xlu1 %2947, %v1719_v57   ;;  %1751 = vperm.xlu0 %2946, %v1720_v31  }
 0xefd   :  { %v1731_v23 = vpop.permute.xlu1 %1730 }
 0xefe   :  { %v1756_v34 = vrot.slane %v1731_v23, %v3480_v16 }
 0xf01   :  { %v1737_v28 = vpop.permute.xlu1 %1736  ;;  %v1734_v59 = vpop.permute.xlu0 %1733 }
 0xf02   :  { %v1760_v4 = vrot.slane %v1734_v59, %v3480_v16  ;;  %v1764_v35 = vrot.slane %v1737_v28, %v3480_v16 }
 0xf04   :  { %v1785_v52 = vsel %vm549_vm1, %v1760_v4, %v1756_v34 }
 0xf05   :  { %v1743_v22 = vpop.permute.xlu1 %1742  ;;  %v1786_v44 = vsel %vm551_vm2, %v1764_v35, %v1785_v52 }
 0xf06   :  { %v1772_v53 = vrot.slane %v1743_v22, %v3480_v16 }
 0xf09   :  { %v1740_v14 = vpop.permute.xlu1 %1739  ;;  %v1746_v1 = vpop.permute.xlu0 %1745 }
 0xf0a   :  { %v1768_v56 = vrot.slane %v1740_v14, %v3480_v16  ;;  %v1776_v50 = vrot.slane %v1746_v1, %v3480_v16 }
 0xf0c   :  { %v1787_v5 = vsel %vm553_vm3, %v1768_v56, %v1786_v44 }
 0xf0d   :  { %v1788_v58 = vsel %vm555_vm4, %v1772_v53, %v1787_v5  ;;  %v1749_v62 = vpop.permute.xlu1 %1748  ;;  %v1752_v48 = vpop.permute.xlu0 %1751 }
 0xf0e   :  { %v1789_v63 = vsel %vm557_vm5, %v1776_v50, %v1788_v58  ;;  %v1780_v46 = vrot.slane %v1749_v62, %v3480_v16  ;;  %v1784_v47 = vrot.slane %v1752_v48, %v3480_v16 }
 0xf10   :  { %v1790_v21 = vsel %vm559_vm6, %v1780_v46, %v1789_v63 }
 0xf11   :  { %v1791_v23 = vsel %vm561_vm7, %v1784_v47, %v1790_v21 }
 0xf12   :  { %v1793_v28 = vsel %vm564_vm8, %v1791_v23, -inf }
 0xf13   :  { %1794 = vmax.xlane.f32.xlu1 %v1793_v28 }
 0xfa0   :  { %v1795_v59 = vpop.xlane.xlu1 %1794 }
 0xfa1   :  { %v1800_v4 = vrot.slane %v1795_v59, %v3325_v10  ;;  %v1804_v22 = vrot.slane %v1795_v59, %v3328_v11  ;;  %v1808_v34 = vrot.slane %v1795_v59, %v3331_v12  ;;  %v1812_v1 = vrot.slane %v1795_v59, %v3339_v19 }
 0xfa2   :  { %v1816_v44 = vrot.slane %v1795_v59, %v3334_v13  ;;  %v1820_v58 = vrot.slane %v1795_v59, %v3352_v27  ;;  %v1828_v47 = vrot.slane %v1795_v59, %v3424_v32 }
 0xfa3   :  { %v1837_v35 = vsub.f32 %v1713_v45, %v1800_v4  ;;  %v1838_v52 = vsub.f32 %v1714_v36, %v1804_v22  ;;  %v1839_v56 = vsub.f32 %v1715_v51, %v1808_v34  ;;  %v1840_v5 = vsub.f32 %v1716_v6, %v1812_v1 }
 0xfa4   :  { %v1841_v62 = vsub.f32 %v1717_v8, %v1816_v44  ;;  %v1824_v45 = vrot.slane %v1795_v59, %v3427_v33  ;;  %v1842_v36 = vsub.f32 %v1718_v15, %v1820_v58  ;;  %v1844_v28 = vsub.f32 %v1720_v31, %v1828_v47 }
 0xfa5   :  { %v1845_v14 = vmul.f32 1.442695, %v1837_v35  ;;  %v1847_v53 = vmul.f32 1.442695, %v1838_v52  ;;  %v1849_v50 = vmul.f32 1.442695, %v1839_v56 }
 0xfa6   :  { %v1851_v48 = vmul.f32 1.442695, %v1840_v5  ;;  %v1853_v46 = vmul.f32 1.442695, %v1841_v62  ;;  %v1843_v21 = vsub.f32 %v1719_v57, %v1824_v45  ;;  %v1855_v6 = vmul.f32 1.442695, %v1842_v36 }
 0xfa7   :  { %3052 = vpow2.f32 %v1845_v14  ;;  %v1859_v22 = vmul.f32 1.442695, %v1844_v28 }
 0xfa8   :  { %3054 = vpow2.f32 %v1847_v53  ;;  %v1857_v8 = vmul.f32 1.442695, %v1843_v21 }
 0xfa9   :  { %3056 = vpow2.f32 %v1849_v50 }
 0xfaa   :  { %3058 = vpow2.f32 %v1851_v48 }
 0xfab   :  { %3060 = vpow2.f32 %v1853_v46 }
 0xfac   :  { %3062 = vpow2.f32 %v1855_v6 }
 0xfad   :  { %3064 = vpow2.f32 %v1857_v8 }
 0xfae   :  { %3066 = vpow2.f32 %v1859_v22 }
 0xfb1   :  { %v3053_v63 = vpop.eup %3052 }
 0xfb2   :  { %1870 = vperm.xlu0 %2946, %v3053_v63   ;;  %v3055_v51 = vpop.eup %3054 }
 0xfb3   :  { %v3057_v23 = vpop.eup %3056 }
 0xfb4   :  { %v3059_v4 = vpop.eup %3058 }
 0xfb5   :  { %v3061_v34 = vpop.eup %3060 }
 0xfb6   :  { %1873 = vperm.xlu0 %2946, %v3055_v51   ;;  %v3063_v15 = vpop.eup %3062 }
 0xfb7   :  { %v3065_v35 = vpop.eup %3064 }
 0xfb8   :  { %v3067_v59 = vpop.eup %3066 }
 0xfba   :  { %1876 = vperm.xlu0 %2946, %v3057_v23  }
 0xfbe   :  { %1879 = vperm.xlu0 %2946, %v3059_v4  }
 0xfc2   :  { %1882 = vperm.xlu0 %2946, %v3061_v34  }
 0xfc6   :  { %1885 = vperm.xlu0 %2946, %v3063_v15  }
 0xfca   :  { %1888 = vperm.xlu0 %2946, %v3065_v35  }
 0xfce   :  { %1891 = vperm.xlu0 %2946, %v3067_v59  }
0x1031   :  { %v1871_v57 = vpop.permute.xlu0 %1870 }
0x1032   :  { %v1896_v5 = vrot.slane %v1871_v57, %v3480_v16 }
0x1035   :  { %v1874_v52 = vpop.permute.xlu0 %1873 }
0x1036   :  { %v1900_v53 = vrot.slane %v1874_v52, %v3480_v16 }
0x1038   :  { %v1925_v48 = vsel %vm549_vm1, %v1900_v53, %v1896_v5 }
0x1039   :  { %v1877_v14 = vpop.permute.xlu0 %1876 }
0x103a   :  { %v1904_v44 = vrot.slane %v1877_v14, %v3480_v16 }
0x103c   :  { %v1926_v36 = vsel %vm551_vm2, %v1904_v44, %v1925_v48 }
0x103d   :  { %v1880_v1 = vpop.permute.xlu0 %1879 }
0x103e   :  { %v1908_v50 = vrot.slane %v1880_v1, %v3480_v16 }
0x1040   :  { %v1927_v47 = vsel %vm553_vm3, %v1908_v50, %v1926_v36 }
0x1041   :  { %v1883_v31 = vpop.permute.xlu0 %1882 }
0x1042   :  { %v1912_v58 = vrot.slane %v1883_v31, %v3480_v16 }
0x1044   :  { %v1928_v21 = vsel %vm555_vm4, %v1912_v58, %v1927_v47 }
0x1045   :  { %v1886_v56 = vpop.permute.xlu0 %1885 }
0x1046   :  { %v1916_v45 = vrot.slane %v1886_v56, %v3480_v16 }
0x1048   :  { %v1929_v28 = vsel %vm557_vm5, %v1916_v45, %v1928_v21 }
0x1049   :  { %v1889_v62 = vpop.permute.xlu0 %1888 }
0x104a   :  { %v1920_v46 = vrot.slane %v1889_v62, %v3480_v16 }
0x104c   :  { %v1930_v22 = vsel %vm559_vm6, %v1920_v46, %v1929_v28  ;;  %v4010_v28 = vld [vmem:[#allocation12_spill] sm:$0xff] }
0x104d   :  { %v1892_v6 = vpop.permute.xlu0 %1891 }
0x104e   :  { %v1924_v8 = vrot.slane %v1892_v6, %v3480_v16 }
0x1050   :  { %v1931_v57 = vsel %vm561_vm7, %v1924_v8, %v1930_v22 }
0x1051   :  { %v1933_v52 = vsel %vm564_vm8, %v1931_v57, 0.0 }
0x1052   :  { %1934 = vadd.xlane.f32.xlu0 %v1933_v52 }
0x10df   :  { %v1935_v14 = vpop.xlane.xlu0 %1934 }
0x10e0   :  { %3068 = vrcp.f32 %v1935_v14  ;;  %v4011_v14 = vld [vmem:[#allocation13_spill] sm:$0xff] }
0x10ea   :  { %v3069_v1 = vpop.eup %3068 }
0x10eb   :  { %v1957_v31 = vrot.slane %v3069_v1, %v3334_v13  ;;  %v1941_v56 = vrot.slane %v3069_v1, %v3325_v10  ;;  %v1945_v5 = vrot.slane %v3069_v1, %v3328_v11  ;;  %v1949_v58 = vrot.slane %v3069_v1, %v3331_v12 }
0x10ec   :  { %v1953_v48 = vrot.slane %v3069_v1, %v3339_v19  ;;  %v1961_v36 = vrot.slane %v3069_v1, %v3352_v27  ;;  %v1969_v47 = vrot.slane %v3069_v1, %v3424_v32 }
0x10ed   :  { %v1982_v53 = vmul.f32 %v3061_v34, %v1957_v31  ;;  %v1978_v44 = vmul.f32 %v3053_v63, %v1941_v56  ;;  %v1979_v50 = vmul.f32 %v3055_v51, %v1945_v5  ;;  %v1980_v62 = vmul.f32 %v3057_v23, %v1949_v58  ;;  %v4012_v5 = vld [vmem:[#allocation14_spill] sm:$0xff] }
0x10ee   :  { %v1981_v45 = vmul.f32 %v3059_v4, %v1953_v48  ;;  %v1983_v46 = vmul.f32 %v3063_v15, %v1961_v36  ;;  %v1965_v34 = vrot.slane %v3069_v1, %v3427_v33  ;;  %v1985_v51 = vmul.f32 %v3067_v59, %v1969_v47 }
0x10ef   :  { %2008 = vperm.xlu0 %2946, %v1982_v53   ;;  %1988 = vperm.xlu1 %2947, %v1978_v44  }
0x10f0   :  { %v1984_v63 = vmul.f32 %v3065_v35, %v1965_v34 }
0x10f3   :  { %1993 = vperm.xlu1 %2947, %v1979_v50  }
0x10f7   :  { %1998 = vperm.xlu1 %2947, %v1980_v62  }
0x10fb   :  { %2003 = vperm.xlu1 %2947, %v1981_v45  }
0x10ff   :  { %2013 = vperm.xlu1 %2947, %v1983_v46  }
0x1103   :  { %2018 = vperm.xlu1 %2947, %v1984_v63  }
0x1107   :  { %2023 = vperm.xlu1 %2947, %v1985_v51  }
0x116e   :  { %v2009_v21 = vpop.permute.xlu0 %2008  ;;  %v1989_v6 = vpop.permute.xlu1 %1988 }
0x116f   :  { %v2030_v23 = vmul.f32 %v2009_v21, %v4003_v24  ;;  %v2026_v8 = vmul.f32 %v1989_v6, %v4010_v28 }
0x1171   :  { %v2058_v4 = vrot.slane %v2030_v23, 4  ;;  %v2034_v22 = vrot.slane %v2026_v8, 4 }
0x1172   :  { %v1994_v57 = vpop.permute.xlu1 %1993 }
0x1173   :  { %v2059_v52 = vadd.f32 %v2058_v4, %v2030_v23  ;;  %v2035_v15 = vadd.f32 %v2034_v22, %v2026_v8  ;;  %v2027_v31 = vmul.f32 %v1994_v57, %v4011_v14 }
0x1175   :  { %v2036_v56 = vrot.slane %v2035_v15, 2  ;;  %v2040_v35 = vrot.slane %v2027_v31, 4  ;;  %v2060_v1 = vrot.slane %v2059_v52, 2 }
0x1176   :  { %v1999_v53 = vpop.permute.xlu1 %1998 }
0x1177   :  { %v2037_v44 = vadd.f32 %v2036_v56, %v2035_v15  ;;  %v2041_v59 = vadd.f32 %v2040_v35, %v2027_v31  ;;  %v2028_v50 = vmul.f32 %v1999_v53, %v4012_v5  ;;  %v2061_v36 = vadd.f32 %v2060_v1, %v2059_v52 }
0x1179   :  { %v2038_v58 = vrot.slane %v2037_v44, 1  ;;  %v2042_v62 = vrot.slane %v2041_v59, 2  ;;  %v2046_v48 = vrot.slane %v2028_v50, 4  ;;  %v2062_v8 = vrot.slane %v2061_v36, 1 }
0x117a   :  { %v2004_v45 = vpop.permute.xlu1 %2003 }
0x117b   :  { %v2039_v46 = vadd.f32 %v2038_v58, %v2037_v44  ;;  %v2043_v34 = vadd.f32 %v2042_v62, %v2041_v59  ;;  %v2047_v63 = vadd.f32 %v2046_v48, %v2028_v50  ;;  %v2029_v47 = vmul.f32 %v2004_v45, %v3395_v3 }
0x117c   :  { %v2063_v53 = vadd.f32 %v2062_v8, %v2061_v36 }
0x117d   :  { %v2044_v51 = vrot.slane %v2043_v34, 1  ;;  %v2048_v21 = vrot.slane %v2047_v63, 2  ;;  %3070 = vtanh.f32 %v2039_v46  ;;  %v2052_v6 = vrot.slane %v2029_v47, 4 }
0x117e   :  { %v2014_v23 = vpop.permute.xlu1 %2013 }
0x117f   :  { %v2045_v4 = vadd.f32 %v2044_v51, %v2043_v34  ;;  %v2049_v22 = vadd.f32 %v2048_v21, %v2047_v63  ;;  %v2031_v57 = vmul.f32 %v2014_v23, %v3408_v20  ;;  %v2053_v15 = vadd.f32 %v2052_v6, %v2029_v47 }
0x1181   :  { %3072 = vtanh.f32 %v2045_v4  ;;  %v2050_v31 = vrot.slane %v2049_v22, 1  ;;  %v2064_v56 = vrot.slane %v2031_v57, 4  ;;  %v2054_v52 = vrot.slane %v2053_v15, 2 }
0x1182   :  { %v2019_v35 = vpop.permute.xlu1 %2018 }
0x1183   :  { %v2051_v1 = vadd.f32 %v2050_v31, %v2049_v22  ;;  %v2065_v44 = vadd.f32 %v2064_v56, %v2031_v57  ;;  %v2032_v59 = vmul.f32 %v2019_v35, %v3415_v26  ;;  %v2055_v50 = vadd.f32 %v2054_v52, %v2053_v15 }
0x1185   :  { %3074 = vtanh.f32 %v2051_v1  ;;  %v2066_v58 = vrot.slane %v2065_v44, 2  ;;  %v2070_v62 = vrot.slane %v2032_v59, 4  ;;  %v2056_v48 = vrot.slane %v2055_v50, 1 }
0x1186   :  { %v2024_v45 = vpop.permute.xlu1 %2023  ;;  %3076 = vtanh.f32 %v2063_v53 }
0x1187   :  { %v2067_v46 = vadd.f32 %v2066_v58, %v2065_v44  ;;  %v2071_v34 = vadd.f32 %v2070_v62, %v2032_v59  ;;  %v2033_v63 = vmul.f32 %v2024_v45, %v3420_v30  ;;  %v3071_v47 = vpop.eup %3070  ;;  %v2057_v51 = vadd.f32 %v2056_v48, %v2055_v50 }
0x1188   :  { %v2090_v23 = vpack.c.bf16 %v3071_v47, %v3071_v47 }
0x1189   :  { %v2068_v21 = vrot.slane %v2067_v46, 1  ;;  %v2072_v6 = vrot.slane %v2071_v34, 2  ;;  %v2076_v36 = vrot.slane %v2033_v63, 4  ;;  %3078 = vtanh.f32 %v2057_v51 }
0x118a   :  { %v2106_v52 = vunpack.c.l.b16 %v2090_v23 }
0x118b   :  { %v3073_v8 = vpop.eup %3072  ;;  %v2069_v4 = vadd.f32 %v2068_v21, %v2067_v46  ;;  %v2073_v22 = vadd.f32 %v2072_v6, %v2071_v34  ;;  %v2077_v57 = vadd.f32 %v2076_v36, %v2033_v63 }
0x118c   :  { %v2091_v15 = vpack.c.bf16 %v3073_v8, %v3073_v8 }
0x118d   :  { %3080 = vtanh.f32 %v2069_v4  ;;  %v2074_v31 = vrot.slane %v2073_v22, 1  ;;  %v2078_v56 = vrot.slane %v2077_v57, 2 }
0x118e   :  { %v2107_v35 = vunpack.c.l.b16 %v2091_v15 }
0x118f   :  { %v3075_v53 = vpop.eup %3074  ;;  %v2075_v1 = vadd.f32 %v2074_v31, %v2073_v22  ;;  %v2079_v44 = vadd.f32 %v2078_v56, %v2077_v57 }
0x1190   :  { %v2114_v59 = vsel %vm549_vm1, %v2107_v35, %v2106_v52  ;;  %v2092_v50 = vpack.c.bf16 %v3075_v53, %v3075_v53  ;;  %v3077_v58 = vpop.eup %3076 }
0x1191   :  { %3082 = vtanh.f32 %v2075_v1  ;;  %v2080_v62 = vrot.slane %v2079_v44, 1  ;;  %v2094_v34 = vpack.c.bf16 %v3077_v58, %v3077_v58 }
0x1192   :  { %v2108_v48 = vunpack.c.l.b16 %v2092_v50  ;;  %v3854_v50 = vld [vmem:[%s3975_s4] ss:$0 sm:$0xff] }
0x1193   :  { %v2081_v45 = vadd.f32 %v2080_v62, %v2079_v44  ;;  %v3079_v46 = vpop.eup %3078  ;;  %v2110_v6 = vunpack.c.l.b16 %v2094_v34 }
0x1194   :  { %v2115_v63 = vsel %vm551_vm2, %v2108_v48, %v2114_v59  ;;  %v2093_v47 = vpack.c.bf16 %v3079_v46, %v3079_v46 }
0x1195   :  { %3084 = vtanh.f32 %v2081_v45 }
0x1196   :  { %v2109_v21 = vunpack.c.l.b16 %v2093_v47 }
0x1197   :  { %v3081_v51 = vpop.eup %3080 }
0x1198   :  { %v2095_v36 = vpack.c.bf16 %v3081_v51, %v3081_v51  ;;  %v2116_v23 = vsel %vm553_vm3, %v2109_v21, %v2115_v63 }
0x1199   :  { %v2117_v4 = vsel %vm555_vm4, %v2110_v6, %v2116_v23 }
0x119a   :  { %v2111_v8 = vunpack.c.l.b16 %v2095_v36 }
0x119b   :  { %v3083_v22 = vpop.eup %3082 }
0x119c   :  { %v2096_v57 = vpack.c.bf16 %v3083_v22, %v3083_v22  ;;  %v2118_v15 = vsel %vm557_vm5, %v2111_v8, %v2117_v4 }
0x119e   :  { %v2112_v31 = vunpack.c.l.b16 %v2096_v57 }
0x119f   :  { %v3085_v56 = vpop.eup %3084 }
0x11a0   :  { %v2097_v52 = vpack.c.bf16 %v3085_v56, %v3085_v56  ;;  %v2119_v35 = vsel %vm559_vm6, %v2112_v31, %v2118_v15  ;;  %v4013_v15 = vld [vmem:[#allocation19_spill] sm:$0xff] }
0x11a1   :  { %v2771_v31 = vsel %vm2770_vm12, %v4013_v15, %v3753_v18 }
0x11a2   :  { %v2113_v53 = vunpack.c.l.b16 %v2097_v52 }
0x11a4   :  { %v2120_v1 = vsel %vm561_vm7, %v2113_v53, %v2119_v35 }
0x11a5   :  { %v2121_v44 = vpack.c.b16 %v2120_v1, %v2120_v1 }
0x11a7   :  { %2911 = vmatmul.mubr.bf16.vlgmr.msra.gmra.mrb[4].mxu1 %v2121_v44 }
0x127a   :  { %v2157_v59 = vpop.f32.mrb[4].mxu1 }
0x127b   :  { %v2158_v58 = vadd.f32 %v3854_v50, %v2157_v59  ;;  %v2912_v62 = vpop.f32.mrb[5].mxu1 }
0x127c   :  { %v2160_v48 = vpop.f32.mrb[6].mxu1 }
0x127d   :  { %2163 = vmax.xlane.f32.xlu1 %v2158_v58  ;;  %v2913_v45 = vpop.f32.mrb[7].mxu1 }
0x130a   :  { %v2164_v46 = vpop.xlane.xlu1 %2163 }
0x130b   :  { %vm2165_vm10 = vcmp.eq.f32.partialorder %v2158_v58, %v2164_v46 }
0x130c   :  { %v2166_v34 = vsel %vm2165_vm10, %v3362_v39, 128 }
0x130d   :  { %v2168_v63 = vshra.s32 %v2166_v34, 16  ;;  %v2167_v51 = vand.u32 65535, %v2166_v34 }
0x130f   :  { %v2170_v47 = vcvt.s32.f32 %v2168_v63  ;;  %v2169_v21 = vcvt.s32.f32 %v2167_v51 }
0x1311   :  { %2171 = vmin.xlane.f32.xlu0 %v2170_v47 }
0x139e   :  { %v2172_v6 = vpop.xlane.xlu0 %2171 }
0x139f   :  { %vm2173_vm11 = vcmp.eq.f32.partialorder %v2170_v47, %v2172_v6  ;;  %v2178_v23 = vcvt.f32.s32 %v2172_v6 }
0x13a0   :  { %v2174_v36 = vsel %vm2173_vm11, %v2169_v21, inf }
0x13a1   :  { %2175 = vmin.xlane.f32.xlu1 %v2174_v36  ;;  %v2179_v4 = vshll.u32 %v2178_v23, 16 }
0x142e   :  { %v2176_v8 = vpop.xlane.xlu1 %2175 }
0x142f   :  { %v2177_v22 = vcvt.f32.s32 %v2176_v8 }
0x1431   :  { %v2180_v57 = vadd.s32 %v2179_v4, %v2177_v22 }
0x1433   :  { %vm2181_vm14 = vcmp.lt.s32.totalorder %v2180_v57, 127 }
0x1434   :  { %v2182_v56 = vsel %vm2181_vm14, %v2180_v57, 127 }
0x1435   :  { %vm2183_vm15 = vcmp.eq.s32.totalorder %v3362_v39, %v2182_v56  ;;  %v3861_v52 = vsel %vm2772_vm13, %v2771_v31, %v2182_v56 }
0x1436   :  { %v2817_v35 = vsel %vm2183_vm15, 1.0, %v4001_v7 }
0x1437   :  { %v2187_v53 = vcombine.high %v2817_v35, %v2817_v35  ;;  %v2194_v1 = vrot.slane %v2817_v35, %v3366_v41 }
0x1439   :  { %v2201_v44 = vrot.slane %v2187_v53, %v3366_v41  ;;  %v2202_v59 = vcombine.high %v2194_v1, %v2194_v1  ;;  %v2210_v58 = vrot.slane %v2194_v1, %v3366_v41 }
0x143b   :  { %v2239_v62 = vrot.slane %v2210_v58, %v3325_v10  ;;  %v2224_v48 = vrot.slane %v2202_v59, %v3366_v41  ;;  %v2232_v18 = vcombine.high %v2210_v58, %v2210_v58  ;;  %v2217_v45 = vrot.slane %v2201_v44, %v3366_v41 }
0x143c   :  { %v2203_v46 = vcombine.high %v2201_v44, %v2201_v44 }
0x143d   :  { %v2276_v34 = vmul.f32 %v2239_v62, %v3373_v49  ;;  %v2243_v7 = vrot.slane %v2224_v48, %v3325_v10  ;;  %v2247_v63 = vrot.slane %v2232_v18, %v3325_v10  ;;  %v2234_v47 = vcombine.high %v2224_v48, %v2224_v48 }
0x143e   :  { %v2231_v6 = vrot.slane %v2203_v46, %v3366_v41  ;;  %v2255_v23 = vrot.slane %v2217_v45, %v3325_v10  ;;  %v2233_v8 = vcombine.high %v2217_v45, %v2217_v45 }
0x143f   :  { %2284 = vadd.xlane.f32.xlu0 %v2276_v34  ;;  %v2277_v51 = vmul.f32 %v2243_v7, %v3379_v54  ;;  %v2251_v21 = vrot.slane %v2234_v47, %v3325_v10  ;;  %v2278_v36 = vmul.f32 %v2247_v63, %v3386_v61 }
0x1440   :  { %v2259_v4 = vrot.slane %v2231_v6, %v3325_v10  ;;  %v2235_v22 = vcombine.high %v2231_v6, %v2231_v6  ;;  %v2280_v57 = vmul.f32 %v2255_v23, %v3401_v9  ;;  %v2263_v54 = vrot.slane %v2233_v8, %v3325_v10 }
0x1441   :  { %2286 = vadd.xlane.f32.xlu1 %v2277_v51  ;;  %v2279_v49 = vmul.f32 %v2251_v21, %v3393_v2 }
0x1442   :  { %v2281_v41 = vmul.f32 %v2259_v4, %v3406_v17  ;;  %v2267_v15 = vrot.slane %v2235_v22, %v3325_v10  ;;  %v2282_v61 = vmul.f32 %v2263_v54, %v3413_v25 }
0x1443   :  { %2288 = vadd.xlane.f32.xlu0 %v2278_v36 }
0x1444   :  { %v2283_v31 = vmul.f32 %v2267_v15, %v3418_v29 }
0x1445   :  { %2290 = vadd.xlane.f32.xlu1 %v2279_v49 }
0x1447   :  { %2292 = vadd.xlane.f32.xlu0 %v2280_v57 }
0x1449   :  { %2294 = vadd.xlane.f32.xlu1 %v2281_v41 }
0x144b   :  { %2296 = vadd.xlane.f32.xlu0 %v2282_v61 }
0x144d   :  { %2298 = vadd.xlane.f32.xlu1 %v2283_v31 }
0x14cc   :  { %v2285_v2 = vpop.xlane.xlu0 %2284 }
0x14cd   :  { %v2300_v56 = vadd.f32 %v2285_v2, %v3435_v38 }
0x14ce   :  { %v2287_v35 = vpop.xlane.xlu1 %2286 }
0x14cf   :  { %v2301_v9 = vadd.f32 %v2287_v35, %v3433_v37  ;;  %2317 = vperm.xlu0 %2946, %v2300_v56  }
0x14d0   :  { %v2289_v53 = vpop.xlane.xlu0 %2288 }
0x14d1   :  { %2320 = vperm.xlu1 %2947, %v2301_v9   ;;  %v2302_v17 = vadd.f32 %v2289_v53, %v3437_v40 }
0x14d2   :  { %v2291_v1 = vpop.xlane.xlu1 %2290 }
0x14d3   :  { %v2303_v29 = vadd.f32 %v2291_v1, %v3441_v43 }
0x14d4   :  { %v2293_v44 = vpop.xlane.xlu0 %2292 }
0x14d5   :  { %v2304_v59 = vadd.f32 %v2293_v44, %v3439_v42  ;;  %2323 = vperm.xlu1 %2947, %v2302_v17  }
0x14d6   :  { %v2295_v25 = vpop.xlane.xlu1 %2294 }
0x14d7   :  { %2329 = vperm.xlu0 %2946, %v2304_v59   ;;  %v2305_v37 = vadd.f32 %v2295_v25, %v4007_v60 }
0x14d8   :  { %v2297_v58 = vpop.xlane.xlu0 %2296 }
0x14d9   :  { %v3892_v38 = vadd.f32 %v2297_v58, %v4008_v55  ;;  %2326 = vperm.xlu1 %2947, %v2303_v29  }
0x14da   :  { %v2299_v62 = vpop.xlane.xlu1 %2298 }
0x14db   :  { %2335 = vperm.xlu0 %2946, %v3892_v38   ;;  %v2307_v40 = vadd.f32 %v2299_v62, %v4009_v0 }
0x14dd   :  { %2332 = vperm.xlu1 %2947, %v2305_v37  }
0x14e1   :  { %2338 = vperm.xlu1 %2947, %v2307_v40  }
0x154e   :  { %v2318_v48 = vpop.permute.xlu0 %2317 }
0x154f   :  { %v2343_v55 = vrot.slane %v2318_v48, %v3480_v16 }
0x1550   :  { %v2321_v42 = vpop.permute.xlu1 %2320 }
0x1551   :  { %v2347_v43 = vrot.slane %v2321_v42, %v3480_v16 }
0x1553   :  { %v2372_v60 = vsel %vm549_vm1, %v2347_v43, %v2343_v55 }
0x1554   :  { %v2324_v18 = vpop.permute.xlu1 %2323 }
0x1555   :  { %v2351_v45 = vrot.slane %v2324_v18, %v3480_v16 }
0x1556   :  { %v2330_v46 = vpop.permute.xlu0 %2329 }
0x1557   :  { %v2373_v63 = vsel %vm551_vm2, %v2351_v45, %v2372_v60  ;;  %v2359_v47 = vrot.slane %v2330_v46, %v3480_v16 }
0x1558   :  { %v2327_v34 = vpop.permute.xlu1 %2326 }
0x1559   :  { %v2355_v7 = vrot.slane %v2327_v34, %v3480_v16 }
0x155a   :  { %v2336_v21 = vpop.permute.xlu0 %2335 }
0x155b   :  { %v2374_v0 = vsel %vm553_vm3, %v2355_v7, %v2373_v63  ;;  %v2367_v8 = vrot.slane %v2336_v21, %v3480_v16 }
0x155c   :  { %v2333_v51 = vpop.permute.xlu1 %2332  ;;  %v2375_v36 = vsel %vm555_vm4, %v2359_v47, %v2374_v0 }
0x155d   :  { %v2363_v6 = vrot.slane %v2333_v51, %v3480_v16 }
0x155f   :  { %v2376_v23 = vsel %vm557_vm5, %v2363_v6, %v2375_v36 }
0x1560   :  { %v2339_v49 = vpop.permute.xlu1 %2338  ;;  %v2377_v22 = vsel %vm559_vm6, %v2367_v8, %v2376_v23 }
0x1561   :  { %v2371_v4 = vrot.slane %v2339_v49, %v3480_v16 }
0x1563   :  { %v2378_v57 = vsel %vm561_vm7, %v2371_v4, %v2377_v22 }
0x1564   :  { %v2380_v54 = vsel %vm564_vm8, %v2378_v57, -inf }
0x1565   :  { %2381 = vmax.xlane.f32.xlu0 %v2380_v54 }
0x15f2   :  { %v2382_v41 = vpop.xlane.xlu0 %2381 }
0x15f3   :  { %v2387_v15 = vrot.slane %v2382_v41, %v3325_v10  ;;  %v2391_v61 = vrot.slane %v2382_v41, %v3328_v11  ;;  %v2415_v31 = vrot.slane %v2382_v41, %v3424_v32  ;;  %v2395_v2 = vrot.slane %v2382_v41, %v3331_v12 }
0x15f4   :  { %v2399_v25 = vrot.slane %v2382_v41, %v3339_v19  ;;  %v2403_v48 = vrot.slane %v2382_v41, %v3334_v13  ;;  %v2407_v45 = vrot.slane %v2382_v41, %v3352_v27 }
0x15f5   :  { %v2424_v35 = vsub.f32 %v2300_v56, %v2387_v15  ;;  %v2425_v53 = vsub.f32 %v2301_v9, %v2391_v61  ;;  %v2431_v44 = vsub.f32 %v2307_v40, %v2415_v31  ;;  %v2426_v58 = vsub.f32 %v2302_v17, %v2395_v2 }
0x15f6   :  { %v2427_v18 = vsub.f32 %v2303_v29, %v2399_v25  ;;  %v2428_v55 = vsub.f32 %v2304_v59, %v2403_v48  ;;  %v2411_v40 = vrot.slane %v2382_v41, %v3427_v33  ;;  %v2429_v46 = vsub.f32 %v2305_v37, %v2407_v45 }
0x15f7   :  { %v2432_v1 = vmul.f32 1.442695, %v2424_v35  ;;  %v2434_v62 = vmul.f32 1.442695, %v2425_v53  ;;  %v2446_v42 = vmul.f32 1.442695, %v2431_v44 }
0x15f8   :  { %v2436_v43 = vmul.f32 1.442695, %v2426_v58  ;;  %v2438_v56 = vmul.f32 1.442695, %v2427_v18  ;;  %v2440_v17 = vmul.f32 1.442695, %v2428_v55  ;;  %v2430_v60 = vsub.f32 %v3892_v38, %v2411_v40 }
0x15f9   :  { %3086 = vpow2.f32 %v2432_v1  ;;  %v2442_v29 = vmul.f32 1.442695, %v2429_v46 }
0x15fa   :  { %3088 = vpow2.f32 %v2434_v62  ;;  %v2444_v59 = vmul.f32 1.442695, %v2430_v60 }
0x15fb   :  { %3090 = vpow2.f32 %v2446_v42 }
0x15fc   :  { %3092 = vpow2.f32 %v2436_v43 }
0x15fd   :  { %3094 = vpow2.f32 %v2438_v56 }
0x15fe   :  { %3096 = vpow2.f32 %v2440_v17 }
0x15ff   :  { %3098 = vpow2.f32 %v2442_v29 }
0x1600   :  { %3100 = vpow2.f32 %v2444_v59 }
0x1603   :  { %v3087_v9 = vpop.eup %3086 }
0x1604   :  { %2457 = vperm.xlu1 %2947, %v3087_v9   ;;  %v3089_v34 = vpop.eup %3088 }
0x1605   :  { %v3922_v7 = vpop.eup %3090 }
0x1606   :  { %v3093_v63 = vpop.eup %3092  ;;  %2478 = vperm.xlu0 %2946, %v3922_v7  }
0x1607   :  { %v3095_v0 = vpop.eup %3094 }
0x1608   :  { %2460 = vperm.xlu1 %2947, %v3089_v34   ;;  %v3097_v37 = vpop.eup %3096 }
0x1609   :  { %v3099_v47 = vpop.eup %3098 }
0x160a   :  { %v3101_v51 = vpop.eup %3100 }
0x160c   :  { %2463 = vperm.xlu1 %2947, %v3093_v63  }
0x1610   :  { %2466 = vperm.xlu1 %2947, %v3095_v0  }
0x1614   :  { %2469 = vperm.xlu1 %2947, %v3097_v37  }
0x1618   :  { %2472 = vperm.xlu1 %2947, %v3099_v47  }
0x161c   :  { %2475 = vperm.xlu1 %2947, %v3101_v51  }
0x1683   :  { %v2458_v38 = vpop.permute.xlu1 %2457 }
0x1684   :  { %v2483_v4 = vrot.slane %v2458_v38, %v3480_v16 }
0x1685   :  { %v2479_v61 = vpop.permute.xlu0 %2478 }
0x1686   :  { %v2511_v44 = vrot.slane %v2479_v61, %v3480_v16 }
0x1687   :  { %v2461_v21 = vpop.permute.xlu1 %2460 }
0x1688   :  { %v2487_v8 = vrot.slane %v2461_v21, %v3480_v16 }
0x168a   :  { %v2512_v41 = vsel %vm549_vm1, %v2487_v8, %v2483_v4 }
0x168b   :  { %v2464_v6 = vpop.permute.xlu1 %2463 }
0x168c   :  { %v2491_v49 = vrot.slane %v2464_v6, %v3480_v16 }
0x168e   :  { %v2513_v31 = vsel %vm551_vm2, %v2491_v49, %v2512_v41 }
0x168f   :  { %v2467_v36 = vpop.permute.xlu1 %2466 }
0x1690   :  { %v2495_v22 = vrot.slane %v2467_v36, %v3480_v16 }
0x1692   :  { %v2514_v2 = vsel %vm553_vm3, %v2495_v22, %v2513_v31 }
0x1693   :  { %v2470_v23 = vpop.permute.xlu1 %2469 }
0x1694   :  { %v2499_v54 = vrot.slane %v2470_v23, %v3480_v16 }
0x1696   :  { %v2515_v53 = vsel %vm555_vm4, %v2499_v54, %v2514_v2 }
0x1697   :  { %v2473_v57 = vpop.permute.xlu1 %2472 }
0x1698   :  { %v2503_v15 = vrot.slane %v2473_v57, %v3480_v16 }
0x169a   :  { %v2516_v25 = vsel %vm557_vm5, %v2503_v15, %v2515_v53 }
0x169b   :  { %v2476_v35 = vpop.permute.xlu1 %2475 }
0x169c   :  { %v2507_v1 = vrot.slane %v2476_v35, %v3480_v16 }
0x169e   :  { %v2517_v58 = vsel %vm559_vm6, %v2507_v1, %v2516_v25 }
0x169f   :  { %v2518_v62 = vsel %vm561_vm7, %v2511_v44, %v2517_v58 }
0x16a0   :  { %v2520_v42 = vsel %vm564_vm8, %v2518_v62, 0.0 }
0x16a1   :  { %2521 = vadd.xlane.f32.xlu1 %v2520_v42 }
0x172e   :  { %v2522_v48 = vpop.xlane.xlu1 %2521 }
0x172f   :  { %3102 = vrcp.f32 %v2522_v48 }
0x1739   :  { %v3103_v18 = vpop.eup %3102 }
0x173a   :  { %v2544_v43 = vrot.slane %v3103_v18, %v3334_v13  ;;  %v2528_v45 = vrot.slane %v3103_v18, %v3325_v10  ;;  %v2532_v16 = vrot.slane %v3103_v18, %v3328_v11  ;;  %v2536_v46 = vrot.slane %v3103_v18, %v3331_v12 }
0x173b   :  { %v2540_v60 = vrot.slane %v3103_v18, %v3339_v19  ;;  %v2548_v59 = vrot.slane %v3103_v18, %v3352_v27  ;;  %v2552_v10 = vrot.slane %v3103_v18, %v3427_v33  ;;  %v2556_v11 = vrot.slane %v3103_v18, %v3424_v32 }
0x173c   :  { %v2569_v55 = vmul.f32 %v3097_v37, %v2544_v43  ;;  %v2565_v56 = vmul.f32 %v3087_v9, %v2528_v45  ;;  %v2566_v40 = vmul.f32 %v3089_v34, %v2532_v16  ;;  %v2567_v17 = vmul.f32 %v3093_v63, %v2536_v46 }
0x173d   :  { %v2568_v29 = vmul.f32 %v3095_v0, %v2540_v60  ;;  %v2570_v13 = vmul.f32 %v3099_v47, %v2548_v59  ;;  %v2571_v9 = vmul.f32 %v3101_v51, %v2552_v10  ;;  %v2572_v34 = vmul.f32 %v3922_v7, %v2556_v11 }
0x173e   :  { %2595 = vperm.xlu1 %2947, %v2569_v55   ;;  %2575 = vperm.xlu0 %2946, %v2565_v56  }
0x1742   :  { %2580 = vperm.xlu0 %2946, %v2566_v40  }
0x1746   :  { %2585 = vperm.xlu0 %2946, %v2567_v17  }
0x174a   :  { %2590 = vperm.xlu0 %2946, %v2568_v29  }
0x174e   :  { %2600 = vperm.xlu0 %2946, %v2570_v13  }
0x1752   :  { %2605 = vperm.xlu0 %2946, %v2571_v9  }
0x1756   :  { %2610 = vperm.xlu0 %2946, %v2572_v34  }
0x17bd   :  { %v2596_v12 = vpop.permute.xlu1 %2595  ;;  %v2576_v63 = vpop.permute.xlu0 %2575 }
0x17be   :  { %v2617_v19 = vmul.f32 %v2596_v12, %v4003_v24  ;;  %v2613_v0 = vmul.f32 %v2576_v63, %v4010_v28 }
0x17c0   :  { %v2645_v37 = vrot.slane %v2617_v19, 4  ;;  %v2621_v27 = vrot.slane %v2613_v0, 4 }
0x17c1   :  { %v2581_v38 = vpop.permute.xlu0 %2580 }
0x17c2   :  { %v2646_v47 = vadd.f32 %v2645_v37, %v2617_v19  ;;  %v2622_v21 = vadd.f32 %v2621_v27, %v2613_v0  ;;  %v2614_v33 = vmul.f32 %v2581_v38, %v4011_v14 }
0x17c4   :  { %v2623_v51 = vrot.slane %v2622_v21, 2  ;;  %v2627_v6 = vrot.slane %v2614_v33, 4  ;;  %v2647_v36 = vrot.slane %v2646_v47, 2 }
0x17c5   :  { %v2586_v32 = vpop.permute.xlu0 %2585 }
0x17c6   :  { %v2624_v23 = vadd.f32 %v2623_v51, %v2622_v21  ;;  %v2628_v7 = vadd.f32 %v2627_v6, %v2614_v33  ;;  %v2615_v8 = vmul.f32 %v2586_v32, %v4012_v5  ;;  %v2648_v28 = vadd.f32 %v2647_v36, %v2646_v47 }
0x17c8   :  { %v2625_v49 = vrot.slane %v2624_v23, 1  ;;  %v2629_v4 = vrot.slane %v2628_v7, 2  ;;  %v2633_v24 = vrot.slane %v2615_v8, 4  ;;  %v2649_v35 = vrot.slane %v2648_v28, 1 }
0x17c9   :  { %v2591_v22 = vpop.permute.xlu0 %2590 }
0x17ca   :  { %v2626_v57 = vadd.f32 %v2625_v49, %v2624_v23  ;;  %v2630_v54 = vadd.f32 %v2629_v4, %v2628_v7  ;;  %v2634_v41 = vadd.f32 %v2633_v24, %v2615_v8  ;;  %v2616_v15 = vmul.f32 %v2591_v22, %v3395_v3 }
0x17cb   :  { %v2650_v48 = vadd.f32 %v2649_v35, %v2648_v28 }
0x17cc   :  { %v2631_v61 = vrot.slane %v2630_v54, 1  ;;  %v2635_v14 = vrot.slane %v2634_v41, 2  ;;  %3104 = vtanh.f32 %v2626_v57  ;;  %v2639_v31 = vrot.slane %v2616_v15, 4 }
0x17cd   :  { %v2601_v2 = vpop.permute.xlu0 %2600 }
0x17ce   :  { %v2632_v53 = vadd.f32 %v2631_v61, %v2630_v54  ;;  %v2636_v1 = vadd.f32 %v2635_v14, %v2634_v41  ;;  %v2618_v5 = vmul.f32 %v2601_v2, %v3408_v20  ;;  %v2640_v44 = vadd.f32 %v2639_v31, %v2616_v15 }
0x17d0   :  { %3106 = vtanh.f32 %v2632_v53  ;;  %v2637_v25 = vrot.slane %v2636_v1, 1  ;;  %v2651_v58 = vrot.slane %v2618_v5, 4  ;;  %v2641_v62 = vrot.slane %v2640_v44, 2 }
0x17d1   :  { %v2606_v42 = vpop.permute.xlu0 %2605 }
0x17d2   :  { %v2638_v18 = vadd.f32 %v2637_v25, %v2636_v1  ;;  %v2652_v43 = vadd.f32 %v2651_v58, %v2618_v5  ;;  %v2619_v3 = vmul.f32 %v2606_v42, %v3415_v26  ;;  %v2642_v45 = vadd.f32 %v2641_v62, %v2640_v44 }
0x17d4   :  { %3108 = vtanh.f32 %v2638_v18  ;;  %v2653_v55 = vrot.slane %v2652_v43, 2  ;;  %v2657_v56 = vrot.slane %v2619_v3, 4  ;;  %v2643_v16 = vrot.slane %v2642_v45, 1 }
0x17d5   :  { %v2611_v40 = vpop.permute.xlu0 %2610  ;;  %3110 = vtanh.f32 %v2650_v48 }
0x17d6   :  { %v2654_v46 = vadd.f32 %v2653_v55, %v2652_v43  ;;  %v2658_v20 = vadd.f32 %v2657_v56, %v2619_v3  ;;  %v2620_v17 = vmul.f32 %v2611_v40, %v3420_v30  ;;  %v3105_v60 = vpop.eup %3104  ;;  %v2644_v29 = vadd.f32 %v2643_v16, %v2642_v45 }
0x17d7   :  { %v2677_v9 = vpack.c.bf16 %v3105_v60, %v3105_v60 }
0x17d8   :  { %v2655_v59 = vrot.slane %v2654_v46, 1  ;;  %v2659_v13 = vrot.slane %v2658_v20, 2  ;;  %v2663_v10 = vrot.slane %v2620_v17, 4  ;;  %3112 = vtanh.f32 %v2644_v29 }
0x17d9   :  { %v2693_v37 = vunpack.c.l.b16 %v2677_v9 }
0x17da   :  { %v3107_v11 = vpop.eup %3106  ;;  %v2656_v26 = vadd.f32 %v2655_v59, %v2654_v46  ;;  %v2660_v34 = vadd.f32 %v2659_v13, %v2658_v20  ;;  %v2664_v12 = vadd.f32 %v2663_v10, %v2620_v17 }
0x17db   :  { %v2678_v63 = vpack.c.bf16 %v3107_v11, %v3107_v11 }
0x17dc   :  { %3114 = vtanh.f32 %v2656_v26  ;;  %v2661_v19 = vrot.slane %v2660_v34, 1  ;;  %v2665_v0 = vrot.slane %v2664_v12, 2 }
0x17dd   :  { %v2694_v27 = vunpack.c.l.b16 %v2678_v63 }
0x17de   :  { %v3109_v38 = vpop.eup %3108  ;;  %v2662_v47 = vadd.f32 %v2661_v19, %v2660_v34  ;;  %v2666_v30 = vadd.f32 %v2665_v0, %v2664_v12 }
0x17df   :  { %v2701_v21 = vsel %vm549_vm1, %v2694_v27, %v2693_v37  ;;  %v2679_v33 = vpack.c.bf16 %v3109_v38, %v3109_v38  ;;  %v3111_v51 = vpop.eup %3110 }
0x17e0   :  { %3116 = vtanh.f32 %v2662_v47  ;;  %v2667_v6 = vrot.slane %v2666_v30, 1  ;;  %v2681_v7 = vpack.c.bf16 %v3111_v51, %v3111_v51 }
0x17e1   :  { %v2695_v32 = vunpack.c.l.b16 %v2679_v33 }
0x17e2   :  { %v2668_v36 = vadd.f32 %v2667_v6, %v2666_v30  ;;  %v3113_v23 = vpop.eup %3112  ;;  %v2697_v22 = vunpack.c.l.b16 %v2681_v7 }
0x17e3   :  { %v2702_v8 = vsel %vm551_vm2, %v2695_v32, %v2701_v21  ;;  %v2680_v49 = vpack.c.bf16 %v3113_v23, %v3113_v23 }
0x17e4   :  { %3118 = vtanh.f32 %v2668_v36 }
0x17e5   :  { %v2696_v24 = vunpack.c.l.b16 %v2680_v49 }
0x17e6   :  { %v3115_v4 = vpop.eup %3114 }
0x17e7   :  { %v2682_v28 = vpack.c.bf16 %v3115_v4, %v3115_v4  ;;  %v2703_v57 = vsel %vm553_vm3, %v2696_v24, %v2702_v8  ;;  %vm2774_vm3 = vcmask 23552  }
0x17e8   :  { %v2704_v41 = vsel %vm555_vm4, %v2697_v22, %v2703_v57  ;;  %vm2776_vm4 = vcmask 31744  }
0x17e9   :  { %v2698_v54 = vunpack.c.l.b16 %v2682_v28 }
0x17ea   :  { %v3117_v15 = vpop.eup %3116 }
0x17eb   :  { %v2683_v61 = vpack.c.bf16 %v3117_v15, %v3117_v15  ;;  %v2705_v14 = vsel %vm557_vm5, %v2698_v54, %v2704_v41 }
0x17ed   :  { %v2699_v31 = vunpack.c.l.b16 %v2683_v61 }
0x17ee   :  { %v3119_v2 = vpop.eup %3118 }
0x17ef   :  { %v2684_v35 = vpack.c.bf16 %v3119_v2, %v3119_v2  ;;  %v2706_v53 = vsel %vm559_vm6, %v2699_v31, %v2705_v14 }
0x17f1   :  { %v2700_v1 = vunpack.c.l.b16 %v2684_v35 }
0x17f3   :  { %v2707_v5 = vsel %vm561_vm7, %v2700_v1, %v2706_v53 }
0x17f4   :  { %v2708_v44 = vpack.c.b16 %v2707_v5, %v2707_v5 }
0x17f6   :  { %2931 = vmatmul.mubr.bf16.vlgmr.msra.gmra.mrb[20].mxu0 %v2708_v44 }
0x18c9   :  { %v2744_v25 = vpop.f32.mrb[20].mxu0 }
0x18ca   :  { %v2745_v58 = vadd.f32 %v3854_v50, %v2744_v25  ;;  %v2932_v62 = vpop.f32.mrb[21].mxu0 }
0x18cb   :  { %v2747_v42 = vpop.f32.mrb[22].mxu0 }
0x18cc   :  { %2750 = vmax.xlane.f32.xlu0 %v2745_v58  ;;  %v2933_v48 = vpop.f32.mrb[23].mxu0 }
0x1959   :  { %v2751_v18 = vpop.xlane.xlu0 %2750 }
0x195a   :  { %vm2752_vm1 = vcmp.eq.f32.partialorder %v2745_v58, %v2751_v18 }
0x195b   :  { %v2753_v43 = vsel %vm2752_vm1, %v3362_v39, 128 }
0x195c   :  { %v2755_v3 = vshra.s32 %v2753_v43, 16  ;;  %v2754_v55 = vand.u32 65535, %v2753_v43 }
0x195e   :  { %v2757_v45 = vcvt.s32.f32 %v2755_v3  ;;  %v2756_v56 = vcvt.s32.f32 %v2754_v55 }
0x1960   :  { %2758 = vmin.xlane.f32.xlu1 %v2757_v45 }
0x19ed   :  { %v2759_v16 = vpop.xlane.xlu1 %2758 }
0x19ee   :  { %vm2760_vm2 = vcmp.eq.f32.partialorder %v2757_v45, %v2759_v16  ;;  %v2765_v46 = vcvt.f32.s32 %v2759_v16 }
0x19ef   :  { %v2761_v40 = vsel %vm2760_vm2, %v2756_v56, inf }
0x19f0   :  { %2762 = vmin.xlane.f32.xlu0 %v2761_v40  ;;  %v2766_v50 = vshll.u32 %v2765_v46, 16 }
0x1a7d   :  { %v2763_v20 = vpop.xlane.xlu0 %2762 }
0x1a7e   :  { %v2764_v17 = vcvt.f32.s32 %v2763_v20 }
0x1a80   :  { %v2767_v60 = vadd.s32 %v2766_v50, %v2764_v17 }
0x1a82   :  { %vm2768_vm5 = vcmp.lt.s32.totalorder %v2767_v60, 127 }
0x1a83   :  { %v2769_v29 = vsel %vm2768_vm5, %v2767_v60, 127 }
0x1a84   :  { %v2775_v39 = vsel %vm2774_vm3, %v3861_v52, %v2769_v29 }
0x1a85   :  { %2777 = vst.msk [vmem:[%s3976_s5] sm:$0xff] %vm2776_vm4, %v2775_v39 }
0x1a86   :  { %2782 = vsyncpa [#allocation3], 1 }
0x1a87   :  { %2783 = vsyncpa [#allocation5], 1 }
0x1a88   :  { %2784 = vsyncpa [#allocation8], 1 }

</bundles_post_ra>
